<compile_context>
chip_gen: v7x
topology: tpu7x:2x2x1
jax: 0.10.0
libtpu: 0.0.40
codegen_flags: <defaults>
</compile_context>

<pallas_src>
import jax
import jax.numpy as jnp
from jax.experimental import pallas as pl

# ---------------- problem sizes (small, consistent with the module) ----------
B = 2        # batch
C_IN = 4     # in_channels
C_OUT = 8    # out_channels
K = 16       # kernel_size == spatial size (required by the broadcast semantics)
H = W = K
HW = H * W   # 256 -> lane axis, multiple of 128
EPS = 1e-5


# ----------------------------- Pallas kernel --------------------------------
def residual_block_kernel(x_ref, w1r_ref, w1i_ref, gb1_ref, w2_ref, gb2_ref,
                          wsr_ref, wsi_ref, gbs_ref, out_ref):
    # x_ref  : (B, 2*C_IN, HW)       rows [0:C_IN]=Re(x), [C_IN:2*C_IN]=Im(x)
    # w1r_ref: (2*C_IN, C_OUT, HW)   [W1_re ; -W1_im]  per packed input row
    # w1i_ref: (2*C_IN, C_OUT, HW)   [W1_im ;  W1_re]
    # gb*_ref: (4, C_OUT, 1)         rows: gamma_re, gamma_im, beta_re, beta_im
    # w2_ref : (2, C_OUT, HW)        Re / Im of the per-channel conv2 filters
    # wsr_ref: (2*C_IN, C_OUT, 1)    [Ws_re^T ; -Ws_im^T] shortcut mixing cols
    # wsi_ref: (2*C_IN, C_OUT, 1)    [Ws_im^T ;  Ws_re^T]
    # out_ref: (2, B, C_OUT, HW)     Re / Im planes of the block output

    def inst_norm(zr, zi, gb_ref):
        # complex instance norm over the spatial (lane) axis, per channel.
        mr = jnp.mean(zr, axis=-1, keepdims=True)
        mi = jnp.mean(zi, axis=-1, keepdims=True)
        ms = jnp.mean(zr * zr + zi * zi, axis=-1, keepdims=True)
        var = ms - (mr * mr + mi * mi)            # E[|z|^2] - |E[z]|^2 (real)
        inv = jax.lax.rsqrt(var + EPS)
        nr = (zr - mr) * inv
        ni = (zi - mi) * inv
        gr = gb_ref[0]                            # (C_OUT, 1) -> lane broadcast
        gi = gb_ref[1]
        br = gb_ref[2]
        bi = gb_ref[3]
        # complex gamma * n + beta
        return gr * nr - gi * ni + br, gr * ni + gi * nr + bi

    def log_mag(zr, zi):
        # log1p(|z|) * exp(i*angle(z)) == z * log1p(|z|)/|z|   (0 at z == 0)
        mag = jnp.sqrt(zr * zr + zi * zi)
        denom = jnp.where(mag > 0.0, mag, 1.0)
        scale = jnp.log1p(mag) * pl.reciprocal(denom, approx=False)
        return zr * scale, zi * scale

    w2r = w2_ref[0]                               # (C_OUT, HW)
    w2i = w2_ref[1]

    for b in range(B):                            # B=2, fully unrolled
        # ---- conv1 + 1x1 shortcut, accumulated over packed input rows ------
        y1r = jnp.zeros((C_OUT, HW), jnp.float32)
        y1i = jnp.zeros((C_OUT, HW), jnp.float32)
        sr = jnp.zeros((C_OUT, HW), jnp.float32)
        si = jnp.zeros((C_OUT, HW), jnp.float32)
        for j in range(2 * C_IN):                 # 8 packed (re|im) input rows
            xj = jnp.broadcast_to(x_ref[b, j], (C_OUT, HW))
            y1r = y1r + xj * w1r_ref[j]
            y1i = y1i + xj * w1i_ref[j]
            sr = sr + wsr_ref[j] * xj
            si = si + wsi_ref[j] * xj

        # ---- bn1 + Log_Magnitude --------------------------------------------
        h1r, h1i = inst_norm(y1r, y1i, gb1_ref)
        h1r, h1i = log_mag(h1r, h1i)

        # ---- conv2 (same in/out channels -> elementwise complex mult) + bn2 -
        y2r = h1r * w2r - h1i * w2i
        y2i = h1r * w2i + h1i * w2r
        h2r, h2i = inst_norm(y2r, y2i, gb2_ref)

        # ---- shortcut instance norm -----------------------------------------
        snr, sni = inst_norm(sr, si, gbs_ref)

        # ---- residual add + final Log_Magnitude ------------------------------
        outr, outi = log_mag(h2r + snr, h2i + sni)
        out_ref[0, b] = outr
        out_ref[1, b] = outi


# ------------------------- one-time weight packing ---------------------------
def pack_params(params):
    """One-time repack of complex params into Pallas-friendly f32 layouts."""
    w1 = params["w1"].reshape(C_OUT, C_IN, HW)
    w1r = jnp.transpose(jnp.real(w1), (1, 0, 2)).astype(jnp.float32)  # (C_IN, C_OUT, HW)
    w1i = jnp.transpose(jnp.imag(w1), (1, 0, 2)).astype(jnp.float32)
    w1_real_c = jnp.concatenate([w1r, -w1i], axis=0)      # (2*C_IN, C_OUT, HW)
    w1_imag_c = jnp.concatenate([w1i, w1r], axis=0)

    w2 = params["w2"].reshape(C_OUT, HW)
    w2_p = jnp.stack([jnp.real(w2), jnp.imag(w2)]).astype(jnp.float32)  # (2, C_OUT, HW)

    wsr = jnp.real(params["ws"]).astype(jnp.float32).T    # (C_IN, C_OUT)
    wsi = jnp.imag(params["ws"]).astype(jnp.float32).T
    ws_real_c = jnp.concatenate([wsr, -wsi], axis=0)[:, :, None]  # (2*C_IN, C_OUT, 1)
    ws_imag_c = jnp.concatenate([wsi, wsr], axis=0)[:, :, None]

    def pack_gb(g, bb):
        gb = jnp.stack([jnp.real(g), jnp.imag(g), jnp.real(bb), jnp.imag(bb)])
        return gb.astype(jnp.float32)[:, :, None]         # (4, C_OUT, 1)

    return {
        "w1rc": w1_real_c, "w1ic": w1_imag_c, "w2": w2_p,
        "wsrc": ws_real_c, "wsic": ws_imag_c,
        "gb1": pack_gb(params["g1"], params["b1"]),
        "gb2": pack_gb(params["g2"], params["b2"]),
        "gbs": pack_gb(params["gs"], params["bs"]),
    }


# ------------------------------- wrapper --------------------------------------
@jax.jit
def residual_block_pallas(x_c, packed):
    """x_c: complex64 (B, C_IN, H, W). Returns complex64 (B, C_OUT, H, W)."""
    # only x needs packing per call
    x = x_c.reshape(B, C_IN, HW)
    x_p = jnp.concatenate([jnp.real(x), jnp.imag(x)], axis=1).astype(jnp.float32)

    out = pl.pallas_call(
        residual_block_kernel,
        out_shape=jax.ShapeDtypeStruct((2, B, C_OUT, HW), jnp.float32),
        # No grid / BlockSpecs: all operands (<1 MiB) are placed whole in VMEM
        # for a single invocation -> no per-grid-step pipeline overhead and no
        # needless double-buffering of constant weight blocks.
    )(x_p, packed["w1rc"], packed["w1ic"], packed["gb1"], packed["w2"],
      packed["gb2"], packed["wsrc"], packed["wsic"], packed["gbs"])

    out_c = (out[0] + 1j * out[1]).astype(jnp.complex64)
    return out_c.reshape(B, C_OUT, H, W)


# ----------------------- pure-JAX complex reference --------------------------
def residual_block_ref(x, p):
    def inorm(z, g, b):
        mean = jnp.mean(z, axis=(-2, -1), keepdims=True)
        var = jnp.mean(jnp.abs(z - mean) ** 2, axis=(-2, -1), keepdims=True)
        n = (z - mean) / jnp.sqrt(var + EPS)
        return g.reshape(1, -1, 1, 1) * n + b.reshape(1, -1, 1, 1)

    def log_mag(z):
        mag = jnp.abs(z)
        return jnp.log1p(mag) * jnp.exp(1j * jnp.angle(z))

    y1 = jnp.sum(x[:, None, :, :, :] * p["w1"][None], axis=2)
    h = log_mag(inorm(y1, p["g1"], p["b1"]))
    y2 = h * p["w2"][None]
    h2 = inorm(y2, p["g2"], p["b2"])
    sc = jnp.sum(x[:, None, :, :, :] * p["ws"][None, :, :, None, None], axis=2)
    sc = inorm(sc, p["gs"], p["bs"])
    return log_mag(h2 + sc)


# ------------------------------ parameter init -------------------------------
def init_params(key):
    def uniform_complex(key, shape, bound):
        kr, ki = jax.random.split(key)
        re = jax.random.uniform(kr, shape, jnp.float32, -bound, bound)
        im = jax.random.uniform(ki, shape, jnp.float32, -bound, bound)
        return (re + 1j * im).astype(jnp.complex64)

    k1, k2, k3 = jax.random.split(key, 3)
    params = {
        # conv1: in != out -> (C_OUT, C_IN, K, K), bound = 1/sqrt(C_IN)
        "w1": uniform_complex(k1, (C_OUT, C_IN, K, K), 1.0 / (C_IN ** 0.5)),
        # conv2: in == out -> (C_OUT, K, K), bound = 1/sqrt(C_OUT)
        "w2": uniform_complex(k2, (C_OUT, K, K), 1.0 / (C_OUT ** 0.5)),
        # shortcut 1x1 conv: (C_OUT, C_IN, 1, 1) stored as (C_OUT, C_IN)
        "ws": uniform_complex(k3, (C_OUT, C_IN), 1.0 / (C_IN ** 0.5)),
        # instance-norm affine params (torch init: gamma=1, beta=0, complex)
        "g1": jnp.ones((C_OUT,), jnp.complex64),
        "b1": jnp.zeros((C_OUT,), jnp.complex64),
        "g2": jnp.ones((C_OUT,), jnp.complex64),
        "b2": jnp.zeros((C_OUT,), jnp.complex64),
        "gs": jnp.ones((C_OUT,), jnp.complex64),
        "bs": jnp.zeros((C_OUT,), jnp.complex64),
    }
    return params


if __name__ == "__main__":
    key = jax.random.PRNGKey(0)
    kx, kp = jax.random.split(key)
    params = init_params(kp)
    packed = pack_params(params)   # weight packing hoisted out of the call path

    kr, ki = jax.random.split(kx)
    x = (jax.random.normal(kr, (B, C_IN, H, W), jnp.float32)
         + 1j * jax.random.normal(ki, (B, C_IN, H, W), jnp.float32)).astype(jnp.complex64)

    out = residual_block_pallas(x, packed)
    out = jax.block_until_ready(out)

    ref = jax.block_until_ready(residual_block_ref(x, params))
    assert out.shape == (B, C_OUT, H, W)
    assert jnp.allclose(out, ref, atol=1e-4, rtol=1e-4), "mismatch vs reference"

    print("KERNEL_OK")
</pallas_src>

<mosaic_0001>
module attributes {stable_mosaic.version = 11 : i64} {
  func.func @residual_block_kernel(%arg0: memref<2x8x256xf32, #tpu.memory_space<vmem>>, %arg1: memref<8x8x256xf32, #tpu.memory_space<vmem>>, %arg2: memref<8x8x256xf32, #tpu.memory_space<vmem>>, %arg3: memref<4x8x1xf32, #tpu.memory_space<vmem>>, %arg4: memref<2x8x256xf32, #tpu.memory_space<vmem>>, %arg5: memref<4x8x1xf32, #tpu.memory_space<vmem>>, %arg6: memref<8x8x1xf32, #tpu.memory_space<vmem>>, %arg7: memref<8x8x1xf32, #tpu.memory_space<vmem>>, %arg8: memref<4x8x1xf32, #tpu.memory_space<vmem>>, %arg9: memref<2x2x8x256xf32, #tpu.memory_space<vmem>>) attributes {dimension_semantics = [], scalar_prefetch = 0 : i64, scratch_operands = 0 : i64, tpu.core_type = #tpu.core_type<tc>} {
    %c0 = arith.constant 0 : index
    %c0_0 = arith.constant 0 : index
    %c0_1 = arith.constant 0 : index
    %0 = vector.load %arg4[%c0, %c0_0, %c0_1] : memref<2x8x256xf32, #tpu.memory_space<vmem>>, vector<1x8x256xf32>
    %1 = vector.shape_cast %0 : vector<1x8x256xf32> to vector<8x256xf32>
    %c1 = arith.constant 1 : index
    %c0_2 = arith.constant 0 : index
    %c0_3 = arith.constant 0 : index
    %2 = vector.load %arg4[%c1, %c0_2, %c0_3] : memref<2x8x256xf32, #tpu.memory_space<vmem>>, vector<1x8x256xf32>
    %3 = vector.shape_cast %2 : vector<1x8x256xf32> to vector<8x256xf32>
    %cst = arith.constant 0.000000e+00 : f32
    %4 = vector.broadcast %cst : f32 to vector<8x256xf32>
    %cst_4 = arith.constant 0.000000e+00 : f32
    %5 = vector.broadcast %cst_4 : f32 to vector<8x256xf32>
    %cst_5 = arith.constant 0.000000e+00 : f32
    %6 = vector.broadcast %cst_5 : f32 to vector<8x256xf32>
    %cst_6 = arith.constant 0.000000e+00 : f32
    %7 = vector.broadcast %cst_6 : f32 to vector<8x256xf32>
    %c0_7 = arith.constant 0 : index
    %c0_8 = arith.constant 0 : index
    %c0_9 = arith.constant 0 : index
    %8 = vector.load %arg0[%c0_7, %c0_8, %c0_9] : memref<2x8x256xf32, #tpu.memory_space<vmem>>, vector<1x1x256xf32>
    %9 = vector.shape_cast %8 : vector<1x1x256xf32> to vector<256xf32>
    %10 = vector.shape_cast %9 : vector<256xf32> to vector<1x256xf32>
    %11 = vector.broadcast %10 : vector<1x256xf32> to vector<8x256xf32>
    %c0_10 = arith.constant 0 : index
    %c0_11 = arith.constant 0 : index
    %c0_12 = arith.constant 0 : index
    %12 = vector.load %arg1[%c0_10, %c0_11, %c0_12] : memref<8x8x256xf32, #tpu.memory_space<vmem>>, vector<1x8x256xf32>
    %13 = vector.shape_cast %12 : vector<1x8x256xf32> to vector<8x256xf32>
    %14 = arith.mulf %11, %13 : vector<8x256xf32>
    %15 = arith.addf %4, %14 : vector<8x256xf32>
    %c0_13 = arith.constant 0 : index
    %c0_14 = arith.constant 0 : index
    %c0_15 = arith.constant 0 : index
    %16 = vector.load %arg2[%c0_13, %c0_14, %c0_15] : memref<8x8x256xf32, #tpu.memory_space<vmem>>, vector<1x8x256xf32>
    %17 = vector.shape_cast %16 : vector<1x8x256xf32> to vector<8x256xf32>
    %18 = arith.mulf %11, %17 : vector<8x256xf32>
    %19 = arith.addf %5, %18 : vector<8x256xf32>
    %c0_16 = arith.constant 0 : index
    %c0_17 = arith.constant 0 : index
    %c0_18 = arith.constant 0 : index
    %20 = vector.load %arg6[%c0_16, %c0_17, %c0_18] : memref<8x8x1xf32, #tpu.memory_space<vmem>>, vector<1x8x1xf32>
    %21 = vector.shape_cast %20 : vector<1x8x1xf32> to vector<8x1xf32>
    %22 = vector.broadcast %21 : vector<8x1xf32> to vector<8x256xf32>
    %23 = arith.mulf %22, %11 : vector<8x256xf32>
    %24 = arith.addf %6, %23 : vector<8x256xf32>
    %c0_19 = arith.constant 0 : index
    %c0_20 = arith.constant 0 : index
    %c0_21 = arith.constant 0 : index
    %25 = vector.load %arg7[%c0_19, %c0_20, %c0_21] : memref<8x8x1xf32, #tpu.memory_space<vmem>>, vector<1x8x1xf32>
    %26 = vector.shape_cast %25 : vector<1x8x1xf32> to vector<8x1xf32>
    %27 = vector.broadcast %26 : vector<8x1xf32> to vector<8x256xf32>
    %28 = arith.mulf %27, %11 : vector<8x256xf32>
    %29 = arith.addf %7, %28 : vector<8x256xf32>
    %c0_22 = arith.constant 0 : index
    %c1_23 = arith.constant 1 : index
    %c0_24 = arith.constant 0 : index
    %30 = vector.load %arg0[%c0_22, %c1_23, %c0_24] : memref<2x8x256xf32, #tpu.memory_space<vmem>>, vector<1x1x256xf32>
    %31 = vector.shape_cast %30 : vector<1x1x256xf32> to vector<256xf32>
    %32 = vector.shape_cast %31 : vector<256xf32> to vector<1x256xf32>
    %33 = vector.broadcast %32 : vector<1x256xf32> to vector<8x256xf32>
    %c1_25 = arith.constant 1 : index
    %c0_26 = arith.constant 0 : index
    %c0_27 = arith.constant 0 : index
    %34 = vector.load %arg1[%c1_25, %c0_26, %c0_27] : memref<8x8x256xf32, #tpu.memory_space<vmem>>, vector<1x8x256xf32>
    %35 = vector.shape_cast %34 : vector<1x8x256xf32> to vector<8x256xf32>
    %36 = arith.mulf %33, %35 : vector<8x256xf32>
    %37 = arith.addf %15, %36 : vector<8x256xf32>
    %c1_28 = arith.constant 1 : index
    %c0_29 = arith.constant 0 : index
    %c0_30 = arith.constant 0 : index
    %38 = vector.load %arg2[%c1_28, %c0_29, %c0_30] : memref<8x8x256xf32, #tpu.memory_space<vmem>>, vector<1x8x256xf32>
    %39 = vector.shape_cast %38 : vector<1x8x256xf32> to vector<8x256xf32>
    %40 = arith.mulf %33, %39 : vector<8x256xf32>
    %41 = arith.addf %19, %40 : vector<8x256xf32>
    %c1_31 = arith.constant 1 : index
    %c0_32 = arith.constant 0 : index
    %c0_33 = arith.constant 0 : index
    %42 = vector.load %arg6[%c1_31, %c0_32, %c0_33] : memref<8x8x1xf32, #tpu.memory_space<vmem>>, vector<1x8x1xf32>
    %43 = vector.shape_cast %42 : vector<1x8x1xf32> to vector<8x1xf32>
    %44 = vector.broadcast %43 : vector<8x1xf32> to vector<8x256xf32>
    %45 = arith.mulf %44, %33 : vector<8x256xf32>
    %46 = arith.addf %24, %45 : vector<8x256xf32>
    %c1_34 = arith.constant 1 : index
    %c0_35 = arith.constant 0 : index
    %c0_36 = arith.constant 0 : index
    %47 = vector.load %arg7[%c1_34, %c0_35, %c0_36] : memref<8x8x1xf32, #tpu.memory_space<vmem>>, vector<1x8x1xf32>
    %48 = vector.shape_cast %47 : vector<1x8x1xf32> to vector<8x1xf32>
    %49 = vector.broadcast %48 : vector<8x1xf32> to vector<8x256xf32>
    %50 = arith.mulf %49, %33 : vector<8x256xf32>
    %51 = arith.addf %29, %50 : vector<8x256xf32>
    %c0_37 = arith.constant 0 : index
    %c2 = arith.constant 2 : index
    %c0_38 = arith.constant 0 : index
    %52 = vector.load %arg0[%c0_37, %c2, %c0_38] : memref<2x8x256xf32, #tpu.memory_space<vmem>>, vector<1x1x256xf32>
    %53 = vector.shape_cast %52 : vector<1x1x256xf32> to vector<256xf32>
    %54 = vector.shape_cast %53 : vector<256xf32> to vector<1x256xf32>
    %55 = vector.broadcast %54 : vector<1x256xf32> to vector<8x256xf32>
    %c2_39 = arith.constant 2 : index
    %c0_40 = arith.constant 0 : index
    %c0_41 = arith.constant 0 : index
    %56 = vector.load %arg1[%c2_39, %c0_40, %c0_41] : memref<8x8x256xf32, #tpu.memory_space<vmem>>, vector<1x8x256xf32>
    %57 = vector.shape_cast %56 : vector<1x8x256xf32> to vector<8x256xf32>
    %58 = arith.mulf %55, %57 : vector<8x256xf32>
    %59 = arith.addf %37, %58 : vector<8x256xf32>
    %c2_42 = arith.constant 2 : index
    %c0_43 = arith.constant 0 : index
    %c0_44 = arith.constant 0 : index
    %60 = vector.load %arg2[%c2_42, %c0_43, %c0_44] : memref<8x8x256xf32, #tpu.memory_space<vmem>>, vector<1x8x256xf32>
    %61 = vector.shape_cast %60 : vector<1x8x256xf32> to vector<8x256xf32>
    %62 = arith.mulf %55, %61 : vector<8x256xf32>
    %63 = arith.addf %41, %62 : vector<8x256xf32>
    %c2_45 = arith.constant 2 : index
    %c0_46 = arith.constant 0 : index
    %c0_47 = arith.constant 0 : index
    %64 = vector.load %arg6[%c2_45, %c0_46, %c0_47] : memref<8x8x1xf32, #tpu.memory_space<vmem>>, vector<1x8x1xf32>
    %65 = vector.shape_cast %64 : vector<1x8x1xf32> to vector<8x1xf32>
    %66 = vector.broadcast %65 : vector<8x1xf32> to vector<8x256xf32>
    %67 = arith.mulf %66, %55 : vector<8x256xf32>
    %68 = arith.addf %46, %67 : vector<8x256xf32>
    %c2_48 = arith.constant 2 : index
    %c0_49 = arith.constant 0 : index
    %c0_50 = arith.constant 0 : index
    %69 = vector.load %arg7[%c2_48, %c0_49, %c0_50] : memref<8x8x1xf32, #tpu.memory_space<vmem>>, vector<1x8x1xf32>
    %70 = vector.shape_cast %69 : vector<1x8x1xf32> to vector<8x1xf32>
    %71 = vector.broadcast %70 : vector<8x1xf32> to vector<8x256xf32>
    %72 = arith.mulf %71, %55 : vector<8x256xf32>
    %73 = arith.addf %51, %72 : vector<8x256xf32>
    %c0_51 = arith.constant 0 : index
    %c3 = arith.constant 3 : index
    %c0_52 = arith.constant 0 : index
    %74 = vector.load %arg0[%c0_51, %c3, %c0_52] : memref<2x8x256xf32, #tpu.memory_space<vmem>>, vector<1x1x256xf32>
    %75 = vector.shape_cast %74 : vector<1x1x256xf32> to vector<256xf32>
    %76 = vector.shape_cast %75 : vector<256xf32> to vector<1x256xf32>
    %77 = vector.broadcast %76 : vector<1x256xf32> to vector<8x256xf32>
    %c3_53 = arith.constant 3 : index
    %c0_54 = arith.constant 0 : index
    %c0_55 = arith.constant 0 : index
    %78 = vector.load %arg1[%c3_53, %c0_54, %c0_55] : memref<8x8x256xf32, #tpu.memory_space<vmem>>, vector<1x8x256xf32>
    %79 = vector.shape_cast %78 : vector<1x8x256xf32> to vector<8x256xf32>
    %80 = arith.mulf %77, %79 : vector<8x256xf32>
    %81 = arith.addf %59, %80 : vector<8x256xf32>
    %c3_56 = arith.constant 3 : index
    %c0_57 = arith.constant 0 : index
    %c0_58 = arith.constant 0 : index
    %82 = vector.load %arg2[%c3_56, %c0_57, %c0_58] : memref<8x8x256xf32, #tpu.memory_space<vmem>>, vector<1x8x256xf32>
    %83 = vector.shape_cast %82 : vector<1x8x256xf32> to vector<8x256xf32>
    %84 = arith.mulf %77, %83 : vector<8x256xf32>
    %85 = arith.addf %63, %84 : vector<8x256xf32>
    %c3_59 = arith.constant 3 : index
    %c0_60 = arith.constant 0 : index
    %c0_61 = arith.constant 0 : index
    %86 = vector.load %arg6[%c3_59, %c0_60, %c0_61] : memref<8x8x1xf32, #tpu.memory_space<vmem>>, vector<1x8x1xf32>
    %87 = vector.shape_cast %86 : vector<1x8x1xf32> to vector<8x1xf32>
    %88 = vector.broadcast %87 : vector<8x1xf32> to vector<8x256xf32>
    %89 = arith.mulf %88, %77 : vector<8x256xf32>
    %90 = arith.addf %68, %89 : vector<8x256xf32>
    %c3_62 = arith.constant 3 : index
    %c0_63 = arith.constant 0 : index
    %c0_64 = arith.constant 0 : index
    %91 = vector.load %arg7[%c3_62, %c0_63, %c0_64] : memref<8x8x1xf32, #tpu.memory_space<vmem>>, vector<1x8x1xf32>
    %92 = vector.shape_cast %91 : vector<1x8x1xf32> to vector<8x1xf32>
    %93 = vector.broadcast %92 : vector<8x1xf32> to vector<8x256xf32>
    %94 = arith.mulf %93, %77 : vector<8x256xf32>
    %95 = arith.addf %73, %94 : vector<8x256xf32>
    %c0_65 = arith.constant 0 : index
    %c4 = arith.constant 4 : index
    %c0_66 = arith.constant 0 : index
    %96 = vector.load %arg0[%c0_65, %c4, %c0_66] : memref<2x8x256xf32, #tpu.memory_space<vmem>>, vector<1x1x256xf32>
    %97 = vector.shape_cast %96 : vector<1x1x256xf32> to vector<256xf32>
    %98 = vector.shape_cast %97 : vector<256xf32> to vector<1x256xf32>
    %99 = vector.broadcast %98 : vector<1x256xf32> to vector<8x256xf32>
    %c4_67 = arith.constant 4 : index
    %c0_68 = arith.constant 0 : index
    %c0_69 = arith.constant 0 : index
    %100 = vector.load %arg1[%c4_67, %c0_68, %c0_69] : memref<8x8x256xf32, #tpu.memory_space<vmem>>, vector<1x8x256xf32>
    %101 = vector.shape_cast %100 : vector<1x8x256xf32> to vector<8x256xf32>
    %102 = arith.mulf %99, %101 : vector<8x256xf32>
    %103 = arith.addf %81, %102 : vector<8x256xf32>
    %c4_70 = arith.constant 4 : index
    %c0_71 = arith.constant 0 : index
    %c0_72 = arith.constant 0 : index
    %104 = vector.load %arg2[%c4_70, %c0_71, %c0_72] : memref<8x8x256xf32, #tpu.memory_space<vmem>>, vector<1x8x256xf32>
    %105 = vector.shape_cast %104 : vector<1x8x256xf32> to vector<8x256xf32>
    %106 = arith.mulf %99, %105 : vector<8x256xf32>
    %107 = arith.addf %85, %106 : vector<8x256xf32>
    %c4_73 = arith.constant 4 : index
    %c0_74 = arith.constant 0 : index
    %c0_75 = arith.constant 0 : index
    %108 = vector.load %arg6[%c4_73, %c0_74, %c0_75] : memref<8x8x1xf32, #tpu.memory_space<vmem>>, vector<1x8x1xf32>
    %109 = vector.shape_cast %108 : vector<1x8x1xf32> to vector<8x1xf32>
    %110 = vector.broadcast %109 : vector<8x1xf32> to vector<8x256xf32>
    %111 = arith.mulf %110, %99 : vector<8x256xf32>
    %112 = arith.addf %90, %111 : vector<8x256xf32>
    %c4_76 = arith.constant 4 : index
    %c0_77 = arith.constant 0 : index
    %c0_78 = arith.constant 0 : index
    %113 = vector.load %arg7[%c4_76, %c0_77, %c0_78] : memref<8x8x1xf32, #tpu.memory_space<vmem>>, vector<1x8x1xf32>
    %114 = vector.shape_cast %113 : vector<1x8x1xf32> to vector<8x1xf32>
    %115 = vector.broadcast %114 : vector<8x1xf32> to vector<8x256xf32>
    %116 = arith.mulf %115, %99 : vector<8x256xf32>
    %117 = arith.addf %95, %116 : vector<8x256xf32>
    %c0_79 = arith.constant 0 : index
    %c5 = arith.constant 5 : index
    %c0_80 = arith.constant 0 : index
    %118 = vector.load %arg0[%c0_79, %c5, %c0_80] : memref<2x8x256xf32, #tpu.memory_space<vmem>>, vector<1x1x256xf32>
    %119 = vector.shape_cast %118 : vector<1x1x256xf32> to vector<256xf32>
    %120 = vector.shape_cast %119 : vector<256xf32> to vector<1x256xf32>
    %121 = vector.broadcast %120 : vector<1x256xf32> to vector<8x256xf32>
    %c5_81 = arith.constant 5 : index
    %c0_82 = arith.constant 0 : index
    %c0_83 = arith.constant 0 : index
    %122 = vector.load %arg1[%c5_81, %c0_82, %c0_83] : memref<8x8x256xf32, #tpu.memory_space<vmem>>, vector<1x8x256xf32>
    %123 = vector.shape_cast %122 : vector<1x8x256xf32> to vector<8x256xf32>
    %124 = arith.mulf %121, %123 : vector<8x256xf32>
    %125 = arith.addf %103, %124 : vector<8x256xf32>
    %c5_84 = arith.constant 5 : index
    %c0_85 = arith.constant 0 : index
    %c0_86 = arith.constant 0 : index
    %126 = vector.load %arg2[%c5_84, %c0_85, %c0_86] : memref<8x8x256xf32, #tpu.memory_space<vmem>>, vector<1x8x256xf32>
    %127 = vector.shape_cast %126 : vector<1x8x256xf32> to vector<8x256xf32>
    %128 = arith.mulf %121, %127 : vector<8x256xf32>
    %129 = arith.addf %107, %128 : vector<8x256xf32>
    %c5_87 = arith.constant 5 : index
    %c0_88 = arith.constant 0 : index
    %c0_89 = arith.constant 0 : index
    %130 = vector.load %arg6[%c5_87, %c0_88, %c0_89] : memref<8x8x1xf32, #tpu.memory_space<vmem>>, vector<1x8x1xf32>
    %131 = vector.shape_cast %130 : vector<1x8x1xf32> to vector<8x1xf32>
    %132 = vector.broadcast %131 : vector<8x1xf32> to vector<8x256xf32>
    %133 = arith.mulf %132, %121 : vector<8x256xf32>
    %134 = arith.addf %112, %133 : vector<8x256xf32>
    %c5_90 = arith.constant 5 : index
    %c0_91 = arith.constant 0 : index
    %c0_92 = arith.constant 0 : index
    %135 = vector.load %arg7[%c5_90, %c0_91, %c0_92] : memref<8x8x1xf32, #tpu.memory_space<vmem>>, vector<1x8x1xf32>
    %136 = vector.shape_cast %135 : vector<1x8x1xf32> to vector<8x1xf32>
    %137 = vector.broadcast %136 : vector<8x1xf32> to vector<8x256xf32>
    %138 = arith.mulf %137, %121 : vector<8x256xf32>
    %139 = arith.addf %117, %138 : vector<8x256xf32>
    %c0_93 = arith.constant 0 : index
    %c6 = arith.constant 6 : index
    %c0_94 = arith.constant 0 : index
    %140 = vector.load %arg0[%c0_93, %c6, %c0_94] : memref<2x8x256xf32, #tpu.memory_space<vmem>>, vector<1x1x256xf32>
    %141 = vector.shape_cast %140 : vector<1x1x256xf32> to vector<256xf32>
    %142 = vector.shape_cast %141 : vector<256xf32> to vector<1x256xf32>
    %143 = vector.broadcast %142 : vector<1x256xf32> to vector<8x256xf32>
    %c6_95 = arith.constant 6 : index
    %c0_96 = arith.constant 0 : index
    %c0_97 = arith.constant 0 : index
    %144 = vector.load %arg1[%c6_95, %c0_96, %c0_97] : memref<8x8x256xf32, #tpu.memory_space<vmem>>, vector<1x8x256xf32>
    %145 = vector.shape_cast %144 : vector<1x8x256xf32> to vector<8x256xf32>
    %146 = arith.mulf %143, %145 : vector<8x256xf32>
    %147 = arith.addf %125, %146 : vector<8x256xf32>
    %c6_98 = arith.constant 6 : index
    %c0_99 = arith.constant 0 : index
    %c0_100 = arith.constant 0 : index
    %148 = vector.load %arg2[%c6_98, %c0_99, %c0_100] : memref<8x8x256xf32, #tpu.memory_space<vmem>>, vector<1x8x256xf32>
    %149 = vector.shape_cast %148 : vector<1x8x256xf32> to vector<8x256xf32>
    %150 = arith.mulf %143, %149 : vector<8x256xf32>
    %151 = arith.addf %129, %150 : vector<8x256xf32>
    %c6_101 = arith.constant 6 : index
    %c0_102 = arith.constant 0 : index
    %c0_103 = arith.constant 0 : index
    %152 = vector.load %arg6[%c6_101, %c0_102, %c0_103] : memref<8x8x1xf32, #tpu.memory_space<vmem>>, vector<1x8x1xf32>
    %153 = vector.shape_cast %152 : vector<1x8x1xf32> to vector<8x1xf32>
    %154 = vector.broadcast %153 : vector<8x1xf32> to vector<8x256xf32>
    %155 = arith.mulf %154, %143 : vector<8x256xf32>
    %156 = arith.addf %134, %155 : vector<8x256xf32>
    %c6_104 = arith.constant 6 : index
    %c0_105 = arith.constant 0 : index
    %c0_106 = arith.constant 0 : index
    %157 = vector.load %arg7[%c6_104, %c0_105, %c0_106] : memref<8x8x1xf32, #tpu.memory_space<vmem>>, vector<1x8x1xf32>
    %158 = vector.shape_cast %157 : vector<1x8x1xf32> to vector<8x1xf32>
    %159 = vector.broadcast %158 : vector<8x1xf32> to vector<8x256xf32>
    %160 = arith.mulf %159, %143 : vector<8x256xf32>
    %161 = arith.addf %139, %160 : vector<8x256xf32>
    %c0_107 = arith.constant 0 : index
    %c7 = arith.constant 7 : index
    %c0_108 = arith.constant 0 : index
    %162 = vector.load %arg0[%c0_107, %c7, %c0_108] : memref<2x8x256xf32, #tpu.memory_space<vmem>>, vector<1x1x256xf32>
    %163 = vector.shape_cast %162 : vector<1x1x256xf32> to vector<256xf32>
    %164 = vector.shape_cast %163 : vector<256xf32> to vector<1x256xf32>
    %165 = vector.broadcast %164 : vector<1x256xf32> to vector<8x256xf32>
    %c7_109 = arith.constant 7 : index
    %c0_110 = arith.constant 0 : index
    %c0_111 = arith.constant 0 : index
    %166 = vector.load %arg1[%c7_109, %c0_110, %c0_111] : memref<8x8x256xf32, #tpu.memory_space<vmem>>, vector<1x8x256xf32>
    %167 = vector.shape_cast %166 : vector<1x8x256xf32> to vector<8x256xf32>
    %168 = arith.mulf %165, %167 : vector<8x256xf32>
    %169 = arith.addf %147, %168 : vector<8x256xf32>
    %c7_112 = arith.constant 7 : index
    %c0_113 = arith.constant 0 : index
    %c0_114 = arith.constant 0 : index
    %170 = vector.load %arg2[%c7_112, %c0_113, %c0_114] : memref<8x8x256xf32, #tpu.memory_space<vmem>>, vector<1x8x256xf32>
    %171 = vector.shape_cast %170 : vector<1x8x256xf32> to vector<8x256xf32>
    %172 = arith.mulf %165, %171 : vector<8x256xf32>
    %173 = arith.addf %151, %172 : vector<8x256xf32>
    %c7_115 = arith.constant 7 : index
    %c0_116 = arith.constant 0 : index
    %c0_117 = arith.constant 0 : index
    %174 = vector.load %arg6[%c7_115, %c0_116, %c0_117] : memref<8x8x1xf32, #tpu.memory_space<vmem>>, vector<1x8x1xf32>
    %175 = vector.shape_cast %174 : vector<1x8x1xf32> to vector<8x1xf32>
    %176 = vector.broadcast %175 : vector<8x1xf32> to vector<8x256xf32>
    %177 = arith.mulf %176, %165 : vector<8x256xf32>
    %178 = arith.addf %156, %177 : vector<8x256xf32>
    %c7_118 = arith.constant 7 : index
    %c0_119 = arith.constant 0 : index
    %c0_120 = arith.constant 0 : index
    %179 = vector.load %arg7[%c7_118, %c0_119, %c0_120] : memref<8x8x1xf32, #tpu.memory_space<vmem>>, vector<1x8x1xf32>
    %180 = vector.shape_cast %179 : vector<1x8x1xf32> to vector<8x1xf32>
    %181 = vector.broadcast %180 : vector<8x1xf32> to vector<8x256xf32>
    %182 = arith.mulf %181, %165 : vector<8x256xf32>
    %183 = arith.addf %161, %182 : vector<8x256xf32>
    %cst_121 = arith.constant dense<0.000000e+00> : vector<8xf32>
    %184 = vector.multi_reduction <add>, %169, %cst_121 [1] : vector<8x256xf32> to vector<8xf32>
    %185 = vector.shape_cast %184 : vector<8xf32> to vector<8x1xf32>
    %cst_122 = arith.constant 2.560000e+02 : f32
    %186 = vector.broadcast %cst_122 : f32 to vector<8x1xf32>
    %187 = arith.divf %185, %186 : vector<8x1xf32>
    %cst_123 = arith.constant dense<0.000000e+00> : vector<8xf32>
    %188 = vector.multi_reduction <add>, %173, %cst_123 [1] : vector<8x256xf32> to vector<8xf32>
    %189 = vector.shape_cast %188 : vector<8xf32> to vector<8x1xf32>
    %cst_124 = arith.constant 2.560000e+02 : f32
    %190 = vector.broadcast %cst_124 : f32 to vector<8x1xf32>
    %191 = arith.divf %189, %190 : vector<8x1xf32>
    %192 = arith.mulf %169, %169 : vector<8x256xf32>
    %193 = arith.mulf %173, %173 : vector<8x256xf32>
    %194 = arith.addf %192, %193 : vector<8x256xf32>
    %cst_125 = arith.constant dense<0.000000e+00> : vector<8xf32>
    %195 = vector.multi_reduction <add>, %194, %cst_125 [1] : vector<8x256xf32> to vector<8xf32>
    %196 = vector.shape_cast %195 : vector<8xf32> to vector<8x1xf32>
    %cst_126 = arith.constant 2.560000e+02 : f32
    %197 = vector.broadcast %cst_126 : f32 to vector<8x1xf32>
    %198 = arith.divf %196, %197 : vector<8x1xf32>
    %199 = arith.mulf %187, %187 : vector<8x1xf32>
    %200 = arith.mulf %191, %191 : vector<8x1xf32>
    %201 = arith.addf %199, %200 : vector<8x1xf32>
    %202 = arith.subf %198, %201 : vector<8x1xf32>
    %cst_127 = arith.constant 9.99999974E-6 : f32
    %203 = vector.broadcast %cst_127 : f32 to vector<8x1xf32>
    %204 = arith.addf %202, %203 : vector<8x1xf32>
    %205 = math.rsqrt %204 : vector<8x1xf32>
    %206 = vector.broadcast %187 : vector<8x1xf32> to vector<8x256xf32>
    %207 = arith.subf %169, %206 : vector<8x256xf32>
    %208 = vector.broadcast %205 : vector<8x1xf32> to vector<8x256xf32>
    %209 = arith.mulf %207, %208 : vector<8x256xf32>
    %210 = vector.broadcast %191 : vector<8x1xf32> to vector<8x256xf32>
    %211 = arith.subf %173, %210 : vector<8x256xf32>
    %212 = vector.broadcast %205 : vector<8x1xf32> to vector<8x256xf32>
    %213 = arith.mulf %211, %212 : vector<8x256xf32>
    %c0_128 = arith.constant 0 : index
    %c0_129 = arith.constant 0 : index
    %c0_130 = arith.constant 0 : index
    %214 = vector.load %arg3[%c0_128, %c0_129, %c0_130] : memref<4x8x1xf32, #tpu.memory_space<vmem>>, vector<1x8x1xf32>
    %215 = vector.shape_cast %214 : vector<1x8x1xf32> to vector<8x1xf32>
    %c1_131 = arith.constant 1 : index
    %c0_132 = arith.constant 0 : index
    %c0_133 = arith.constant 0 : index
    %216 = vector.load %arg3[%c1_131, %c0_132, %c0_133] : memref<4x8x1xf32, #tpu.memory_space<vmem>>, vector<1x8x1xf32>
    %217 = vector.shape_cast %216 : vector<1x8x1xf32> to vector<8x1xf32>
    %c2_134 = arith.constant 2 : index
    %c0_135 = arith.constant 0 : index
    %c0_136 = arith.constant 0 : index
    %218 = vector.load %arg3[%c2_134, %c0_135, %c0_136] : memref<4x8x1xf32, #tpu.memory_space<vmem>>, vector<1x8x1xf32>
    %219 = vector.shape_cast %218 : vector<1x8x1xf32> to vector<8x1xf32>
    %c3_137 = arith.constant 3 : index
    %c0_138 = arith.constant 0 : index
    %c0_139 = arith.constant 0 : index
    %220 = vector.load %arg3[%c3_137, %c0_138, %c0_139] : memref<4x8x1xf32, #tpu.memory_space<vmem>>, vector<1x8x1xf32>
    %221 = vector.shape_cast %220 : vector<1x8x1xf32> to vector<8x1xf32>
    %222 = vector.broadcast %215 : vector<8x1xf32> to vector<8x256xf32>
    %223 = arith.mulf %222, %209 : vector<8x256xf32>
    %224 = vector.broadcast %217 : vector<8x1xf32> to vector<8x256xf32>
    %225 = arith.mulf %224, %213 : vector<8x256xf32>
    %226 = arith.subf %223, %225 : vector<8x256xf32>
    %227 = vector.broadcast %219 : vector<8x1xf32> to vector<8x256xf32>
    %228 = arith.addf %226, %227 : vector<8x256xf32>
    %229 = vector.broadcast %215 : vector<8x1xf32> to vector<8x256xf32>
    %230 = arith.mulf %229, %213 : vector<8x256xf32>
    %231 = vector.broadcast %217 : vector<8x1xf32> to vector<8x256xf32>
    %232 = arith.mulf %231, %209 : vector<8x256xf32>
    %233 = arith.addf %230, %232 : vector<8x256xf32>
    %234 = vector.broadcast %221 : vector<8x1xf32> to vector<8x256xf32>
    %235 = arith.addf %233, %234 : vector<8x256xf32>
    %236 = arith.mulf %228, %228 : vector<8x256xf32>
    %237 = arith.mulf %235, %235 : vector<8x256xf32>
    %238 = arith.addf %236, %237 : vector<8x256xf32>
    %239 = math.sqrt %238 : vector<8x256xf32>
    %cst_140 = arith.constant 0.000000e+00 : f32
    %240 = vector.broadcast %cst_140 : f32 to vector<8x256xf32>
    %241 = arith.cmpf ogt, %239, %240 : vector<8x256xf32>
    %cst_141 = arith.constant 1.000000e+00 : f32
    %242 = vector.broadcast %cst_141 : f32 to vector<8x256xf32>
    %243 = arith.select %241, %239, %242 : vector<8x256xi1>, vector<8x256xf32>
    %244 = math.log1p %239 : vector<8x256xf32>
    %245 = tpu.reciprocal %243 : vector<8x256xf32> -> vector<8x256xf32>
    %246 = arith.mulf %244, %245 : vector<8x256xf32>
    %247 = arith.mulf %228, %246 : vector<8x256xf32>
    %248 = arith.mulf %235, %246 : vector<8x256xf32>
    %249 = arith.mulf %247, %1 : vector<8x256xf32>
    %250 = arith.mulf %248, %3 : vector<8x256xf32>
    %251 = arith.subf %249, %250 : vector<8x256xf32>
    %252 = arith.mulf %247, %3 : vector<8x256xf32>
    %253 = arith.mulf %248, %1 : vector<8x256xf32>
    %254 = arith.addf %252, %253 : vector<8x256xf32>
    %cst_142 = arith.constant dense<0.000000e+00> : vector<8xf32>
    %255 = vector.multi_reduction <add>, %251, %cst_142 [1] : vector<8x256xf32> to vector<8xf32>
    %256 = vector.shape_cast %255 : vector<8xf32> to vector<8x1xf32>
    %cst_143 = arith.constant 2.560000e+02 : f32
    %257 = vector.broadcast %cst_143 : f32 to vector<8x1xf32>
    %258 = arith.divf %256, %257 : vector<8x1xf32>
    %cst_144 = arith.constant dense<0.000000e+00> : vector<8xf32>
    %259 = vector.multi_reduction <add>, %254, %cst_144 [1] : vector<8x256xf32> to vector<8xf32>
    %260 = vector.shape_cast %259 : vector<8xf32> to vector<8x1xf32>
    %cst_145 = arith.constant 2.560000e+02 : f32
    %261 = vector.broadcast %cst_145 : f32 to vector<8x1xf32>
    %262 = arith.divf %260, %261 : vector<8x1xf32>
    %263 = arith.mulf %251, %251 : vector<8x256xf32>
    %264 = arith.mulf %254, %254 : vector<8x256xf32>
    %265 = arith.addf %263, %264 : vector<8x256xf32>
    %cst_146 = arith.constant dense<0.000000e+00> : vector<8xf32>
    %266 = vector.multi_reduction <add>, %265, %cst_146 [1] : vector<8x256xf32> to vector<8xf32>
    %267 = vector.shape_cast %266 : vector<8xf32> to vector<8x1xf32>
    %cst_147 = arith.constant 2.560000e+02 : f32
    %268 = vector.broadcast %cst_147 : f32 to vector<8x1xf32>
    %269 = arith.divf %267, %268 : vector<8x1xf32>
    %270 = arith.mulf %258, %258 : vector<8x1xf32>
    %271 = arith.mulf %262, %262 : vector<8x1xf32>
    %272 = arith.addf %270, %271 : vector<8x1xf32>
    %273 = arith.subf %269, %272 : vector<8x1xf32>
    %cst_148 = arith.constant 9.99999974E-6 : f32
    %274 = vector.broadcast %cst_148 : f32 to vector<8x1xf32>
    %275 = arith.addf %273, %274 : vector<8x1xf32>
    %276 = math.rsqrt %275 : vector<8x1xf32>
    %277 = vector.broadcast %258 : vector<8x1xf32> to vector<8x256xf32>
    %278 = arith.subf %251, %277 : vector<8x256xf32>
    %279 = vector.broadcast %276 : vector<8x1xf32> to vector<8x256xf32>
    %280 = arith.mulf %278, %279 : vector<8x256xf32>
    %281 = vector.broadcast %262 : vector<8x1xf32> to vector<8x256xf32>
    %282 = arith.subf %254, %281 : vector<8x256xf32>
    %283 = vector.broadcast %276 : vector<8x1xf32> to vector<8x256xf32>
    %284 = arith.mulf %282, %283 : vector<8x256xf32>
    %c0_149 = arith.constant 0 : index
    %c0_150 = arith.constant 0 : index
    %c0_151 = arith.constant 0 : index
    %285 = vector.load %arg5[%c0_149, %c0_150, %c0_151] : memref<4x8x1xf32, #tpu.memory_space<vmem>>, vector<1x8x1xf32>
    %286 = vector.shape_cast %285 : vector<1x8x1xf32> to vector<8x1xf32>
    %c1_152 = arith.constant 1 : index
    %c0_153 = arith.constant 0 : index
    %c0_154 = arith.constant 0 : index
    %287 = vector.load %arg5[%c1_152, %c0_153, %c0_154] : memref<4x8x1xf32, #tpu.memory_space<vmem>>, vector<1x8x1xf32>
    %288 = vector.shape_cast %287 : vector<1x8x1xf32> to vector<8x1xf32>
    %c2_155 = arith.constant 2 : index
    %c0_156 = arith.constant 0 : index
    %c0_157 = arith.constant 0 : index
    %289 = vector.load %arg5[%c2_155, %c0_156, %c0_157] : memref<4x8x1xf32, #tpu.memory_space<vmem>>, vector<1x8x1xf32>
    %290 = vector.shape_cast %289 : vector<1x8x1xf32> to vector<8x1xf32>
    %c3_158 = arith.constant 3 : index
    %c0_159 = arith.constant 0 : index
    %c0_160 = arith.constant 0 : index
    %291 = vector.load %arg5[%c3_158, %c0_159, %c0_160] : memref<4x8x1xf32, #tpu.memory_space<vmem>>, vector<1x8x1xf32>
    %292 = vector.shape_cast %291 : vector<1x8x1xf32> to vector<8x1xf32>
    %293 = vector.broadcast %286 : vector<8x1xf32> to vector<8x256xf32>
    %294 = arith.mulf %293, %280 : vector<8x256xf32>
    %295 = vector.broadcast %288 : vector<8x1xf32> to vector<8x256xf32>
    %296 = arith.mulf %295, %284 : vector<8x256xf32>
    %297 = arith.subf %294, %296 : vector<8x256xf32>
    %298 = vector.broadcast %290 : vector<8x1xf32> to vector<8x256xf32>
    %299 = arith.addf %297, %298 : vector<8x256xf32>
    %300 = vector.broadcast %286 : vector<8x1xf32> to vector<8x256xf32>
    %301 = arith.mulf %300, %284 : vector<8x256xf32>
    %302 = vector.broadcast %288 : vector<8x1xf32> to vector<8x256xf32>
    %303 = arith.mulf %302, %280 : vector<8x256xf32>
    %304 = arith.addf %301, %303 : vector<8x256xf32>
    %305 = vector.broadcast %292 : vector<8x1xf32> to vector<8x256xf32>
    %306 = arith.addf %304, %305 : vector<8x256xf32>
    %cst_161 = arith.constant dense<0.000000e+00> : vector<8xf32>
    %307 = vector.multi_reduction <add>, %178, %cst_161 [1] : vector<8x256xf32> to vector<8xf32>
    %308 = vector.shape_cast %307 : vector<8xf32> to vector<8x1xf32>
    %cst_162 = arith.constant 2.560000e+02 : f32
    %309 = vector.broadcast %cst_162 : f32 to vector<8x1xf32>
    %310 = arith.divf %308, %309 : vector<8x1xf32>
    %cst_163 = arith.constant dense<0.000000e+00> : vector<8xf32>
    %311 = vector.multi_reduction <add>, %183, %cst_163 [1] : vector<8x256xf32> to vector<8xf32>
    %312 = vector.shape_cast %311 : vector<8xf32> to vector<8x1xf32>
    %cst_164 = arith.constant 2.560000e+02 : f32
    %313 = vector.broadcast %cst_164 : f32 to vector<8x1xf32>
    %314 = arith.divf %312, %313 : vector<8x1xf32>
    %315 = arith.mulf %178, %178 : vector<8x256xf32>
    %316 = arith.mulf %183, %183 : vector<8x256xf32>
    %317 = arith.addf %315, %316 : vector<8x256xf32>
    %cst_165 = arith.constant dense<0.000000e+00> : vector<8xf32>
    %318 = vector.multi_reduction <add>, %317, %cst_165 [1] : vector<8x256xf32> to vector<8xf32>
    %319 = vector.shape_cast %318 : vector<8xf32> to vector<8x1xf32>
    %cst_166 = arith.constant 2.560000e+02 : f32
    %320 = vector.broadcast %cst_166 : f32 to vector<8x1xf32>
    %321 = arith.divf %319, %320 : vector<8x1xf32>
    %322 = arith.mulf %310, %310 : vector<8x1xf32>
    %323 = arith.mulf %314, %314 : vector<8x1xf32>
    %324 = arith.addf %322, %323 : vector<8x1xf32>
    %325 = arith.subf %321, %324 : vector<8x1xf32>
    %cst_167 = arith.constant 9.99999974E-6 : f32
    %326 = vector.broadcast %cst_167 : f32 to vector<8x1xf32>
    %327 = arith.addf %325, %326 : vector<8x1xf32>
    %328 = math.rsqrt %327 : vector<8x1xf32>
    %329 = vector.broadcast %310 : vector<8x1xf32> to vector<8x256xf32>
    %330 = arith.subf %178, %329 : vector<8x256xf32>
    %331 = vector.broadcast %328 : vector<8x1xf32> to vector<8x256xf32>
    %332 = arith.mulf %330, %331 : vector<8x256xf32>
    %333 = vector.broadcast %314 : vector<8x1xf32> to vector<8x256xf32>
    %334 = arith.subf %183, %333 : vector<8x256xf32>
    %335 = vector.broadcast %328 : vector<8x1xf32> to vector<8x256xf32>
    %336 = arith.mulf %334, %335 : vector<8x256xf32>
    %c0_168 = arith.constant 0 : index
    %c0_169 = arith.constant 0 : index
    %c0_170 = arith.constant 0 : index
    %337 = vector.load %arg8[%c0_168, %c0_169, %c0_170] : memref<4x8x1xf32, #tpu.memory_space<vmem>>, vector<1x8x1xf32>
    %338 = vector.shape_cast %337 : vector<1x8x1xf32> to vector<8x1xf32>
    %c1_171 = arith.constant 1 : index
    %c0_172 = arith.constant 0 : index
    %c0_173 = arith.constant 0 : index
    %339 = vector.load %arg8[%c1_171, %c0_172, %c0_173] : memref<4x8x1xf32, #tpu.memory_space<vmem>>, vector<1x8x1xf32>
    %340 = vector.shape_cast %339 : vector<1x8x1xf32> to vector<8x1xf32>
    %c2_174 = arith.constant 2 : index
    %c0_175 = arith.constant 0 : index
    %c0_176 = arith.constant 0 : index
    %341 = vector.load %arg8[%c2_174, %c0_175, %c0_176] : memref<4x8x1xf32, #tpu.memory_space<vmem>>, vector<1x8x1xf32>
    %342 = vector.shape_cast %341 : vector<1x8x1xf32> to vector<8x1xf32>
    %c3_177 = arith.constant 3 : index
    %c0_178 = arith.constant 0 : index
    %c0_179 = arith.constant 0 : index
    %343 = vector.load %arg8[%c3_177, %c0_178, %c0_179] : memref<4x8x1xf32, #tpu.memory_space<vmem>>, vector<1x8x1xf32>
    %344 = vector.shape_cast %343 : vector<1x8x1xf32> to vector<8x1xf32>
    %345 = vector.broadcast %338 : vector<8x1xf32> to vector<8x256xf32>
    %346 = arith.mulf %345, %332 : vector<8x256xf32>
    %347 = vector.broadcast %340 : vector<8x1xf32> to vector<8x256xf32>
    %348 = arith.mulf %347, %336 : vector<8x256xf32>
    %349 = arith.subf %346, %348 : vector<8x256xf32>
    %350 = vector.broadcast %342 : vector<8x1xf32> to vector<8x256xf32>
    %351 = arith.addf %349, %350 : vector<8x256xf32>
    %352 = vector.broadcast %338 : vector<8x1xf32> to vector<8x256xf32>
    %353 = arith.mulf %352, %336 : vector<8x256xf32>
    %354 = vector.broadcast %340 : vector<8x1xf32> to vector<8x256xf32>
    %355 = arith.mulf %354, %332 : vector<8x256xf32>
    %356 = arith.addf %353, %355 : vector<8x256xf32>
    %357 = vector.broadcast %344 : vector<8x1xf32> to vector<8x256xf32>
    %358 = arith.addf %356, %357 : vector<8x256xf32>
    %359 = arith.addf %299, %351 : vector<8x256xf32>
    %360 = arith.addf %306, %358 : vector<8x256xf32>
    %361 = arith.mulf %359, %359 : vector<8x256xf32>
    %362 = arith.mulf %360, %360 : vector<8x256xf32>
    %363 = arith.addf %361, %362 : vector<8x256xf32>
    %364 = math.sqrt %363 : vector<8x256xf32>
    %cst_180 = arith.constant 0.000000e+00 : f32
    %365 = vector.broadcast %cst_180 : f32 to vector<8x256xf32>
    %366 = arith.cmpf ogt, %364, %365 : vector<8x256xf32>
    %cst_181 = arith.constant 1.000000e+00 : f32
    %367 = vector.broadcast %cst_181 : f32 to vector<8x256xf32>
    %368 = arith.select %366, %364, %367 : vector<8x256xi1>, vector<8x256xf32>
    %369 = math.log1p %364 : vector<8x256xf32>
    %370 = tpu.reciprocal %368 : vector<8x256xf32> -> vector<8x256xf32>
    %371 = arith.mulf %369, %370 : vector<8x256xf32>
    %372 = arith.mulf %359, %371 : vector<8x256xf32>
    %373 = arith.mulf %360, %371 : vector<8x256xf32>
    %c0_182 = arith.constant 0 : index
    %c0_183 = arith.constant 0 : index
    %c0_184 = arith.constant 0 : index
    %c0_185 = arith.constant 0 : index
    %374 = vector.load %arg9[%c0_182, %c0_183, %c0_184, %c0_185] : memref<2x2x8x256xf32, #tpu.memory_space<vmem>>, vector<1x1x8x256xf32>
    %375 = vector.shape_cast %374 : vector<1x1x8x256xf32> to vector<8x256xf32>
    %376 = vector.shape_cast %372 : vector<8x256xf32> to vector<1x1x8x256xf32>
    tpu.vector_store %arg9[%c0_182, %c0_183, %c0_184, %c0_185], %376 {strides = array<i32>} : memref<2x2x8x256xf32, #tpu.memory_space<vmem>>, vector<1x1x8x256xf32>,
    %c1_186 = arith.constant 1 : index
    %c0_187 = arith.constant 0 : index
    %c0_188 = arith.constant 0 : index
    %c0_189 = arith.constant 0 : index
    %377 = vector.load %arg9[%c1_186, %c0_187, %c0_188, %c0_189] : memref<2x2x8x256xf32, #tpu.memory_space<vmem>>, vector<1x1x8x256xf32>
    %378 = vector.shape_cast %377 : vector<1x1x8x256xf32> to vector<8x256xf32>
    %379 = vector.shape_cast %373 : vector<8x256xf32> to vector<1x1x8x256xf32>
    tpu.vector_store %arg9[%c1_186, %c0_187, %c0_188, %c0_189], %379 {strides = array<i32>} : memref<2x2x8x256xf32, #tpu.memory_space<vmem>>, vector<1x1x8x256xf32>,
    %cst_190 = arith.constant 0.000000e+00 : f32
    %380 = vector.broadcast %cst_190 : f32 to vector<8x256xf32>
    %cst_191 = arith.constant 0.000000e+00 : f32
    %381 = vector.broadcast %cst_191 : f32 to vector<8x256xf32>
    %cst_192 = arith.constant 0.000000e+00 : f32
    %382 = vector.broadcast %cst_192 : f32 to vector<8x256xf32>
    %cst_193 = arith.constant 0.000000e+00 : f32
    %383 = vector.broadcast %cst_193 : f32 to vector<8x256xf32>
    %c1_194 = arith.constant 1 : index
    %c0_195 = arith.constant 0 : index
    %c0_196 = arith.constant 0 : index
    %384 = vector.load %arg0[%c1_194, %c0_195, %c0_196] : memref<2x8x256xf32, #tpu.memory_space<vmem>>, vector<1x1x256xf32>
    %385 = vector.shape_cast %384 : vector<1x1x256xf32> to vector<256xf32>
    %386 = vector.shape_cast %385 : vector<256xf32> to vector<1x256xf32>
    %387 = vector.broadcast %386 : vector<1x256xf32> to vector<8x256xf32>
    %c0_197 = arith.constant 0 : index
    %c0_198 = arith.constant 0 : index
    %c0_199 = arith.constant 0 : index
    %388 = vector.load %arg1[%c0_197, %c0_198, %c0_199] : memref<8x8x256xf32, #tpu.memory_space<vmem>>, vector<1x8x256xf32>
    %389 = vector.shape_cast %388 : vector<1x8x256xf32> to vector<8x256xf32>
    %390 = arith.mulf %387, %389 : vector<8x256xf32>
    %391 = arith.addf %380, %390 : vector<8x256xf32>
    %c0_200 = arith.constant 0 : index
    %c0_201 = arith.constant 0 : index
    %c0_202 = arith.constant 0 : index
    %392 = vector.load %arg2[%c0_200, %c0_201, %c0_202] : memref<8x8x256xf32, #tpu.memory_space<vmem>>, vector<1x8x256xf32>
    %393 = vector.shape_cast %392 : vector<1x8x256xf32> to vector<8x256xf32>
    %394 = arith.mulf %387, %393 : vector<8x256xf32>
    %395 = arith.addf %381, %394 : vector<8x256xf32>
    %c0_203 = arith.constant 0 : index
    %c0_204 = arith.constant 0 : index
    %c0_205 = arith.constant 0 : index
    %396 = vector.load %arg6[%c0_203, %c0_204, %c0_205] : memref<8x8x1xf32, #tpu.memory_space<vmem>>, vector<1x8x1xf32>
    %397 = vector.shape_cast %396 : vector<1x8x1xf32> to vector<8x1xf32>
    %398 = vector.broadcast %397 : vector<8x1xf32> to vector<8x256xf32>
    %399 = arith.mulf %398, %387 : vector<8x256xf32>
    %400 = arith.addf %382, %399 : vector<8x256xf32>
    %c0_206 = arith.constant 0 : index
    %c0_207 = arith.constant 0 : index
    %c0_208 = arith.constant 0 : index
    %401 = vector.load %arg7[%c0_206, %c0_207, %c0_208] : memref<8x8x1xf32, #tpu.memory_space<vmem>>, vector<1x8x1xf32>
    %402 = vector.shape_cast %401 : vector<1x8x1xf32> to vector<8x1xf32>
    %403 = vector.broadcast %402 : vector<8x1xf32> to vector<8x256xf32>
    %404 = arith.mulf %403, %387 : vector<8x256xf32>
    %405 = arith.addf %383, %404 : vector<8x256xf32>
    %c1_209 = arith.constant 1 : index
    %c1_210 = arith.constant 1 : index
    %c0_211 = arith.constant 0 : index
    %406 = vector.load %arg0[%c1_209, %c1_210, %c0_211] : memref<2x8x256xf32, #tpu.memory_space<vmem>>, vector<1x1x256xf32>
    %407 = vector.shape_cast %406 : vector<1x1x256xf32> to vector<256xf32>
    %408 = vector.shape_cast %407 : vector<256xf32> to vector<1x256xf32>
    %409 = vector.broadcast %408 : vector<1x256xf32> to vector<8x256xf32>
    %c1_212 = arith.constant 1 : index
    %c0_213 = arith.constant 0 : index
    %c0_214 = arith.constant 0 : index
    %410 = vector.load %arg1[%c1_212, %c0_213, %c0_214] : memref<8x8x256xf32, #tpu.memory_space<vmem>>, vector<1x8x256xf32>
    %411 = vector.shape_cast %410 : vector<1x8x256xf32> to vector<8x256xf32>
    %412 = arith.mulf %409, %411 : vector<8x256xf32>
    %413 = arith.addf %391, %412 : vector<8x256xf32>
    %c1_215 = arith.constant 1 : index
    %c0_216 = arith.constant 0 : index
    %c0_217 = arith.constant 0 : index
    %414 = vector.load %arg2[%c1_215, %c0_216, %c0_217] : memref<8x8x256xf32, #tpu.memory_space<vmem>>, vector<1x8x256xf32>
    %415 = vector.shape_cast %414 : vector<1x8x256xf32> to vector<8x256xf32>
    %416 = arith.mulf %409, %415 : vector<8x256xf32>
    %417 = arith.addf %395, %416 : vector<8x256xf32>
    %c1_218 = arith.constant 1 : index
    %c0_219 = arith.constant 0 : index
    %c0_220 = arith.constant 0 : index
    %418 = vector.load %arg6[%c1_218, %c0_219, %c0_220] : memref<8x8x1xf32, #tpu.memory_space<vmem>>, vector<1x8x1xf32>
    %419 = vector.shape_cast %418 : vector<1x8x1xf32> to vector<8x1xf32>
    %420 = vector.broadcast %419 : vector<8x1xf32> to vector<8x256xf32>
    %421 = arith.mulf %420, %409 : vector<8x256xf32>
    %422 = arith.addf %400, %421 : vector<8x256xf32>
    %c1_221 = arith.constant 1 : index
    %c0_222 = arith.constant 0 : index
    %c0_223 = arith.constant 0 : index
    %423 = vector.load %arg7[%c1_221, %c0_222, %c0_223] : memref<8x8x1xf32, #tpu.memory_space<vmem>>, vector<1x8x1xf32>
    %424 = vector.shape_cast %423 : vector<1x8x1xf32> to vector<8x1xf32>
    %425 = vector.broadcast %424 : vector<8x1xf32> to vector<8x256xf32>
    %426 = arith.mulf %425, %409 : vector<8x256xf32>
    %427 = arith.addf %405, %426 : vector<8x256xf32>
    %c1_224 = arith.constant 1 : index
    %c2_225 = arith.constant 2 : index
    %c0_226 = arith.constant 0 : index
    %428 = vector.load %arg0[%c1_224, %c2_225, %c0_226] : memref<2x8x256xf32, #tpu.memory_space<vmem>>, vector<1x1x256xf32>
    %429 = vector.shape_cast %428 : vector<1x1x256xf32> to vector<256xf32>
    %430 = vector.shape_cast %429 : vector<256xf32> to vector<1x256xf32>
    %431 = vector.broadcast %430 : vector<1x256xf32> to vector<8x256xf32>
    %c2_227 = arith.constant 2 : index
    %c0_228 = arith.constant 0 : index
    %c0_229 = arith.constant 0 : index
    %432 = vector.load %arg1[%c2_227, %c0_228, %c0_229] : memref<8x8x256xf32, #tpu.memory_space<vmem>>, vector<1x8x256xf32>
    %433 = vector.shape_cast %432 : vector<1x8x256xf32> to vector<8x256xf32>
    %434 = arith.mulf %431, %433 : vector<8x256xf32>
    %435 = arith.addf %413, %434 : vector<8x256xf32>
    %c2_230 = arith.constant 2 : index
    %c0_231 = arith.constant 0 : index
    %c0_232 = arith.constant 0 : index
    %436 = vector.load %arg2[%c2_230, %c0_231, %c0_232] : memref<8x8x256xf32, #tpu.memory_space<vmem>>, vector<1x8x256xf32>
    %437 = vector.shape_cast %436 : vector<1x8x256xf32> to vector<8x256xf32>
    %438 = arith.mulf %431, %437 : vector<8x256xf32>
    %439 = arith.addf %417, %438 : vector<8x256xf32>
    %c2_233 = arith.constant 2 : index
    %c0_234 = arith.constant 0 : index
    %c0_235 = arith.constant 0 : index
    %440 = vector.load %arg6[%c2_233, %c0_234, %c0_235] : memref<8x8x1xf32, #tpu.memory_space<vmem>>, vector<1x8x1xf32>
    %441 = vector.shape_cast %440 : vector<1x8x1xf32> to vector<8x1xf32>
    %442 = vector.broadcast %441 : vector<8x1xf32> to vector<8x256xf32>
    %443 = arith.mulf %442, %431 : vector<8x256xf32>
    %444 = arith.addf %422, %443 : vector<8x256xf32>
    %c2_236 = arith.constant 2 : index
    %c0_237 = arith.constant 0 : index
    %c0_238 = arith.constant 0 : index
    %445 = vector.load %arg7[%c2_236, %c0_237, %c0_238] : memref<8x8x1xf32, #tpu.memory_space<vmem>>, vector<1x8x1xf32>
    %446 = vector.shape_cast %445 : vector<1x8x1xf32> to vector<8x1xf32>
    %447 = vector.broadcast %446 : vector<8x1xf32> to vector<8x256xf32>
    %448 = arith.mulf %447, %431 : vector<8x256xf32>
    %449 = arith.addf %427, %448 : vector<8x256xf32>
    %c1_239 = arith.constant 1 : index
    %c3_240 = arith.constant 3 : index
    %c0_241 = arith.constant 0 : index
    %450 = vector.load %arg0[%c1_239, %c3_240, %c0_241] : memref<2x8x256xf32, #tpu.memory_space<vmem>>, vector<1x1x256xf32>
    %451 = vector.shape_cast %450 : vector<1x1x256xf32> to vector<256xf32>
    %452 = vector.shape_cast %451 : vector<256xf32> to vector<1x256xf32>
    %453 = vector.broadcast %452 : vector<1x256xf32> to vector<8x256xf32>
    %c3_242 = arith.constant 3 : index
    %c0_243 = arith.constant 0 : index
    %c0_244 = arith.constant 0 : index
    %454 = vector.load %arg1[%c3_242, %c0_243, %c0_244] : memref<8x8x256xf32, #tpu.memory_space<vmem>>, vector<1x8x256xf32>
    %455 = vector.shape_cast %454 : vector<1x8x256xf32> to vector<8x256xf32>
    %456 = arith.mulf %453, %455 : vector<8x256xf32>
    %457 = arith.addf %435, %456 : vector<8x256xf32>
    %c3_245 = arith.constant 3 : index
    %c0_246 = arith.constant 0 : index
    %c0_247 = arith.constant 0 : index
    %458 = vector.load %arg2[%c3_245, %c0_246, %c0_247] : memref<8x8x256xf32, #tpu.memory_space<vmem>>, vector<1x8x256xf32>
    %459 = vector.shape_cast %458 : vector<1x8x256xf32> to vector<8x256xf32>
    %460 = arith.mulf %453, %459 : vector<8x256xf32>
    %461 = arith.addf %439, %460 : vector<8x256xf32>
    %c3_248 = arith.constant 3 : index
    %c0_249 = arith.constant 0 : index
    %c0_250 = arith.constant 0 : index
    %462 = vector.load %arg6[%c3_248, %c0_249, %c0_250] : memref<8x8x1xf32, #tpu.memory_space<vmem>>, vector<1x8x1xf32>
    %463 = vector.shape_cast %462 : vector<1x8x1xf32> to vector<8x1xf32>
    %464 = vector.broadcast %463 : vector<8x1xf32> to vector<8x256xf32>
    %465 = arith.mulf %464, %453 : vector<8x256xf32>
    %466 = arith.addf %444, %465 : vector<8x256xf32>
    %c3_251 = arith.constant 3 : index
    %c0_252 = arith.constant 0 : index
    %c0_253 = arith.constant 0 : index
    %467 = vector.load %arg7[%c3_251, %c0_252, %c0_253] : memref<8x8x1xf32, #tpu.memory_space<vmem>>, vector<1x8x1xf32>
    %468 = vector.shape_cast %467 : vector<1x8x1xf32> to vector<8x1xf32>
    %469 = vector.broadcast %468 : vector<8x1xf32> to vector<8x256xf32>
    %470 = arith.mulf %469, %453 : vector<8x256xf32>
    %471 = arith.addf %449, %470 : vector<8x256xf32>
    %c1_254 = arith.constant 1 : index
    %c4_255 = arith.constant 4 : index
    %c0_256 = arith.constant 0 : index
    %472 = vector.load %arg0[%c1_254, %c4_255, %c0_256] : memref<2x8x256xf32, #tpu.memory_space<vmem>>, vector<1x1x256xf32>
    %473 = vector.shape_cast %472 : vector<1x1x256xf32> to vector<256xf32>
    %474 = vector.shape_cast %473 : vector<256xf32> to vector<1x256xf32>
    %475 = vector.broadcast %474 : vector<1x256xf32> to vector<8x256xf32>
    %c4_257 = arith.constant 4 : index
    %c0_258 = arith.constant 0 : index
    %c0_259 = arith.constant 0 : index
    %476 = vector.load %arg1[%c4_257, %c0_258, %c0_259] : memref<8x8x256xf32, #tpu.memory_space<vmem>>, vector<1x8x256xf32>
    %477 = vector.shape_cast %476 : vector<1x8x256xf32> to vector<8x256xf32>
    %478 = arith.mulf %475, %477 : vector<8x256xf32>
    %479 = arith.addf %457, %478 : vector<8x256xf32>
    %c4_260 = arith.constant 4 : index
    %c0_261 = arith.constant 0 : index
    %c0_262 = arith.constant 0 : index
    %480 = vector.load %arg2[%c4_260, %c0_261, %c0_262] : memref<8x8x256xf32, #tpu.memory_space<vmem>>, vector<1x8x256xf32>
    %481 = vector.shape_cast %480 : vector<1x8x256xf32> to vector<8x256xf32>
    %482 = arith.mulf %475, %481 : vector<8x256xf32>
    %483 = arith.addf %461, %482 : vector<8x256xf32>
    %c4_263 = arith.constant 4 : index
    %c0_264 = arith.constant 0 : index
    %c0_265 = arith.constant 0 : index
    %484 = vector.load %arg6[%c4_263, %c0_264, %c0_265] : memref<8x8x1xf32, #tpu.memory_space<vmem>>, vector<1x8x1xf32>
    %485 = vector.shape_cast %484 : vector<1x8x1xf32> to vector<8x1xf32>
    %486 = vector.broadcast %485 : vector<8x1xf32> to vector<8x256xf32>
    %487 = arith.mulf %486, %475 : vector<8x256xf32>
    %488 = arith.addf %466, %487 : vector<8x256xf32>
    %c4_266 = arith.constant 4 : index
    %c0_267 = arith.constant 0 : index
    %c0_268 = arith.constant 0 : index
    %489 = vector.load %arg7[%c4_266, %c0_267, %c0_268] : memref<8x8x1xf32, #tpu.memory_space<vmem>>, vector<1x8x1xf32>
    %490 = vector.shape_cast %489 : vector<1x8x1xf32> to vector<8x1xf32>
    %491 = vector.broadcast %490 : vector<8x1xf32> to vector<8x256xf32>
    %492 = arith.mulf %491, %475 : vector<8x256xf32>
    %493 = arith.addf %471, %492 : vector<8x256xf32>
    %c1_269 = arith.constant 1 : index
    %c5_270 = arith.constant 5 : index
    %c0_271 = arith.constant 0 : index
    %494 = vector.load %arg0[%c1_269, %c5_270, %c0_271] : memref<2x8x256xf32, #tpu.memory_space<vmem>>, vector<1x1x256xf32>
    %495 = vector.shape_cast %494 : vector<1x1x256xf32> to vector<256xf32>
    %496 = vector.shape_cast %495 : vector<256xf32> to vector<1x256xf32>
    %497 = vector.broadcast %496 : vector<1x256xf32> to vector<8x256xf32>
    %c5_272 = arith.constant 5 : index
    %c0_273 = arith.constant 0 : index
    %c0_274 = arith.constant 0 : index
    %498 = vector.load %arg1[%c5_272, %c0_273, %c0_274] : memref<8x8x256xf32, #tpu.memory_space<vmem>>, vector<1x8x256xf32>
    %499 = vector.shape_cast %498 : vector<1x8x256xf32> to vector<8x256xf32>
    %500 = arith.mulf %497, %499 : vector<8x256xf32>
    %501 = arith.addf %479, %500 : vector<8x256xf32>
    %c5_275 = arith.constant 5 : index
    %c0_276 = arith.constant 0 : index
    %c0_277 = arith.constant 0 : index
    %502 = vector.load %arg2[%c5_275, %c0_276, %c0_277] : memref<8x8x256xf32, #tpu.memory_space<vmem>>, vector<1x8x256xf32>
    %503 = vector.shape_cast %502 : vector<1x8x256xf32> to vector<8x256xf32>
    %504 = arith.mulf %497, %503 : vector<8x256xf32>
    %505 = arith.addf %483, %504 : vector<8x256xf32>
    %c5_278 = arith.constant 5 : index
    %c0_279 = arith.constant 0 : index
    %c0_280 = arith.constant 0 : index
    %506 = vector.load %arg6[%c5_278, %c0_279, %c0_280] : memref<8x8x1xf32, #tpu.memory_space<vmem>>, vector<1x8x1xf32>
    %507 = vector.shape_cast %506 : vector<1x8x1xf32> to vector<8x1xf32>
    %508 = vector.broadcast %507 : vector<8x1xf32> to vector<8x256xf32>
    %509 = arith.mulf %508, %497 : vector<8x256xf32>
    %510 = arith.addf %488, %509 : vector<8x256xf32>
    %c5_281 = arith.constant 5 : index
    %c0_282 = arith.constant 0 : index
    %c0_283 = arith.constant 0 : index
    %511 = vector.load %arg7[%c5_281, %c0_282, %c0_283] : memref<8x8x1xf32, #tpu.memory_space<vmem>>, vector<1x8x1xf32>
    %512 = vector.shape_cast %511 : vector<1x8x1xf32> to vector<8x1xf32>
    %513 = vector.broadcast %512 : vector<8x1xf32> to vector<8x256xf32>
    %514 = arith.mulf %513, %497 : vector<8x256xf32>
    %515 = arith.addf %493, %514 : vector<8x256xf32>
    %c1_284 = arith.constant 1 : index
    %c6_285 = arith.constant 6 : index
    %c0_286 = arith.constant 0 : index
    %516 = vector.load %arg0[%c1_284, %c6_285, %c0_286] : memref<2x8x256xf32, #tpu.memory_space<vmem>>, vector<1x1x256xf32>
    %517 = vector.shape_cast %516 : vector<1x1x256xf32> to vector<256xf32>
    %518 = vector.shape_cast %517 : vector<256xf32> to vector<1x256xf32>
    %519 = vector.broadcast %518 : vector<1x256xf32> to vector<8x256xf32>
    %c6_287 = arith.constant 6 : index
    %c0_288 = arith.constant 0 : index
    %c0_289 = arith.constant 0 : index
    %520 = vector.load %arg1[%c6_287, %c0_288, %c0_289] : memref<8x8x256xf32, #tpu.memory_space<vmem>>, vector<1x8x256xf32>
    %521 = vector.shape_cast %520 : vector<1x8x256xf32> to vector<8x256xf32>
    %522 = arith.mulf %519, %521 : vector<8x256xf32>
    %523 = arith.addf %501, %522 : vector<8x256xf32>
    %c6_290 = arith.constant 6 : index
    %c0_291 = arith.constant 0 : index
    %c0_292 = arith.constant 0 : index
    %524 = vector.load %arg2[%c6_290, %c0_291, %c0_292] : memref<8x8x256xf32, #tpu.memory_space<vmem>>, vector<1x8x256xf32>
    %525 = vector.shape_cast %524 : vector<1x8x256xf32> to vector<8x256xf32>
    %526 = arith.mulf %519, %525 : vector<8x256xf32>
    %527 = arith.addf %505, %526 : vector<8x256xf32>
    %c6_293 = arith.constant 6 : index
    %c0_294 = arith.constant 0 : index
    %c0_295 = arith.constant 0 : index
    %528 = vector.load %arg6[%c6_293, %c0_294, %c0_295] : memref<8x8x1xf32, #tpu.memory_space<vmem>>, vector<1x8x1xf32>
    %529 = vector.shape_cast %528 : vector<1x8x1xf32> to vector<8x1xf32>
    %530 = vector.broadcast %529 : vector<8x1xf32> to vector<8x256xf32>
    %531 = arith.mulf %530, %519 : vector<8x256xf32>
    %532 = arith.addf %510, %531 : vector<8x256xf32>
    %c6_296 = arith.constant 6 : index
    %c0_297 = arith.constant 0 : index
    %c0_298 = arith.constant 0 : index
    %533 = vector.load %arg7[%c6_296, %c0_297, %c0_298] : memref<8x8x1xf32, #tpu.memory_space<vmem>>, vector<1x8x1xf32>
    %534 = vector.shape_cast %533 : vector<1x8x1xf32> to vector<8x1xf32>
    %535 = vector.broadcast %534 : vector<8x1xf32> to vector<8x256xf32>
    %536 = arith.mulf %535, %519 : vector<8x256xf32>
    %537 = arith.addf %515, %536 : vector<8x256xf32>
    %c1_299 = arith.constant 1 : index
    %c7_300 = arith.constant 7 : index
    %c0_301 = arith.constant 0 : index
    %538 = vector.load %arg0[%c1_299, %c7_300, %c0_301] : memref<2x8x256xf32, #tpu.memory_space<vmem>>, vector<1x1x256xf32>
    %539 = vector.shape_cast %538 : vector<1x1x256xf32> to vector<256xf32>
    %540 = vector.shape_cast %539 : vector<256xf32> to vector<1x256xf32>
    %541 = vector.broadcast %540 : vector<1x256xf32> to vector<8x256xf32>
    %c7_302 = arith.constant 7 : index
    %c0_303 = arith.constant 0 : index
    %c0_304 = arith.constant 0 : index
    %542 = vector.load %arg1[%c7_302, %c0_303, %c0_304] : memref<8x8x256xf32, #tpu.memory_space<vmem>>, vector<1x8x256xf32>
    %543 = vector.shape_cast %542 : vector<1x8x256xf32> to vector<8x256xf32>
    %544 = arith.mulf %541, %543 : vector<8x256xf32>
    %545 = arith.addf %523, %544 : vector<8x256xf32>
    %c7_305 = arith.constant 7 : index
    %c0_306 = arith.constant 0 : index
    %c0_307 = arith.constant 0 : index
    %546 = vector.load %arg2[%c7_305, %c0_306, %c0_307] : memref<8x8x256xf32, #tpu.memory_space<vmem>>, vector<1x8x256xf32>
    %547 = vector.shape_cast %546 : vector<1x8x256xf32> to vector<8x256xf32>
    %548 = arith.mulf %541, %547 : vector<8x256xf32>
    %549 = arith.addf %527, %548 : vector<8x256xf32>
    %c7_308 = arith.constant 7 : index
    %c0_309 = arith.constant 0 : index
    %c0_310 = arith.constant 0 : index
    %550 = vector.load %arg6[%c7_308, %c0_309, %c0_310] : memref<8x8x1xf32, #tpu.memory_space<vmem>>, vector<1x8x1xf32>
    %551 = vector.shape_cast %550 : vector<1x8x1xf32> to vector<8x1xf32>
    %552 = vector.broadcast %551 : vector<8x1xf32> to vector<8x256xf32>
    %553 = arith.mulf %552, %541 : vector<8x256xf32>
    %554 = arith.addf %532, %553 : vector<8x256xf32>
    %c7_311 = arith.constant 7 : index
    %c0_312 = arith.constant 0 : index
    %c0_313 = arith.constant 0 : index
    %555 = vector.load %arg7[%c7_311, %c0_312, %c0_313] : memref<8x8x1xf32, #tpu.memory_space<vmem>>, vector<1x8x1xf32>
    %556 = vector.shape_cast %555 : vector<1x8x1xf32> to vector<8x1xf32>
    %557 = vector.broadcast %556 : vector<8x1xf32> to vector<8x256xf32>
    %558 = arith.mulf %557, %541 : vector<8x256xf32>
    %559 = arith.addf %537, %558 : vector<8x256xf32>
    %cst_314 = arith.constant dense<0.000000e+00> : vector<8xf32>
    %560 = vector.multi_reduction <add>, %545, %cst_314 [1] : vector<8x256xf32> to vector<8xf32>
    %561 = vector.shape_cast %560 : vector<8xf32> to vector<8x1xf32>
    %cst_315 = arith.constant 2.560000e+02 : f32
    %562 = vector.broadcast %cst_315 : f32 to vector<8x1xf32>
    %563 = arith.divf %561, %562 : vector<8x1xf32>
    %cst_316 = arith.constant dense<0.000000e+00> : vector<8xf32>
    %564 = vector.multi_reduction <add>, %549, %cst_316 [1] : vector<8x256xf32> to vector<8xf32>
    %565 = vector.shape_cast %564 : vector<8xf32> to vector<8x1xf32>
    %cst_317 = arith.constant 2.560000e+02 : f32
    %566 = vector.broadcast %cst_317 : f32 to vector<8x1xf32>
    %567 = arith.divf %565, %566 : vector<8x1xf32>
    %568 = arith.mulf %545, %545 : vector<8x256xf32>
    %569 = arith.mulf %549, %549 : vector<8x256xf32>
    %570 = arith.addf %568, %569 : vector<8x256xf32>
    %cst_318 = arith.constant dense<0.000000e+00> : vector<8xf32>
    %571 = vector.multi_reduction <add>, %570, %cst_318 [1] : vector<8x256xf32> to vector<8xf32>
    %572 = vector.shape_cast %571 : vector<8xf32> to vector<8x1xf32>
    %cst_319 = arith.constant 2.560000e+02 : f32
    %573 = vector.broadcast %cst_319 : f32 to vector<8x1xf32>
    %574 = arith.divf %572, %573 : vector<8x1xf32>
    %575 = arith.mulf %563, %563 : vector<8x1xf32>
    %576 = arith.mulf %567, %567 : vector<8x1xf32>
    %577 = arith.addf %575, %576 : vector<8x1xf32>
    %578 = arith.subf %574, %577 : vector<8x1xf32>
    %cst_320 = arith.constant 9.99999974E-6 : f32
    %579 = vector.broadcast %cst_320 : f32 to vector<8x1xf32>
    %580 = arith.addf %578, %579 : vector<8x1xf32>
    %581 = math.rsqrt %580 : vector<8x1xf32>
    %582 = vector.broadcast %563 : vector<8x1xf32> to vector<8x256xf32>
    %583 = arith.subf %545, %582 : vector<8x256xf32>
    %584 = vector.broadcast %581 : vector<8x1xf32> to vector<8x256xf32>
    %585 = arith.mulf %583, %584 : vector<8x256xf32>
    %586 = vector.broadcast %567 : vector<8x1xf32> to vector<8x256xf32>
    %587 = arith.subf %549, %586 : vector<8x256xf32>
    %588 = vector.broadcast %581 : vector<8x1xf32> to vector<8x256xf32>
    %589 = arith.mulf %587, %588 : vector<8x256xf32>
    %c0_321 = arith.constant 0 : index
    %c0_322 = arith.constant 0 : index
    %c0_323 = arith.constant 0 : index
    %590 = vector.load %arg3[%c0_321, %c0_322, %c0_323] : memref<4x8x1xf32, #tpu.memory_space<vmem>>, vector<1x8x1xf32>
    %591 = vector.shape_cast %590 : vector<1x8x1xf32> to vector<8x1xf32>
    %c1_324 = arith.constant 1 : index
    %c0_325 = arith.constant 0 : index
    %c0_326 = arith.constant 0 : index
    %592 = vector.load %arg3[%c1_324, %c0_325, %c0_326] : memref<4x8x1xf32, #tpu.memory_space<vmem>>, vector<1x8x1xf32>
    %593 = vector.shape_cast %592 : vector<1x8x1xf32> to vector<8x1xf32>
    %c2_327 = arith.constant 2 : index
    %c0_328 = arith.constant 0 : index
    %c0_329 = arith.constant 0 : index
    %594 = vector.load %arg3[%c2_327, %c0_328, %c0_329] : memref<4x8x1xf32, #tpu.memory_space<vmem>>, vector<1x8x1xf32>
    %595 = vector.shape_cast %594 : vector<1x8x1xf32> to vector<8x1xf32>
    %c3_330 = arith.constant 3 : index
    %c0_331 = arith.constant 0 : index
    %c0_332 = arith.constant 0 : index
    %596 = vector.load %arg3[%c3_330, %c0_331, %c0_332] : memref<4x8x1xf32, #tpu.memory_space<vmem>>, vector<1x8x1xf32>
    %597 = vector.shape_cast %596 : vector<1x8x1xf32> to vector<8x1xf32>
    %598 = vector.broadcast %591 : vector<8x1xf32> to vector<8x256xf32>
    %599 = arith.mulf %598, %585 : vector<8x256xf32>
    %600 = vector.broadcast %593 : vector<8x1xf32> to vector<8x256xf32>
    %601 = arith.mulf %600, %589 : vector<8x256xf32>
    %602 = arith.subf %599, %601 : vector<8x256xf32>
    %603 = vector.broadcast %595 : vector<8x1xf32> to vector<8x256xf32>
    %604 = arith.addf %602, %603 : vector<8x256xf32>
    %605 = vector.broadcast %591 : vector<8x1xf32> to vector<8x256xf32>
    %606 = arith.mulf %605, %589 : vector<8x256xf32>
    %607 = vector.broadcast %593 : vector<8x1xf32> to vector<8x256xf32>
    %608 = arith.mulf %607, %585 : vector<8x256xf32>
    %609 = arith.addf %606, %608 : vector<8x256xf32>
    %610 = vector.broadcast %597 : vector<8x1xf32> to vector<8x256xf32>
    %611 = arith.addf %609, %610 : vector<8x256xf32>
    %612 = arith.mulf %604, %604 : vector<8x256xf32>
    %613 = arith.mulf %611, %611 : vector<8x256xf32>
    %614 = arith.addf %612, %613 : vector<8x256xf32>
    %615 = math.sqrt %614 : vector<8x256xf32>
    %cst_333 = arith.constant 0.000000e+00 : f32
    %616 = vector.broadcast %cst_333 : f32 to vector<8x256xf32>
    %617 = arith.cmpf ogt, %615, %616 : vector<8x256xf32>
    %cst_334 = arith.constant 1.000000e+00 : f32
    %618 = vector.broadcast %cst_334 : f32 to vector<8x256xf32>
    %619 = arith.select %617, %615, %618 : vector<8x256xi1>, vector<8x256xf32>
    %620 = math.log1p %615 : vector<8x256xf32>
    %621 = tpu.reciprocal %619 : vector<8x256xf32> -> vector<8x256xf32>
    %622 = arith.mulf %620, %621 : vector<8x256xf32>
    %623 = arith.mulf %604, %622 : vector<8x256xf32>
    %624 = arith.mulf %611, %622 : vector<8x256xf32>
    %625 = arith.mulf %623, %1 : vector<8x256xf32>
    %626 = arith.mulf %624, %3 : vector<8x256xf32>
    %627 = arith.subf %625, %626 : vector<8x256xf32>
    %628 = arith.mulf %623, %3 : vector<8x256xf32>
    %629 = arith.mulf %624, %1 : vector<8x256xf32>
    %630 = arith.addf %628, %629 : vector<8x256xf32>
    %cst_335 = arith.constant dense<0.000000e+00> : vector<8xf32>
    %631 = vector.multi_reduction <add>, %627, %cst_335 [1] : vector<8x256xf32> to vector<8xf32>
    %632 = vector.shape_cast %631 : vector<8xf32> to vector<8x1xf32>
    %cst_336 = arith.constant 2.560000e+02 : f32
    %633 = vector.broadcast %cst_336 : f32 to vector<8x1xf32>
    %634 = arith.divf %632, %633 : vector<8x1xf32>
    %cst_337 = arith.constant dense<0.000000e+00> : vector<8xf32>
    %635 = vector.multi_reduction <add>, %630, %cst_337 [1] : vector<8x256xf32> to vector<8xf32>
    %636 = vector.shape_cast %635 : vector<8xf32> to vector<8x1xf32>
    %cst_338 = arith.constant 2.560000e+02 : f32
    %637 = vector.broadcast %cst_338 : f32 to vector<8x1xf32>
    %638 = arith.divf %636, %637 : vector<8x1xf32>
    %639 = arith.mulf %627, %627 : vector<8x256xf32>
    %640 = arith.mulf %630, %630 : vector<8x256xf32>
    %641 = arith.addf %639, %640 : vector<8x256xf32>
    %cst_339 = arith.constant dense<0.000000e+00> : vector<8xf32>
    %642 = vector.multi_reduction <add>, %641, %cst_339 [1] : vector<8x256xf32> to vector<8xf32>
    %643 = vector.shape_cast %642 : vector<8xf32> to vector<8x1xf32>
    %cst_340 = arith.constant 2.560000e+02 : f32
    %644 = vector.broadcast %cst_340 : f32 to vector<8x1xf32>
    %645 = arith.divf %643, %644 : vector<8x1xf32>
    %646 = arith.mulf %634, %634 : vector<8x1xf32>
    %647 = arith.mulf %638, %638 : vector<8x1xf32>
    %648 = arith.addf %646, %647 : vector<8x1xf32>
    %649 = arith.subf %645, %648 : vector<8x1xf32>
    %cst_341 = arith.constant 9.99999974E-6 : f32
    %650 = vector.broadcast %cst_341 : f32 to vector<8x1xf32>
    %651 = arith.addf %649, %650 : vector<8x1xf32>
    %652 = math.rsqrt %651 : vector<8x1xf32>
    %653 = vector.broadcast %634 : vector<8x1xf32> to vector<8x256xf32>
    %654 = arith.subf %627, %653 : vector<8x256xf32>
    %655 = vector.broadcast %652 : vector<8x1xf32> to vector<8x256xf32>
    %656 = arith.mulf %654, %655 : vector<8x256xf32>
    %657 = vector.broadcast %638 : vector<8x1xf32> to vector<8x256xf32>
    %658 = arith.subf %630, %657 : vector<8x256xf32>
    %659 = vector.broadcast %652 : vector<8x1xf32> to vector<8x256xf32>
    %660 = arith.mulf %658, %659 : vector<8x256xf32>
    %c0_342 = arith.constant 0 : index
    %c0_343 = arith.constant 0 : index
    %c0_344 = arith.constant 0 : index
    %661 = vector.load %arg5[%c0_342, %c0_343, %c0_344] : memref<4x8x1xf32, #tpu.memory_space<vmem>>, vector<1x8x1xf32>
    %662 = vector.shape_cast %661 : vector<1x8x1xf32> to vector<8x1xf32>
    %c1_345 = arith.constant 1 : index
    %c0_346 = arith.constant 0 : index
    %c0_347 = arith.constant 0 : index
    %663 = vector.load %arg5[%c1_345, %c0_346, %c0_347] : memref<4x8x1xf32, #tpu.memory_space<vmem>>, vector<1x8x1xf32>
    %664 = vector.shape_cast %663 : vector<1x8x1xf32> to vector<8x1xf32>
    %c2_348 = arith.constant 2 : index
    %c0_349 = arith.constant 0 : index
    %c0_350 = arith.constant 0 : index
    %665 = vector.load %arg5[%c2_348, %c0_349, %c0_350] : memref<4x8x1xf32, #tpu.memory_space<vmem>>, vector<1x8x1xf32>
    %666 = vector.shape_cast %665 : vector<1x8x1xf32> to vector<8x1xf32>
    %c3_351 = arith.constant 3 : index
    %c0_352 = arith.constant 0 : index
    %c0_353 = arith.constant 0 : index
    %667 = vector.load %arg5[%c3_351, %c0_352, %c0_353] : memref<4x8x1xf32, #tpu.memory_space<vmem>>, vector<1x8x1xf32>
    %668 = vector.shape_cast %667 : vector<1x8x1xf32> to vector<8x1xf32>
    %669 = vector.broadcast %662 : vector<8x1xf32> to vector<8x256xf32>
    %670 = arith.mulf %669, %656 : vector<8x256xf32>
    %671 = vector.broadcast %664 : vector<8x1xf32> to vector<8x256xf32>
    %672 = arith.mulf %671, %660 : vector<8x256xf32>
    %673 = arith.subf %670, %672 : vector<8x256xf32>
    %674 = vector.broadcast %666 : vector<8x1xf32> to vector<8x256xf32>
    %675 = arith.addf %673, %674 : vector<8x256xf32>
    %676 = vector.broadcast %662 : vector<8x1xf32> to vector<8x256xf32>
    %677 = arith.mulf %676, %660 : vector<8x256xf32>
    %678 = vector.broadcast %664 : vector<8x1xf32> to vector<8x256xf32>
    %679 = arith.mulf %678, %656 : vector<8x256xf32>
    %680 = arith.addf %677, %679 : vector<8x256xf32>
    %681 = vector.broadcast %668 : vector<8x1xf32> to vector<8x256xf32>
    %682 = arith.addf %680, %681 : vector<8x256xf32>
    %cst_354 = arith.constant dense<0.000000e+00> : vector<8xf32>
    %683 = vector.multi_reduction <add>, %554, %cst_354 [1] : vector<8x256xf32> to vector<8xf32>
    %684 = vector.shape_cast %683 : vector<8xf32> to vector<8x1xf32>
    %cst_355 = arith.constant 2.560000e+02 : f32
    %685 = vector.broadcast %cst_355 : f32 to vector<8x1xf32>
    %686 = arith.divf %684, %685 : vector<8x1xf32>
    %cst_356 = arith.constant dense<0.000000e+00> : vector<8xf32>
    %687 = vector.multi_reduction <add>, %559, %cst_356 [1] : vector<8x256xf32> to vector<8xf32>
    %688 = vector.shape_cast %687 : vector<8xf32> to vector<8x1xf32>
    %cst_357 = arith.constant 2.560000e+02 : f32
    %689 = vector.broadcast %cst_357 : f32 to vector<8x1xf32>
    %690 = arith.divf %688, %689 : vector<8x1xf32>
    %691 = arith.mulf %554, %554 : vector<8x256xf32>
    %692 = arith.mulf %559, %559 : vector<8x256xf32>
    %693 = arith.addf %691, %692 : vector<8x256xf32>
    %cst_358 = arith.constant dense<0.000000e+00> : vector<8xf32>
    %694 = vector.multi_reduction <add>, %693, %cst_358 [1] : vector<8x256xf32> to vector<8xf32>
    %695 = vector.shape_cast %694 : vector<8xf32> to vector<8x1xf32>
    %cst_359 = arith.constant 2.560000e+02 : f32
    %696 = vector.broadcast %cst_359 : f32 to vector<8x1xf32>
    %697 = arith.divf %695, %696 : vector<8x1xf32>
    %698 = arith.mulf %686, %686 : vector<8x1xf32>
    %699 = arith.mulf %690, %690 : vector<8x1xf32>
    %700 = arith.addf %698, %699 : vector<8x1xf32>
    %701 = arith.subf %697, %700 : vector<8x1xf32>
    %cst_360 = arith.constant 9.99999974E-6 : f32
    %702 = vector.broadcast %cst_360 : f32 to vector<8x1xf32>
    %703 = arith.addf %701, %702 : vector<8x1xf32>
    %704 = math.rsqrt %703 : vector<8x1xf32>
    %705 = vector.broadcast %686 : vector<8x1xf32> to vector<8x256xf32>
    %706 = arith.subf %554, %705 : vector<8x256xf32>
    %707 = vector.broadcast %704 : vector<8x1xf32> to vector<8x256xf32>
    %708 = arith.mulf %706, %707 : vector<8x256xf32>
    %709 = vector.broadcast %690 : vector<8x1xf32> to vector<8x256xf32>
    %710 = arith.subf %559, %709 : vector<8x256xf32>
    %711 = vector.broadcast %704 : vector<8x1xf32> to vector<8x256xf32>
    %712 = arith.mulf %710, %711 : vector<8x256xf32>
    %c0_361 = arith.constant 0 : index
    %c0_362 = arith.constant 0 : index
    %c0_363 = arith.constant 0 : index
    %713 = vector.load %arg8[%c0_361, %c0_362, %c0_363] : memref<4x8x1xf32, #tpu.memory_space<vmem>>, vector<1x8x1xf32>
    %714 = vector.shape_cast %713 : vector<1x8x1xf32> to vector<8x1xf32>
    %c1_364 = arith.constant 1 : index
    %c0_365 = arith.constant 0 : index
    %c0_366 = arith.constant 0 : index
    %715 = vector.load %arg8[%c1_364, %c0_365, %c0_366] : memref<4x8x1xf32, #tpu.memory_space<vmem>>, vector<1x8x1xf32>
    %716 = vector.shape_cast %715 : vector<1x8x1xf32> to vector<8x1xf32>
    %c2_367 = arith.constant 2 : index
    %c0_368 = arith.constant 0 : index
    %c0_369 = arith.constant 0 : index
    %717 = vector.load %arg8[%c2_367, %c0_368, %c0_369] : memref<4x8x1xf32, #tpu.memory_space<vmem>>, vector<1x8x1xf32>
    %718 = vector.shape_cast %717 : vector<1x8x1xf32> to vector<8x1xf32>
    %c3_370 = arith.constant 3 : index
    %c0_371 = arith.constant 0 : index
    %c0_372 = arith.constant 0 : index
    %719 = vector.load %arg8[%c3_370, %c0_371, %c0_372] : memref<4x8x1xf32, #tpu.memory_space<vmem>>, vector<1x8x1xf32>
    %720 = vector.shape_cast %719 : vector<1x8x1xf32> to vector<8x1xf32>
    %721 = vector.broadcast %714 : vector<8x1xf32> to vector<8x256xf32>
    %722 = arith.mulf %721, %708 : vector<8x256xf32>
    %723 = vector.broadcast %716 : vector<8x1xf32> to vector<8x256xf32>
    %724 = arith.mulf %723, %712 : vector<8x256xf32>
    %725 = arith.subf %722, %724 : vector<8x256xf32>
    %726 = vector.broadcast %718 : vector<8x1xf32> to vector<8x256xf32>
    %727 = arith.addf %725, %726 : vector<8x256xf32>
    %728 = vector.broadcast %714 : vector<8x1xf32> to vector<8x256xf32>
    %729 = arith.mulf %728, %712 : vector<8x256xf32>
    %730 = vector.broadcast %716 : vector<8x1xf32> to vector<8x256xf32>
    %731 = arith.mulf %730, %708 : vector<8x256xf32>
    %732 = arith.addf %729, %731 : vector<8x256xf32>
    %733 = vector.broadcast %720 : vector<8x1xf32> to vector<8x256xf32>
    %734 = arith.addf %732, %733 : vector<8x256xf32>
    %735 = arith.addf %675, %727 : vector<8x256xf32>
    %736 = arith.addf %682, %734 : vector<8x256xf32>
    %737 = arith.mulf %735, %735 : vector<8x256xf32>
    %738 = arith.mulf %736, %736 : vector<8x256xf32>
    %739 = arith.addf %737, %738 : vector<8x256xf32>
    %740 = math.sqrt %739 : vector<8x256xf32>
    %cst_373 = arith.constant 0.000000e+00 : f32
    %741 = vector.broadcast %cst_373 : f32 to vector<8x256xf32>
    %742 = arith.cmpf ogt, %740, %741 : vector<8x256xf32>
    %cst_374 = arith.constant 1.000000e+00 : f32
    %743 = vector.broadcast %cst_374 : f32 to vector<8x256xf32>
    %744 = arith.select %742, %740, %743 : vector<8x256xi1>, vector<8x256xf32>
    %745 = math.log1p %740 : vector<8x256xf32>
    %746 = tpu.reciprocal %744 : vector<8x256xf32> -> vector<8x256xf32>
    %747 = arith.mulf %745, %746 : vector<8x256xf32>
    %748 = arith.mulf %735, %747 : vector<8x256xf32>
    %749 = arith.mulf %736, %747 : vector<8x256xf32>
    %c0_375 = arith.constant 0 : index
    %c1_376 = arith.constant 1 : index
    %c0_377 = arith.constant 0 : index
    %c0_378 = arith.constant 0 : index
    %750 = vector.load %arg9[%c0_375, %c1_376, %c0_377, %c0_378] : memref<2x2x8x256xf32, #tpu.memory_space<vmem>>, vector<1x1x8x256xf32>
    %751 = vector.shape_cast %750 : vector<1x1x8x256xf32> to vector<8x256xf32>
    %752 = vector.shape_cast %748 : vector<8x256xf32> to vector<1x1x8x256xf32>
    tpu.vector_store %arg9[%c0_375, %c1_376, %c0_377, %c0_378], %752 {strides = array<i32>} : memref<2x2x8x256xf32, #tpu.memory_space<vmem>>, vector<1x1x8x256xf32>,
    %c1_379 = arith.constant 1 : index
    %c1_380 = arith.constant 1 : index
    %c0_381 = arith.constant 0 : index
    %c0_382 = arith.constant 0 : index
    %753 = vector.load %arg9[%c1_379, %c1_380, %c0_381, %c0_382] : memref<2x2x8x256xf32, #tpu.memory_space<vmem>>, vector<1x1x8x256xf32>
    %754 = vector.shape_cast %753 : vector<1x1x8x256xf32> to vector<8x256xf32>
    %755 = vector.shape_cast %749 : vector<8x256xf32> to vector<1x1x8x256xf32>
    tpu.vector_store %arg9[%c1_379, %c1_380, %c0_381, %c0_382], %755 {strides = array<i32>} : memref<2x2x8x256xf32, #tpu.memory_space<vmem>>, vector<1x1x8x256xf32>,
    return
  }
}

</mosaic_0001>

<bundles_post_ra>
// kernel: custom-call.1
= control target key start
LH: loop header
LB: loop body
LE: loop exit
PB: predicated region body
PF: predicated region fallthrough
CT: control target
= control target key end

     0   :  { %s59_s0 = inlined_call_operand.hbm [shape: c64[2,4,16,16], index: 0, kind: input, shape index: {}]   ;;  %s60_s1 = inlined_call_operand.vmem [shape: f32[2,4,16,16], index: 1, kind: output, shape index: {}]  }
   0x1   :  { %s2_s8 = scalar_lea.hbm %s59_s0, 2048 }
   0x2   :  { %3 = vsyncpa [#allocation0], 0  ;;  %s4_s11 = sshll.u32 %s60_s1, 4  ;;  %s34_s14 = scalar_lea.hbm %s59_s0, 4096  ;;  %s5_s11 = int_to_ptr.vmem [resolvable:$true] %s4_s11 }
   0x3   :  { %p11_p0 = scmp.ne.s32.totalorder %s2_s8, %s34_s14  ;;  %p13_p1 = scmp.lt.u32.totalorder %s2_s8, %s59_s0 }
   0x4   :  { %p14_p2 = scmp.lt.u32.totalorder %s34_s14, %s34_s14  ;;  %p16_p4 = scmp.lt.u32.totalorder %s34_s14, %s2_s8 }
   0x6   :  { %p15_p3 = por %p14_p2, %p13_p1 }
   0x8   :  { %p17_p5 = por %p16_p4, %p15_p3 }
   0xa   :  { %p18_p6 = pnand %p17_p5, %p11_p0 }
   0xc   :  { %21 = shalt.err (!%p18_p6)  }
   0xd   :  { %s22_s17 = scalar_lea.vmem %s5_s11, 2048  ;;  %p27_p8 = scmp.lt.s32.totalorder %s5_s11, %s5_s11 }
   0xe   :  { %p23_p7 = scmp.ne.s32.totalorder %s5_s11, %s22_s17  ;;  %p28_p9 = scmp.lt.s32.totalorder %s22_s17, %s22_s17 }
  0x10   :  { %p29_p10 = por %p28_p9, %p27_p8 }
  0x12   :  { %p30_p11 = pnand %p29_p10, %p23_p7 }
  0x14   :  { %33 = shalt.err (!%p30_p11)  }
  0x15   :  { %7 = dma.hbm_to_vmem [thread:$0]  %s2_s8, 2048, %s5_s11, [#allocation0] }
  0x16   :  { %35 = dma.done.wait [#allocation0], 2048  }
  0x17   :  { %36 = vsyncadd [#allocation0], 4294965248 }
  0x18   :  { %9 = vsyncpa [#allocation0], 1 }

// kernel: custom-call
= control target key start
LH: loop header
LB: loop body
LE: loop exit
PB: predicated region body
PF: predicated region fallthrough
CT: control target
= control target key end

     0   :  { %2 = vsyncpa [#allocation0], 0  ;;  %s61_s0 = inlined_call_operand.hbm [shape: c64[2,4,16,16], index: 0, kind: input, shape index: {}]   ;;  %s62_s1 = inlined_call_operand.vmem [shape: f32[2,4,16,16], index: 1, kind: output, shape index: {}]  }
   0x1   :  { %s3_s8 = sshll.u32 %s62_s1, 4  ;;  %s9_s11 = scalar_lea.hbm %s61_s0, 2048  ;;  %s4_s8 = int_to_ptr.vmem [resolvable:$true] %s3_s8 }
   0x2   :  { %p10_p0 = scmp.ne.s32.totalorder %s61_s0, %s9_s11  ;;  %s11_s16 = scalar_lea.hbm %s61_s0, 4096 }
   0x3   :  { %p12_p1 = scmp.lt.u32.totalorder %s11_s16, %s9_s11  ;;  %p13_p2 = scmp.lt.u32.totalorder %s9_s11, %s61_s0 }
   0x5   :  { %p14_p3 = por %p13_p2, %p12_p1 }
   0x7   :  { %p15_p4 = pnand %p14_p3, %p10_p0 }
   0x9   :  { %18 = shalt.err (!%p15_p4)  }
   0xa   :  { %s19_s1 = scalar_lea.vmem %s4_s8, 2048  ;;  %p24_p6 = scmp.lt.s32.totalorder %s4_s8, %s4_s8 }
   0xb   :  { %p20_p5 = scmp.ne.s32.totalorder %s4_s8, %s19_s1  ;;  %p25_p7 = scmp.lt.s32.totalorder %s19_s1, %s19_s1 }
   0xd   :  { %p26_p8 = por %p25_p7, %p24_p6 }
   0xf   :  { %p27_p9 = pnand %p26_p8, %p20_p5 }
  0x11   :  { %30 = shalt.err (!%p27_p9)  }
  0x12   :  { %6 = dma.hbm_to_vmem [thread:$0]  %s61_s0, 2048, %s4_s8, [#allocation0] }
  0x13   :  { %31 = dma.done.wait [#allocation0], 2048  }
  0x14   :  { %32 = vsyncadd [#allocation0], 4294965248 }
  0x15   :  { %8 = vsyncpa [#allocation0], 1 }

// kernel: custom-call.2
= control target key start
LH: loop header
LB: loop body
LE: loop exit
PB: predicated region body
PF: predicated region fallthrough
CT: control target
= control target key end

     0   :  { %s126_s0 = inlined_call_operand.vmem [shape: f32[2,8,16,16], index: 0, kind: input, shape index: {}]   ;;  %s127_s1 = inlined_call_operand.vmem [shape: f32[2,8,16,16], index: 1, kind: input, shape index: {}]   ;;  %s128_s2 = inlined_call_operand.hbm [shape: c64[2,8,16,16], index: 2, kind: output, shape index: {}]  }
   0x1   :  { %s87_s11 = scalar_lea.hbm %s128_s2, 4096 }
   0x2   :  { %4 = vsyncpa [#allocation0], 0  ;;  %s5_s14 = sshll.u32 %s126_s0, 4  ;;  %s6_s14 = int_to_ptr.vmem [resolvable:$true] %s5_s14 }
   0x3   :  { %s18_s15 = scalar_lea.vmem %s6_s14, 4096  ;;  %p23_p1 = scmp.lt.s32.totalorder %s6_s14, %s6_s14 }
   0x4   :  { %p19_p0 = scmp.ne.s32.totalorder %s6_s14, %s18_s15  ;;  %p24_p2 = scmp.lt.s32.totalorder %s18_s15, %s18_s15 }
   0x6   :  { %p25_p3 = por %p24_p2, %p23_p1 }
   0x8   :  { %p26_p4 = pnand %p25_p3, %p19_p0 }
   0xa   :  { %29 = shalt.err (!%p26_p4)  }
   0xb   :  { %p31_p5 = scmp.ne.s32.totalorder %s128_s2, %s87_s11  ;;  %s32_s0 = scalar_lea.hbm %s128_s2, 8192 }
   0xc   :  { %p33_p6 = scmp.lt.u32.totalorder %s32_s0, %s87_s11  ;;  %p34_p7 = scmp.lt.u32.totalorder %s87_s11, %s128_s2 }
   0xe   :  { %p35_p8 = por %p34_p7, %p33_p6 }
  0x10   :  { %p36_p9 = pnand %p35_p8, %p31_p5 }
  0x12   :  { %39 = shalt.err (!%p36_p9)  }
  0x13   :  { %8 = dma.vmem_to_hbm [thread:$0]  %s6_s14, 4096, %s128_s2, [#allocation0] }
  0x14   :  { %65 = dma.done.wait [#allocation0], 4096  }
  0x15   :  { %66 = vsyncadd [#allocation0], 4294963200 }
  0x16   :  { %10 = vsyncpa [#allocation0], 1 }
  0x17   :  { %11 = vsyncpa [#allocation1], 0  ;;  %s12_s28 = sshll.u32 %s127_s1, 4  ;;  %s13_s28 = int_to_ptr.vmem [resolvable:$true] %s12_s28 }
  0x18   :  { %s40_s29 = scalar_lea.vmem %s13_s28, 4096  ;;  %p45_p11 = scmp.lt.s32.totalorder %s13_s28, %s13_s28 }
  0x19   :  { %p41_p10 = scmp.ne.s32.totalorder %s13_s28, %s40_s29  ;;  %p46_p12 = scmp.lt.s32.totalorder %s40_s29, %s40_s29 }
  0x1b   :  { %p47_p13 = por %p46_p12, %p45_p11 }
  0x1d   :  { %p48_p0 = pnand %p47_p13, %p41_p10 }
  0x1f   :  { %51 = shalt.err (!%p48_p0)  }
  0x20   :  { %p53_p1 = scmp.ne.s32.totalorder %s87_s11, %s32_s0  ;;  %p56_p2 = scmp.lt.u32.totalorder %s32_s0, %s32_s0 }
  0x22   :  { %p57_p3 = por %p56_p2, %p34_p7 }
  0x24   :  { %p59_p4 = por %p57_p3, %p33_p6 }
  0x26   :  { %p60_p5 = pnand %p59_p4, %p53_p1 }
  0x28   :  { %63 = shalt.err (!%p60_p5)  }
  0x29   :  { %15 = dma.vmem_to_hbm [thread:$0]  %s13_s28, 4096, %s87_s11, [#allocation1] }
  0x2a   :  { %67 = dma.done.wait [#allocation1], 4096  }
  0x2b   :  { %68 = vsyncadd [#allocation1], 4294963200 }
  0x2c   :  { %17 = vsyncpa [#allocation1], 1 }

// kernel: residual_block_pallas.1
= control target key start
LH: loop header
LB: loop body
LE: loop exit
PB: predicated region body
PF: predicated region fallthrough
CT: control target
= control target key end

     0   :  { %v39_v0 = vlaneseq  ;;  %v1668_v1 = vmov 0   ;;  %s2754_s0 = inlined_call_operand.vmem [shape: f32[2,8,256], index: 0, kind: input, shape index: {}]   ;;  %s2755_s2 = inlined_call_operand.vmem [shape: f32[8,8,256], index: 2, kind: input, shape index: {}]   ;;  %s2756_s1 = inlined_call_operand.vmem [shape: f32[8,8,256], index: 1, kind: input, shape index: {}]   ;;  %s2757_s6 = inlined_call_operand.vmem [shape: f32[8,8,1], index: 6, kind: input, shape index: {}]   ;;  %s2758_s7 = inlined_call_operand.vmem [shape: f32[8,8,1], index: 7, kind: input, shape index: {}]   ;;  %s2759_s3 = inlined_call_operand.vmem [shape: f32[4,8,1], index: 3, kind: input, shape index: {}]   ;;  %s2760_s5 = inlined_call_operand.vmem [shape: f32[4,8,1], index: 5, kind: input, shape index: {}]   ;;  %s2761_s4 = inlined_call_operand.vmem [shape: f32[2,8,256], index: 4, kind: input, shape index: {}]   ;;  %s2762_s8 = inlined_call_operand.vmem [shape: f32[4,8,1], index: 8, kind: input, shape index: {}]   ;;  %s2763_s9 = inlined_call_operand.vmem [shape: f32[2,2,8,256], index: 9, kind: output, shape index: {}]  }
   0x1   :  { %1607 = vset.pattern.permute.xlu1 %v1668_v1  ;;  %1606 = vset.pattern.permute.xlu0 %v1668_v1  ;;  %v37_v2 = vld [vmem:[%s2754_s0] ss:$8 sm:$0x3]  ;;  %v1482_v5 = vld [vmem:[%s2754_s0 + $0x1] ss:$8 sm:$0x3] }
   0x2   :  { %v40_v3 = vshrl.u32 %v39_v0, 7  ;;  %v1725_v4 = vld [vmem:[%s2755_s2] sm:$0xff]  ;;  %v1740_v9 = vld [vmem:[%s2755_s2 + $0x8] sm:$0xff]  ;;  %v1748_v11 = vld [vmem:[%s2755_s2 + $0x10] sm:$0xff] }
   0x3   :  { %v1489_v6 = vld [vmem:[%s2754_s0 + $0x2] ss:$8 sm:$0x3]  ;;  %v1496_v10 = vld [vmem:[%s2754_s0 + $0x3] ss:$8 sm:$0x3] }
   0x4   :  { %v1733_v7 = vsub.s32 0, %v40_v3  ;;  %v1735_v8 = vsub.s32 1, %v40_v3  ;;  %v1753_v12 = vld [vmem:[%s2755_s2 + $0x18] sm:$0xff]  ;;  %v1758_v13 = vld [vmem:[%s2755_s2 + $0x20] sm:$0xff]  ;;  %v1775_v18 = vld [vmem:[%s2755_s2 + $0x28] sm:$0xff] }
   0x5   :  { %v1780_v19 = vld [vmem:[%s2755_s2 + $0x30] sm:$0xff]  ;;  %v1785_v20 = vld [vmem:[%s2755_s2 + $0x38] sm:$0xff]  ;;  %v1503_v25 = vld [vmem:[%s2754_s0 + $0x4] ss:$8 sm:$0x3] }
   0x6   :  { %v1761_v14 = vrot.slane %v37_v2, %v1733_v7  ;;  %v1764_v15 = vrot.slane %v37_v2, %v1735_v8  ;;  %v1767_v16 = vrot.slane %v1482_v5, %v1733_v7  ;;  %v1770_v17 = vrot.slane %v1482_v5, %v1735_v8  ;;  %v1510_v30 = vld [vmem:[%s2754_s0 + $0x5] ss:$8 sm:$0x3]  ;;  %v1517_v31 = vld [vmem:[%s2754_s0 + $0x6] ss:$8 sm:$0x3] }
   0x7   :  { %v1788_v21 = vrot.slane %v1489_v6, %v1733_v7  ;;  %v1791_v22 = vrot.slane %v1489_v6, %v1735_v8  ;;  %v1794_v23 = vrot.slane %v1496_v10, %v1733_v7  ;;  %v1797_v24 = vrot.slane %v1496_v10, %v1735_v8  ;;  %v1827_v36 = vld [vmem:[%s2755_s2 + $0x40] sm:$0xff]  ;;  %v1832_v37 = vld [vmem:[%s2755_s2 + $0x48] sm:$0xff]  ;;  %v1837_v38 = vld [vmem:[%s2755_s2 + $0x50] sm:$0xff] }
   0x8   :  { %2799 = vst [vmem:[#allocation2_spill] sm:$0xff] %v1764_v15  ;;  %v57_v26 = vmul.f32 %v1725_v4, %v1761_v14  ;;  %v58_v27 = vmul.f32 %v1740_v9, %v1764_v15  ;;  %v104_v28 = vmul.f32 %v1748_v11, %v1767_v16  ;;  %v105_v29 = vmul.f32 %v1753_v12, %v1770_v17  ;;  %v1848_v43 = vld [vmem:[%s2755_s2 + $0x58] sm:$0xff]  ;;  %v1853_v44 = vld [vmem:[%s2755_s2 + $0x60] sm:$0xff]  ;;  %v1858_v45 = vld [vmem:[%s2755_s2 + $0x68] sm:$0xff] }
   0x9   :  { %2800 = vst [vmem:[#allocation3_spill] sm:$0xff] %v1788_v21  ;;  %2801 = vst [vmem:[#allocation4_spill] sm:$0xff] %v1791_v22  ;;  %v153_v32 = vmul.f32 %v1758_v13, %v1788_v21  ;;  %v154_v33 = vmul.f32 %v1775_v18, %v1791_v22  ;;  %v202_v34 = vmul.f32 %v1780_v19, %v1794_v23  ;;  %v1524_v50 = vld [vmem:[%s2754_s0 + $0x7] ss:$8 sm:$0x3]  ;;  %v1892_v57 = vld [vmem:[%s2756_s1 + $0x10] sm:$0xff] }
   0xa   :  { %2802 = vst [vmem:[#allocation5_spill] sm:$0xff] %v1794_v23  ;;  %2803 = vst [vmem:[#allocation6_spill] sm:$0xff] %v1797_v24  ;;  %v203_v35 = vmul.f32 %v1785_v20, %v1797_v24  ;;  %v106_v39 = vadd.f32 %v104_v28, %v57_v26  ;;  %v107_v40 = vadd.f32 %v105_v29, %v58_v27  ;;  %v1878_v51 = vld [vmem:[%s2756_s1] sm:$0xff]  ;;  %v1887_v56 = vld [vmem:[%s2756_s1 + $0x8] sm:$0xff] }
   0xb   :  { %v1840_v41 = vrot.slane %v1503_v25, %v1733_v7  ;;  %v1843_v42 = vrot.slane %v1503_v25, %v1735_v8  ;;  %v1861_v46 = vrot.slane %v1510_v30, %v1733_v7  ;;  %v1864_v47 = vrot.slane %v1510_v30, %v1735_v8  ;;  %v1897_v58 = vld [vmem:[%s2756_s1 + $0x18] sm:$0xff]  ;;  %v1910_v63 = vld [vmem:[%s2755_s2 + $0x70] sm:$0xff]  ;;  %v1926_v6 = vld [vmem:[%s2756_s1 + $0x20] sm:$0xff] }
   0xc   :  { %v1867_v48 = vrot.slane %v1517_v31, %v1733_v7  ;;  %v1870_v49 = vrot.slane %v1517_v31, %v1735_v8  ;;  %v155_v52 = vadd.f32 %v153_v32, %v106_v39  ;;  %v156_v53 = vadd.f32 %v154_v33, %v107_v40  ;;  %v1915_v0 = vld [vmem:[%s2755_s2 + $0x78] sm:$0xff]  ;;  %v1931_v10 = vld [vmem:[%s2756_s1 + $0x28] sm:$0xff]  ;;  %v1944_v29 = vld [vmem:[%s2756_s1 + $0x30] sm:$0xff] }
   0xd   :  { %2804 = vst [vmem:[#allocation7_spill] sm:$0xff] %v1840_v41  ;;  %2805 = vst [vmem:[#allocation8_spill] sm:$0xff] %v1843_v42  ;;  %v251_v54 = vmul.f32 %v1827_v36, %v1840_v41  ;;  %v252_v55 = vmul.f32 %v1832_v37, %v1843_v42  ;;  %v300_v59 = vmul.f32 %v1837_v38, %v1861_v46  ;;  %v1949_v30 = vld [vmem:[%s2756_s1 + $0x38] sm:$0xff]  ;;  %v1963_v39 = vld [vmem:[%s2756_s1 + $0x48] sm:$0xff] }
   0xe   :  { %2806 = vst [vmem:[#allocation9_spill] sm:$0xff] %v1864_v47  ;;  %2807 = vst [vmem:[#allocation10_spill] sm:$0xff] %v1867_v48  ;;  %v301_v60 = vmul.f32 %v1848_v43, %v1864_v47  ;;  %v349_v61 = vmul.f32 %v1853_v44, %v1867_v48  ;;  %v350_v62 = vmul.f32 %v1858_v45, %v1870_v49 }
   0xf   :  { %2808 = vst [vmem:[#allocation11_spill] sm:$0xff] %v1870_v49  ;;  %v204_v1 = vadd.f32 %v202_v34, %v155_v52  ;;  %v205_v2 = vadd.f32 %v203_v35, %v156_v53  ;;  %v1918_v3 = vrot.slane %v1524_v50, %v1733_v7  ;;  %v1921_v5 = vrot.slane %v1524_v50, %v1735_v8  ;;  %v1958_v35 = vld [vmem:[%s2756_s1 + $0x40] sm:$0xff] }
  0x10   :  { %v51_v25 = vmul.f32 %v1878_v51, %v1761_v14  ;;  %v52_v26 = vmul.f32 %v1887_v56, %v1764_v15  ;;  %v97_v27 = vmul.f32 %v1892_v57, %v1767_v16  ;;  %v98_v28 = vmul.f32 %v1897_v58, %v1770_v17 }
  0x11   :  { %2809 = vst [vmem:[#allocation12_spill] sm:$0xff] %v1918_v3  ;;  %2810 = vst [vmem:[#allocation13_spill] sm:$0xff] %v1921_v5  ;;  %v253_v31 = vadd.f32 %v251_v54, %v204_v1  ;;  %v254_v32 = vadd.f32 %v252_v55, %v205_v2  ;;  %v398_v33 = vmul.f32 %v1910_v63, %v1918_v3  ;;  %v1972_v54 = vld [vmem:[%s2756_s1 + $0x50] sm:$0xff]  ;;  %v1977_v55 = vld [vmem:[%s2756_s1 + $0x58] sm:$0xff] }
  0x12   :  { %v399_v34 = vmul.f32 %v1915_v0, %v1921_v5  ;;  %v99_v40 = vadd.f32 %v97_v27, %v51_v25  ;;  %v100_v50 = vadd.f32 %v98_v28, %v52_v26  ;;  %v146_v52 = vmul.f32 %v1926_v6, %v1788_v21  ;;  %v1986_v27 = vld [vmem:[%s2756_s1 + $0x60] sm:$0xff]  ;;  %v1991_v28 = vld [vmem:[%s2756_s1 + $0x68] sm:$0xff] }
  0x13   :  { %v147_v53 = vmul.f32 %v1931_v10, %v1791_v22  ;;  %v302_v1 = vadd.f32 %v300_v59, %v253_v31  ;;  %v303_v2 = vadd.f32 %v301_v60, %v254_v32  ;;  %v195_v25 = vmul.f32 %v1944_v29, %v1794_v23  ;;  %v2000_v31 = vld [vmem:[%s2756_s1 + $0x70] sm:$0xff]  ;;  %v2005_v32 = vld [vmem:[%s2756_s1 + $0x78] sm:$0xff] }
  0x14   :  { %v196_v26 = vmul.f32 %v1949_v30, %v1797_v24  ;;  %v148_v22 = vadd.f32 %v146_v52, %v99_v40  ;;  %v244_v59 = vmul.f32 %v1958_v35, %v1840_v41  ;;  %v245_v60 = vmul.f32 %v1963_v39, %v1843_v42  ;;  %v1542_v52 = vld [vmem:[%s2754_s0 + $0x10] ss:$8 sm:$0x3] }
  0x15   :  { %v149_v21 = vadd.f32 %v147_v53, %v100_v50  ;;  %v351_v24 = vadd.f32 %v349_v61, %v302_v1  ;;  %v352_v23 = vadd.f32 %v350_v62, %v303_v2  ;;  %v293_v40 = vmul.f32 %v1972_v54, %v1861_v46  ;;  %v1543_v61 = vld [vmem:[%s2754_s0 + $0x11] ss:$8 sm:$0x3]  ;;  %v1550_v62 = vld [vmem:[%s2754_s0 + $0x12] ss:$8 sm:$0x3] }
  0x16   :  { %v294_v50 = vmul.f32 %v1977_v55, %v1864_v47  ;;  %v197_v53 = vadd.f32 %v195_v25, %v148_v22  ;;  %v342_v41 = vmul.f32 %v1986_v27, %v1867_v48  ;;  %v343_v15 = vmul.f32 %v1991_v28, %v1870_v49 }
  0x17   :  { %v198_v42 = vadd.f32 %v196_v26, %v149_v21  ;;  %v2024_v1 = vadd.f32 %v398_v33, %v351_v24  ;;  %v2026_v2 = vadd.f32 %v399_v34, %v352_v23  ;;  %v391_v21 = vmul.f32 %v2000_v31, %v1918_v3 }
  0x18   :  { %v392_v22 = vmul.f32 %v2005_v32, %v1921_v5  ;;  %v246_v25 = vadd.f32 %v244_v59, %v197_v53  ;;  %v2033_v49 = vrot.slane %v1542_v52, %v1733_v7  ;;  %v2036_v48 = vrot.slane %v1542_v52, %v1735_v8 }
  0x19   :  { %v247_v26 = vadd.f32 %v245_v60, %v198_v42  ;;  %v429_v24 = vadd.f32 %v2026_v2, %v2024_v1  ;;  %v2041_v23 = vrot.slane %v1543_v61, %v1733_v7  ;;  %v2044_v33 = vrot.slane %v1543_v61, %v1735_v8  ;;  %v1557_v42 = vld [vmem:[%s2754_s0 + $0x13] ss:$8 sm:$0x3]  ;;  %v1564_v61 = vld [vmem:[%s2754_s0 + $0x14] ss:$8 sm:$0x3] }
  0x1a   :  { %v2047_v34 = vrot.slane %v1550_v62, %v1733_v7  ;;  %v295_v59 = vadd.f32 %v293_v40, %v246_v25  ;;  %v786_v52 = vmul.f32 %v2033_v49, %v1878_v51  ;;  %v787_v53 = vmul.f32 %v2036_v48, %v1887_v56 }
  0x1b   :  { %v296_v60 = vadd.f32 %v294_v50, %v247_v26  ;;  %430 = vadd.xlane.f32.xlu1 %v429_v24  ;;  %v831_v5 = vmul.f32 %v1892_v57, %v2041_v23  ;;  %v832_v3 = vmul.f32 %v1897_v58, %v2044_v33  ;;  %v2064_v40 = vrot.slane %v1550_v62, %v1735_v8 }
  0x1c   :  { %v876_v51 = vmul.f32 %v1926_v6, %v2047_v34  ;;  %v344_v50 = vadd.f32 %v342_v41, %v295_v59  ;;  %v2069_v56 = vrot.slane %v1557_v42, %v1733_v7  ;;  %v2072_v26 = vrot.slane %v1557_v42, %v1735_v8  ;;  %v1571_v6 = vld [vmem:[%s2754_s0 + $0x15] ss:$8 sm:$0x3] }
  0x1d   :  { %v345_v25 = vadd.f32 %v343_v15, %v296_v60  ;;  %v833_v24 = vadd.f32 %v831_v5, %v786_v52  ;;  %v834_v47 = vadd.f32 %v832_v3, %v787_v53  ;;  %v877_v57 = vmul.f32 %v1931_v10, %v2064_v40  ;;  %v1578_v15 = vld [vmem:[%s2754_s0 + $0x16] ss:$8 sm:$0x3] }
  0x1e   :  { %v2077_v58 = vrot.slane %v1564_v61, %v1733_v7  ;;  %v2085_v41 = vadd.f32 %v391_v21, %v344_v50  ;;  %v921_v3 = vmul.f32 %v1944_v29, %v2069_v56  ;;  %v922_v5 = vmul.f32 %v1949_v30, %v2072_v26  ;;  %v1585_v21 = vld [vmem:[%s2754_s0 + $0x17] ss:$8 sm:$0x3] }
  0x1f   :  { %v2087_v62 = vadd.f32 %v392_v22, %v345_v25  ;;  %v878_v10 = vadd.f32 %v876_v51, %v833_v24  ;;  %v879_v42 = vadd.f32 %v877_v57, %v834_v47  ;;  %v2094_v59 = vrot.slane %v1564_v61, %v1735_v8 }
  0x20   :  { %v966_v60 = vmul.f32 %v1958_v35, %v2077_v58  ;;  %v2104_v29 = vrot.slane %v1571_v6, %v1733_v7  ;;  %v2107_v30 = vrot.slane %v1571_v6, %v1735_v8  ;;  %v2110_v47 = vrot.slane %v1578_v15, %v1733_v7 }
  0x21   :  { %v424_v22 = vadd.f32 %v2087_v62, %v2085_v41  ;;  %v923_v52 = vadd.f32 %v921_v3, %v878_v10  ;;  %v924_v53 = vadd.f32 %v922_v5, %v879_v42  ;;  %v967_v35 = vmul.f32 %v1963_v39, %v2094_v59 }
  0x22   :  { %v2115_v61 = vrot.slane %v1578_v15, %v1735_v8  ;;  %v1011_v51 = vmul.f32 %v1972_v54, %v2104_v29  ;;  %v1012_v50 = vmul.f32 %v1977_v55, %v2107_v30  ;;  %v1056_v25 = vmul.f32 %v1986_v27, %v2110_v47 }
  0x23   :  { %425 = vadd.xlane.f32.xlu0 %v424_v22  ;;  %v2124_v24 = vrot.slane %v1585_v21, %v1733_v7  ;;  %v968_v57 = vadd.f32 %v966_v60, %v923_v52  ;;  %v969_v6 = vadd.f32 %v967_v35, %v924_v53  ;;  %v2129_v15 = vrot.slane %v1585_v21, %v1735_v8 }
  0x24   :  { %2811 = vst [vmem:[#allocation14_spill] sm:$0xff] %v2115_v61  ;;  %v1057_v39 = vmul.f32 %v1991_v28, %v2115_v61  ;;  %v433_v55 = vmul.f32 %v2085_v41, %v2085_v41  ;;  %v434_v27 = vmul.f32 %v2087_v62, %v2087_v62  ;;  %v435_v7 = vmul.f32 %v2024_v1, %v2024_v1 }
  0x25   :  { %2812 = vst [vmem:[#allocation15_spill] sm:$0xff] %v2129_v15  ;;  %v1101_v54 = vmul.f32 %v2000_v31, %v2124_v24  ;;  %v1013_v3 = vadd.f32 %v1011_v51, %v968_v57  ;;  %v1014_v5 = vadd.f32 %v1012_v50, %v969_v6  ;;  %v1102_v28 = vmul.f32 %v2005_v32, %v2129_v15 }
  0x26   :  { %v436_v8 = vmul.f32 %v2026_v2, %v2026_v2  ;;  %v437_v10 = vadd.f32 %v435_v7, %v433_v55  ;;  %v792_v31 = vmul.f32 %v2033_v49, %v1725_v4  ;;  %v793_v42 = vmul.f32 %v2036_v48, %v1740_v9 }
  0x27   :  { %v837_v60 = vmul.f32 %v1748_v11, %v2041_v23  ;;  %v1058_v21 = vadd.f32 %v1056_v25, %v1013_v3  ;;  %v1059_v22 = vadd.f32 %v1057_v39, %v1014_v5  ;;  %v838_v53 = vmul.f32 %v1753_v12, %v2044_v33 }
  0x28   :  { %v438_v52 = vadd.f32 %v436_v8, %v434_v27  ;;  %v882_v35 = vmul.f32 %v1758_v13, %v2047_v34  ;;  %v883_v51 = vmul.f32 %v1775_v18, %v2064_v40  ;;  %v927_v4 = vmul.f32 %v1780_v19, %v2069_v56 }
  0x29   :  { %v839_v32 = vadd.f32 %v837_v60, %v792_v31  ;;  %v2157_v9 = vadd.f32 %v1101_v54, %v1058_v21  ;;  %v2159_v50 = vadd.f32 %v1102_v28, %v1059_v22  ;;  %v840_v25 = vadd.f32 %v838_v53, %v793_v42  ;;  %v61_v53 = vld [vmem:[%s2757_s6] sm:$0xff] }
  0x2a   :  { %v439_v11 = vadd.f32 %v438_v52, %v437_v10  ;;  %v928_v12 = vmul.f32 %v1785_v20, %v2072_v26  ;;  %v972_v6 = vmul.f32 %v1827_v36, %v2077_v58  ;;  %v973_v19 = vmul.f32 %v1832_v37, %v2094_v59  ;;  %v1487_v52 = vld [vmem:[%s2757_s6 + $0x8] sm:$0xff] }
  0x2b   :  { %v884_v57 = vadd.f32 %v882_v35, %v839_v32  ;;  %v1131_v13 = vadd.f32 %v2159_v50, %v2157_v9  ;;  %v885_v18 = vadd.f32 %v883_v51, %v840_v25  ;;  %v1017_v54 = vmul.f32 %v1837_v38, %v2104_v29  ;;  %v1488_v32 = vld [vmem:[%s2758_s7 + $0x8] sm:$0xff]  ;;  %v71_v35 = vld [vmem:[%s2758_s7] sm:$0xff]  ;;  %v1495_v51 = vld [vmem:[%s2758_s7 + $0x10] sm:$0xff] }
  0x2c   :  { %440 = vadd.xlane.f32.xlu0 %v439_v11  ;;  %v1018_v20 = vmul.f32 %v1848_v43, %v2107_v30  ;;  %v1062_v36 = vmul.f32 %v1853_v44, %v2110_v47  ;;  %v1063_v3 = vmul.f32 %v1858_v45, %v2115_v61  ;;  %v1107_v37 = vmul.f32 %v1910_v63, %v2124_v24  ;;  %v1502_v11 = vld [vmem:[%s2758_s7 + $0x18] sm:$0xff] }
  0x2d   :  { %v929_v39 = vadd.f32 %v927_v4, %v884_v57  ;;  %1132 = vadd.xlane.f32.xlu1 %v1131_v13  ;;  %v930_v55 = vadd.f32 %v928_v12, %v885_v18  ;;  %v1108_v38 = vmul.f32 %v1915_v0, %v2129_v15  ;;  %v1139_v43 = vmul.f32 %v2157_v9, %v2157_v9  ;;  %v1494_v4 = vld [vmem:[%s2757_s6 + $0x10] sm:$0xff]  ;;  %v1501_v25 = vld [vmem:[%s2757_s6 + $0x18] sm:$0xff]  ;;  %v2222_v57 = vld [vmem:[%s2758_s7 + $0x20] sm:$0xff] }
  0x2e   :  { %v1140_v45 = vmul.f32 %v2159_v50, %v2159_v50  ;;  %v1508_v12 = vld [vmem:[%s2757_s6 + $0x20] sm:$0xff]  ;;  %v2236_v13 = vld [vmem:[%s2757_s6 + $0x28] sm:$0xff]  ;;  %v2242_v18 = vld [vmem:[%s2758_s7 + $0x30] sm:$0xff] }
  0x2f   :  { %v974_v27 = vadd.f32 %v972_v6, %v929_v39  ;;  %v975_v7 = vadd.f32 %v973_v19, %v930_v55  ;;  %v2231_v6 = vld [vmem:[%s2758_s7 + $0x28] sm:$0xff]  ;;  %v2248_v19 = vld [vmem:[%s2757_s6 + $0x30] sm:$0xff]  ;;  %v2254_v39 = vld [vmem:[%s2758_s7 + $0x38] sm:$0xff] }
  0x30   :  { %v1531_v55 = vld [vmem:[%s2759_s3 + $0x8] sm:$0xff]  ;;  %v2824_v15 = vld [vmem:[#allocation9_spill] sm:$0xff] }
  0x31   :  { %v1019_v5 = vadd.f32 %v1017_v54, %v974_v27  ;;  %v1020_v28 = vadd.f32 %v1018_v20, %v975_v7  ;;  %v2260_v54 = vld [vmem:[%s2757_s6 + $0x38] sm:$0xff]  ;;  %v457_v20 = vld [vmem:[%s2759_s3] sm:$0xff]  ;;  %v1532_v27 = vld [vmem:[%s2759_s3 + $0x10] sm:$0xff] }
  0x32   :  { %v2279_v7 = vld [vmem:[%s2760_s5] sm:$0xff] }
  0x33   :  { %v1064_v8 = vadd.f32 %v1062_v36, %v1019_v5  ;;  %v1065_v10 = vadd.f32 %v1063_v3, %v1020_v28  ;;  %v1533_v36 = vld [vmem:[%s2759_s3 + $0x18] sm:$0xff]  ;;  %2813 = vst [vmem:[#allocation16_spill] sm:$0xff] %v2279_v7  ;;  %v2284_v3 = vld [vmem:[%s2760_s5 + $0x8] sm:$0xff]  ;;  %v2291_v5 = vld [vmem:[%s2760_s5 + $0x10] sm:$0xff] }
  0x34   :  { %2814 = vst [vmem:[#allocation17_spill] sm:$0xff] %v2284_v3  ;;  %2815 = vst [vmem:[#allocation18_spill] sm:$0xff] %v2291_v5 }
  0x35   :  { %v2181_v31 = vadd.f32 %v1107_v37, %v1064_v8  ;;  %v2185_v44 = vadd.f32 %v1108_v38, %v1065_v10  ;;  %v2297_v37 = vld [vmem:[%s2760_s5 + $0x18] sm:$0xff] }
  0x36   :  { %2816 = vst [vmem:[#allocation19_spill] sm:$0xff] %v2297_v37 }
  0x37   :  { %v1141_v42 = vmul.f32 %v2181_v31, %v2181_v31  ;;  %v1142_v63 = vmul.f32 %v2185_v44, %v2185_v44  ;;  %v1135_v0 = vadd.f32 %v2185_v44, %v2181_v31 }
  0x39   :  { %v1143_v60 = vadd.f32 %v1141_v42, %v1139_v43  ;;  %v1144_v21 = vadd.f32 %v1142_v63, %v1140_v45  ;;  %1136 = vadd.xlane.f32.xlu0 %v1135_v0 }
  0x3b   :  { %v1145_v22 = vadd.f32 %v1144_v21, %v1143_v60 }
  0x3d   :  { %1146 = vadd.xlane.f32.xlu1 %v1145_v22 }
  0x4e   :  { %112 = vperm.xlu1 %1607, %v1487_v52  }
  0x4f   :  { %64 = vperm.xlu0 %1606, %v61_v53  }
  0x52   :  { %123 = vperm.xlu1 %1607, %v1488_v32  }
  0x53   :  { %74 = vperm.xlu0 %1606, %v71_v35  }
  0x56   :  { %172 = vperm.xlu1 %1607, %v1495_v51  }
  0x57   :  { %161 = vperm.xlu0 %1606, %v1494_v4  }
  0x5a   :  { %221 = vperm.xlu1 %1607, %v1502_v11  }
  0x5b   :  { %210 = vperm.xlu0 %1606, %v1501_v25  }
  0x5e   :  { %270 = vperm.xlu1 %1607, %v2222_v57  }
  0x5f   :  { %259 = vperm.xlu0 %1606, %v1508_v12  }
  0x62   :  { %319 = vperm.xlu1 %1607, %v2231_v6  }
  0x63   :  { %308 = vperm.xlu0 %1606, %v2236_v13  }
  0x66   :  { %368 = vperm.xlu1 %1607, %v2242_v18  }
  0x67   :  { %357 = vperm.xlu0 %1606, %v2248_v19  }
  0x6a   :  { %417 = vperm.xlu1 %1607, %v2254_v39  }
  0x6b   :  { %406 = vperm.xlu0 %1606, %v2260_v54  }
  0x6e   :  { %473 = vperm.xlu1 %1607, %v1531_v55  }
  0x6f   :  { %466 = vperm.xlu0 %1606, %v457_v20  }
  0x72   :  { %482 = vperm.xlu1 %1607, %v1532_v27  }
  0x73   :  { %495 = vperm.xlu0 %1606, %v1533_v36  }
  0x76   :  { %603 = vperm.xlu1 %1607, %v2279_v7  }
  0x77   :  { %610 = vperm.xlu0 %1606, %v2284_v3  }
  0x7a   :  { %1169 = vperm.xlu1 %1607, %v457_v20  }
  0x7b   :  { %619 = vperm.xlu0 %1606, %v2291_v5  }
  0x7e   :  { %1176 = vperm.xlu1 %1607, %v1531_v55  }
  0x7f   :  { %1185 = vperm.xlu0 %1606, %v1532_v27  }
  0x82   :  { %1198 = vperm.xlu1 %1607, %v1533_v36  }
  0x83   :  { %632 = vperm.xlu0 %1606, %v2297_v37   ;;  %v2818_v37 = vld [vmem:[#allocation3_spill] sm:$0xff] }
  0x87   :  { %799 = vperm.xlu0 %1606, %v61_v53  }
  0x8b   :  { %809 = vperm.xlu0 %1606, %v71_v35  }
  0x8f   :  { %844 = vperm.xlu0 %1606, %v1487_v52  }
  0x93   :  { %854 = vperm.xlu0 %1606, %v1488_v32  }
  0x97   :  { %889 = vperm.xlu0 %1606, %v1494_v4  }
  0x9b   :  { %899 = vperm.xlu0 %1606, %v1495_v51  }
  0x9f   :  { %934 = vperm.xlu0 %1606, %v1501_v25  }
  0xa3   :  { %944 = vperm.xlu0 %1606, %v1502_v11  }
  0xa7   :  { %979 = vperm.xlu0 %1606, %v1508_v12  }
  0xa8   :  { %v431_v38 = vpop.xlane.xlu1 %430 }
  0xa9   :  { %v2300_v0 = vmul.f32 0.00390625, %v431_v38 }
  0xab   :  { %v444_v32 = vmul.f32 %v2300_v0, %v2300_v0 }
  0xb0   :  { %v426_v28 = vpop.xlane.xlu0 %425 }
  0xb1   :  { %v2302_v60 = vmul.f32 0.00390625, %v426_v28 }
  0xb3   :  { %v443_v35 = vmul.f32 %v2302_v60, %v2302_v60 }
  0xb5   :  { %v445_v12 = vadd.f32 %v444_v32, %v443_v35  ;;  %v2819_v32 = vld [vmem:[#allocation4_spill] sm:$0xff] }
  0xb9   :  { %v441_v8 = vpop.xlane.xlu0 %440 }
  0xba   :  { %v1133_v10 = vpop.xlane.xlu1 %1132  ;;  %v442_v55 = vmul.f32 0.00390625, %v441_v8 }
  0xbb   :  { %v1134_v43 = vmul.f32 0.00390625, %v1133_v10  ;;  %v2817_v10 = vld [vmem:[#allocation2_spill] sm:$0xff] }
  0xbd   :  { %v1149_v42 = vmul.f32 %v1134_v43, %v1134_v43  ;;  %v1155_v35 = vsub.f32 %v2157_v9, %v1134_v43 }
  0xc6   :  { %v1137_v45 = vpop.xlane.xlu0 %1136 }
  0xc7   :  { %v1138_v63 = vmul.f32 0.00390625, %v1137_v45 }
  0xc9   :  { %v1150_v21 = vmul.f32 %v1138_v63, %v1138_v63  ;;  %v1159_v7 = vsub.f32 %v2181_v31, %v1138_v63 }
  0xca   :  { %v1147_v22 = vpop.xlane.xlu1 %1146 }
  0xcb   :  { %v1148_v52 = vmul.f32 0.00390625, %v1147_v22  ;;  %v1151_v53 = vadd.f32 %v1150_v21, %v1149_v42  ;;  %v446_v42 = vsub.f32 %v442_v55, %v445_v12 }
  0xcd   :  { %v1152_v51 = vsub.f32 %v1148_v52, %v1151_v53  ;;  %v447_v5 = vadd.f32 1e-05, %v446_v42 }
  0xce   :  { %v113_v4 = vpop.permute.xlu1 %112  ;;  %v65_v11 = vpop.permute.xlu0 %64 }
  0xcf   :  { %v1153_v25 = vadd.f32 1e-05, %v1152_v51  ;;  %v115_v12 = vmul.f32 %v113_v4, %v1767_v16  ;;  %v116_v55 = vmul.f32 %v113_v4, %v1770_v17  ;;  %v68_v9 = vmul.f32 %v65_v11, %v2817_v10 }
  0xd1   :  { %1608 = vrsqrt.f32 %v1153_v25  ;;  %v1156_v25 = vsub.f32 %v2159_v50, %v1134_v43  ;;  %v2821_v43 = vld [vmem:[#allocation6_spill] sm:$0xff] }
  0xd2   :  { %v124_v20 = vpop.permute.xlu1 %123  ;;  %v75_v27 = vpop.permute.xlu0 %74  ;;  %1610 = vrsqrt.f32 %v447_v5 }
  0xd3   :  { %v126_v36 = vmul.f32 %v124_v20, %v1767_v16  ;;  %v127_v28 = vmul.f32 %v124_v20, %v1770_v17  ;;  %v77_v38 = vmul.f32 %v75_v27, %v1761_v14  ;;  %v78_v45 = vmul.f32 %v75_v27, %v2817_v10  ;;  %v2822_v10 = vld [vmem:[#allocation7_spill] sm:$0xff] }
  0xd4   :  { %v1160_v27 = vsub.f32 %v2185_v44, %v1138_v63 }
  0xd5   :  { %v128_v21 = vadd.f32 %v126_v36, %v77_v38  ;;  %v129_v22 = vadd.f32 %v127_v28, %v78_v45  ;;  %v67_v45 = vmul.f32 %v65_v11, %v1761_v14 }
  0xd6   :  { %v173_v52 = vpop.permute.xlu1 %172  ;;  %v162_v53 = vpop.permute.xlu0 %161 }
  0xd7   :  { %v175_v51 = vmul.f32 %v173_v52, %v2818_v37  ;;  %v176_v8 = vmul.f32 %v173_v52, %v2819_v32  ;;  %v2820_v52 = vld [vmem:[#allocation5_spill] sm:$0xff]  ;;  %v164_v4 = vmul.f32 %v162_v53, %v2818_v37  ;;  %v165_v14 = vmul.f32 %v162_v53, %v2819_v32 }
  0xd9   :  { %v177_v3 = vadd.f32 %v175_v51, %v128_v21  ;;  %v178_v20 = vadd.f32 %v176_v8, %v129_v22  ;;  %v2823_v8 = vld [vmem:[#allocation8_spill] sm:$0xff] }
  0xda   :  { %v222_v36 = vpop.permute.xlu1 %221  ;;  %v211_v28 = vpop.permute.xlu0 %210 }
  0xdb   :  { %v1609_v38 = vpop.eup %1608  ;;  %v224_v50 = vmul.f32 %v222_v36, %v2820_v52  ;;  %v225_v42 = vmul.f32 %v222_v36, %v2821_v43  ;;  %v117_v36 = vadd.f32 %v115_v12, %v67_v45 }
  0xdc   :  { %v2324_v21 = vmul.f32 %v1609_v38, %v1159_v7  ;;  %v2326_v31 = vmul.f32 %v1609_v38, %v1160_v27  ;;  %v2328_v44 = vmul.f32 %v1609_v38, %v1155_v35  ;;  %v2330_v16 = vmul.f32 %v1609_v38, %v1156_v25 }
  0xdd   :  { %v226_v17 = vadd.f32 %v224_v50, %v177_v3  ;;  %v227_v63 = vadd.f32 %v225_v42, %v178_v20  ;;  %v118_v27 = vadd.f32 %v116_v55, %v68_v9  ;;  %v213_v35 = vmul.f32 %v211_v28, %v2820_v52 }
  0xde   :  { %v271_v22 = vpop.permute.xlu1 %270  ;;  %v260_v11 = vpop.permute.xlu0 %259  ;;  %v214_v25 = vmul.f32 %v211_v28, %v2821_v43  ;;  %v166_v20 = vadd.f32 %v164_v4, %v117_v36 }
  0xdf   :  { %v273_v51 = vmul.f32 %v271_v22, %v2822_v10  ;;  %v274_v7 = vmul.f32 %v271_v22, %v2823_v8  ;;  %v167_v50 = vadd.f32 %v165_v14, %v118_v27  ;;  %v262_v53 = vmul.f32 %v260_v11, %v2822_v10  ;;  %v2825_v14 = vld [vmem:[#allocation10_spill] sm:$0xff] }
  0xe0   :  { %v263_v32 = vmul.f32 %v260_v11, %v2823_v8  ;;  %v215_v12 = vadd.f32 %v213_v35, %v166_v20  ;;  %v2826_v11 = vld [vmem:[#allocation11_spill] sm:$0xff]  ;;  %v1611_v35 = vpop.eup %1610  ;;  %v450_v20 = vsub.f32 %v2087_v62, %v2302_v60 }
  0xe1   :  { %v275_v38 = vadd.f32 %v273_v51, %v226_v17  ;;  %v276_v3 = vadd.f32 %v274_v7, %v227_v63  ;;  %v216_v55 = vadd.f32 %v214_v25, %v167_v50 }
  0xe2   :  { %v320_v37 = vpop.permute.xlu1 %319  ;;  %v309_v5 = vpop.permute.xlu0 %308  ;;  %v264_v43 = vadd.f32 %v262_v53, %v215_v12 }
  0xe3   :  { %v322_v42 = vmul.f32 %v320_v37, %v1861_v46  ;;  %v323_v22 = vmul.f32 %v320_v37, %v2824_v15  ;;  %v311_v45 = vmul.f32 %v309_v5, %v1861_v46  ;;  %v312_v28 = vmul.f32 %v309_v5, %v2824_v15  ;;  %v2827_v5 = vld [vmem:[#allocation12_spill] sm:$0xff] }
  0xe4   :  { %v265_v17 = vadd.f32 %v263_v32, %v216_v55  ;;  %v453_v46 = vsub.f32 %v2024_v1, %v2300_v0  ;;  %v454_v15 = vsub.f32 %v2026_v2, %v2300_v0 }
  0xe5   :  { %v324_v9 = vadd.f32 %v322_v42, %v275_v38  ;;  %v325_v52 = vadd.f32 %v323_v22, %v276_v3  ;;  %v313_v36 = vadd.f32 %v311_v45, %v264_v43  ;;  %v449_v3 = vsub.f32 %v2085_v41, %v2302_v60  ;;  %v2828_v22 = vld [vmem:[#allocation13_spill] sm:$0xff] }
  0xe6   :  { %v369_v63 = vpop.permute.xlu1 %368  ;;  %v358_v4 = vpop.permute.xlu0 %357  ;;  %v314_v27 = vadd.f32 %v312_v28, %v265_v17  ;;  %v455_v0 = vmul.f32 %v1611_v35, %v453_v46  ;;  %v456_v55 = vmul.f32 %v1611_v35, %v454_v15  ;;  %v452_v28 = vmul.f32 %v1611_v35, %v450_v20 }
  0xe7   :  { %v371_v10 = vmul.f32 %v369_v63, %v2825_v14  ;;  %v372_v51 = vmul.f32 %v369_v63, %v2826_v11  ;;  %v360_v8 = vmul.f32 %v358_v4, %v2825_v14  ;;  %v361_v7 = vmul.f32 %v358_v4, %v2826_v11 }
  0xe8   :  { %v451_v45 = vmul.f32 %v1611_v35, %v449_v3 }
  0xe9   :  { %v373_v25 = vadd.f32 %v371_v10, %v324_v9  ;;  %v374_v38 = vadd.f32 %v372_v51, %v325_v52  ;;  %v362_v37 = vadd.f32 %v360_v8, %v313_v36  ;;  %v363_v53 = vadd.f32 %v361_v7, %v314_v27 }
  0xea   :  { %v418_v50 = vpop.permute.xlu1 %417  ;;  %v407_v32 = vpop.permute.xlu0 %406 }
  0xeb   :  { %v420_v42 = vmul.f32 %v418_v50, %v2827_v5  ;;  %v421_v12 = vmul.f32 %v418_v50, %v2828_v22  ;;  %v409_v1 = vmul.f32 %v407_v32, %v2827_v5  ;;  %v410_v2 = vmul.f32 %v407_v32, %v2828_v22 }
  0xed   :  { %v2360_v41 = vadd.f32 %v420_v42, %v373_v25  ;;  %v2362_v9 = vadd.f32 %v421_v12, %v374_v38  ;;  %v2364_v62 = vadd.f32 %v409_v1, %v362_v37  ;;  %v2366_v60 = vadd.f32 %v410_v2, %v363_v53 }
  0xee   :  { %v474_v52 = vpop.permute.xlu1 %473  ;;  %v467_v43 = vpop.permute.xlu0 %466 }
  0xef   :  { %v476_v17 = vmul.f32 %v474_v52, %v455_v0  ;;  %v477_v63 = vmul.f32 %v474_v52, %v456_v55  ;;  %v469_v4 = vmul.f32 %v467_v43, %v451_v45  ;;  %v470_v14 = vmul.f32 %v467_v43, %v452_v28 }
  0xf0   :  { %v637_v10 = vadd.f32 %v2366_v60, %v2364_v62  ;;  %v487_v11 = vmul.f32 %v467_v43, %v455_v0  ;;  %v488_v51 = vmul.f32 %v467_v43, %v456_v55  ;;  %v489_v8 = vmul.f32 %v474_v52, %v451_v45 }
  0xf1   :  { %v478_v7 = vsub.f32 %v469_v4, %v476_v17  ;;  %v479_v36 = vsub.f32 %v470_v14, %v477_v63  ;;  %v490_v27 = vmul.f32 %v474_v52, %v452_v28 }
  0xf2   :  { %v483_v35 = vpop.permute.xlu1 %482  ;;  %638 = vadd.xlane.f32.xlu1 %v637_v10  ;;  %v491_v46 = vadd.f32 %v489_v8, %v487_v11  ;;  %v496_v15 = vpop.permute.xlu0 %495 }
  0xf3   :  { %v2370_v25 = vadd.f32 %v483_v35, %v478_v7  ;;  %v2372_v38 = vadd.f32 %v483_v35, %v479_v36  ;;  %v492_v3 = vadd.f32 %v490_v27, %v488_v51 }
  0xf4   :  { %v2374_v20 = vadd.f32 %v496_v15, %v491_v46 }
  0xf5   :  { %v500_v50 = vmul.f32 %v2370_v25, %v2370_v25  ;;  %v501_v37 = vmul.f32 %v2372_v38, %v2372_v38  ;;  %v2380_v53 = vadd.f32 %v496_v15, %v492_v3 }
  0xf6   :  { %v2382_v32 = vpop.permute.xlu1 %603  ;;  %v502_v5 = vmul.f32 %v2374_v20, %v2374_v20  ;;  %v2386_v42 = vpop.permute.xlu0 %610 }
  0xf7   :  { %2829 = vst [vmem:[#allocation2_spill] sm:$0xff] %v2382_v32  ;;  %2830 = vst [vmem:[#allocation3_spill] sm:$0xff] %v2386_v42  ;;  %v503_v22 = vmul.f32 %v2380_v53, %v2380_v53 }
  0xf8   :  { %v504_v12 = vadd.f32 %v502_v5, %v500_v50 }
  0xf9   :  { %v505_v1 = vadd.f32 %v503_v22, %v501_v37 }
  0xfa   :  { %1612 = vrsqrt.f32 %v504_v12  ;;  %v1170_v2 = vpop.permute.xlu1 %1169  ;;  %v2390_v0 = vpop.permute.xlu0 %619  ;;  %vm508_vm0 = vcmp.eq.f32.partialorder %v504_v12, inf  ;;  %vm510_vm1 = vcmp.eq.f32.partialorder %v504_v12, 0.0  ;;  %v511_v37 = vand.u32 2147483648, %v504_v12 }
  0xfb   :  { %2831 = vst [vmem:[#allocation4_spill] sm:$0xff] %v2390_v0  ;;  %1614 = vrsqrt.f32 %v505_v1  ;;  %v1190_v45 = vmul.f32 %v1170_v2, %v2324_v21  ;;  %v1191_v28 = vmul.f32 %v1170_v2, %v2326_v31  ;;  %v1172_v52 = vmul.f32 %v1170_v2, %v2328_v44 }
  0xfc   :  { %v1173_v43 = vmul.f32 %v1170_v2, %v2330_v16  ;;  %vm515_vm2 = vcmp.eq.f32.partialorder %v505_v1, inf  ;;  %vm517_vm3 = vcmp.eq.f32.partialorder %v505_v1, 0.0 }
  0xfe   :  { %v1177_v55 = vpop.permute.xlu1 %1176  ;;  %v1186_v10 = vpop.permute.xlu0 %1185 }
  0xff   :  { %v1192_v17 = vmul.f32 %v1177_v55, %v2328_v44  ;;  %v1193_v63 = vmul.f32 %v1177_v55, %v2330_v16  ;;  %v1179_v4 = vmul.f32 %v1177_v55, %v2324_v21  ;;  %v1180_v14 = vmul.f32 %v1177_v55, %v2326_v31 }
 0x100   :  { %v518_v55 = vand.u32 2147483648, %v505_v1 }
 0x101   :  { %v1194_v11 = vadd.f32 %v1192_v17, %v1190_v45  ;;  %v1195_v51 = vadd.f32 %v1193_v63, %v1191_v28  ;;  %v1181_v8 = vsub.f32 %v1172_v52, %v1179_v4  ;;  %v1182_v7 = vsub.f32 %v1173_v43, %v1180_v14 }
 0x102   :  { %v1199_v36 = vpop.permute.xlu1 %1198 }
 0x103   :  { %v2400_v27 = vadd.f32 %v1199_v36, %v1194_v11  ;;  %v2402_v35 = vadd.f32 %v1199_v36, %v1195_v51  ;;  %v2404_v46 = vadd.f32 %v1186_v10, %v1181_v8  ;;  %v2406_v15 = vadd.f32 %v1186_v10, %v1182_v7 }
 0x104   :  { %v1613_v44 = vpop.eup %1612 }
 0x105   :  { %v1615_v16 = vpop.eup %1614  ;;  %v507_v21 = vmul.f32 %v1613_v44, %v504_v12  ;;  %v1205_v31 = vmul.f32 %v2400_v27, %v2400_v27  ;;  %v1206_v3 = vmul.f32 %v2402_v35, %v2402_v35  ;;  %v1203_v50 = vmul.f32 %v2404_v46, %v2404_v46 }
 0x106   :  { %v514_v5 = vmul.f32 %v1615_v16, %v505_v1  ;;  %v1204_v22 = vmul.f32 %v2406_v15, %v2406_v15 }
 0x107   :  { %v509_v2 = vsel %vm508_vm0, %v504_v12, %v507_v21  ;;  %v1207_v45 = vadd.f32 %v1205_v31, %v1203_v50 }
 0x108   :  { %v512_v28 = vsel %vm510_vm1, %v511_v37, %v509_v2  ;;  %v516_v52 = vsel %vm515_vm2, %v505_v1, %v514_v5  ;;  %v1208_v43 = vadd.f32 %v1206_v3, %v1204_v22 }
 0x109   :  { %v519_v17 = vsel %vm517_vm3, %v518_v55, %v516_v52  ;;  %vm520_vm4 = vcmp.gt.f32.partialorder %v512_v28, 0.0  ;;  %v524_v63 = vadd.f32 1.0, %v512_v28  ;;  %v527_v11 = vmul.f32 -0.5, %v512_v28 }
 0x10a   :  { %vm521_vm5 = vcmp.gt.f32.partialorder %v519_v17, 0.0  ;;  %v522_v4 = vsel %vm520_vm4, %v512_v28, 1.0  ;;  %v533_v14 = vadd.f32 1.0, %v519_v17  ;;  %v536_v12 = vmul.f32 -0.5, %v519_v17 }
 0x10b   :  { %v523_v10 = vsel %vm521_vm5, %v519_v17, 1.0  ;;  %1616 = vlog2.f32 %v524_v63  ;;  %v528_v51 = vadd.f32 1.0, %v527_v11  ;;  %v530_v8 = vand.u32 2147483647, %v512_v28 }
 0x10c   :  { %1618 = vlog2.f32 %v533_v14  ;;  %v537_v7 = vadd.f32 1.0, %v536_v12  ;;  %v539_v1 = vand.u32 2147483647, %v519_v17  ;;  %vm1211_vm8 = vcmp.eq.f32.partialorder %v1207_v45, inf }
 0x10d   :  { %1620 = vrcp.f32 %v522_v4  ;;  %v529_v21 = vmul.f32 %v528_v51, %v512_v28  ;;  %vm531_vm6 = vcmp.lt.f32.partialorder %v530_v8, 0.0004427343  ;;  %v1214_v14 = vand.u32 2147483648, %v1207_v45 }
 0x10e   :  { %1622 = vrcp.f32 %v523_v10  ;;  %v538_v50 = vmul.f32 %v537_v7, %v519_v17  ;;  %vm540_vm7 = vcmp.lt.f32.partialorder %v539_v1, 0.0004427343  ;;  %vm1213_vm9 = vcmp.eq.f32.partialorder %v1207_v45, 0.0  ;;  %v2420_v7 = vld [vmem:[%s2761_s4] sm:$0xff] }
 0x10f   :  { %1624 = vrsqrt.f32 %v1207_v45  ;;  %vm1218_vm10 = vcmp.eq.f32.partialorder %v1208_v43, inf  ;;  %v1221_v28 = vand.u32 2147483648, %v1208_v43  ;;  %vm1220_vm11 = vcmp.eq.f32.partialorder %v1208_v43, 0.0 }
 0x110   :  { %1626 = vrsqrt.f32 %v1208_v43 }
 0x115   :  { %v1617_v36 = vpop.eup %1616 }
 0x116   :  { %v1619_v44 = vpop.eup %1618  ;;  %v526_v16 = vmul.f32 0.6931472, %v1617_v36 }
 0x117   :  { %v1621_v31 = vpop.eup %1620  ;;  %v535_v3 = vmul.f32 0.6931472, %v1619_v44 }
 0x118   :  { %v1623_v37 = vpop.eup %1622  ;;  %v532_v5 = vsel %vm531_vm6, %v529_v21, %v526_v16 }
 0x119   :  { %v1625_v22 = vpop.eup %1624  ;;  %v541_v2 = vsel %vm540_vm7, %v538_v50, %v535_v3  ;;  %v544_v52 = vmul.f32 %v1621_v31, %v532_v5 }
 0x11a   :  { %v1627_v55 = vpop.eup %1626  ;;  %v1210_v63 = vmul.f32 %v1625_v22, %v1207_v45  ;;  %v545_v4 = vmul.f32 %v1623_v37, %v541_v2 }
 0x11b   :  { %v1217_v10 = vmul.f32 %v1627_v55, %v1208_v43  ;;  %v548_v17 = vmul.f32 %v544_v52, %v2374_v20  ;;  %v1480_v20 = vld [vmem:[%s2761_s4 + $0x10] sm:$0xff]  ;;  %v546_v44 = vmul.f32 %v544_v52, %v2370_v25 }
 0x11c   :  { %v1212_v11 = vsel %vm1211_vm8, %v1207_v45, %v1210_v63  ;;  %v549_v1 = vmul.f32 %v545_v4, %v2380_v53  ;;  %v2426_v45 = vld [vmem:[%s2761_s4 + $0x8] sm:$0xff]  ;;  %v547_v53 = vmul.f32 %v545_v4, %v2372_v38 }
 0x11d   :  { %v1215_v12 = vsel %vm1213_vm9, %v1214_v14, %v1212_v11  ;;  %v1219_v51 = vsel %vm1218_vm10, %v1208_v43, %v1217_v10  ;;  %v2434_v43 = vld [vmem:[%s2761_s4 + $0x18] sm:$0xff]  ;;  %v558_v31 = vmul.f32 %v548_v17, %v2420_v7  ;;  %v552_v50 = vmul.f32 %v1480_v20, %v548_v17 }
 0x11e   :  { %v1222_v8 = vsel %vm1220_vm11, %v1221_v28, %v1219_v51  ;;  %vm1223_vm12 = vcmp.gt.f32.partialorder %v1215_v12, 0.0  ;;  %v1227_v36 = vadd.f32 1.0, %v1215_v12  ;;  %v553_v37 = vmul.f32 %v2434_v43, %v549_v1 }
 0x11f   :  { %vm1224_vm13 = vcmp.gt.f32.partialorder %v1222_v8, 0.0  ;;  %v1236_v16 = vadd.f32 1.0, %v1222_v8  ;;  %v1225_v21 = vsel %vm1223_vm12, %v1215_v12, 1.0  ;;  %v559_v5 = vmul.f32 %v549_v1, %v2426_v45 }
 0x120   :  { %1628 = vlog2.f32 %v1227_v36  ;;  %v1226_v3 = vsel %vm1224_vm13, %v1222_v8, 1.0  ;;  %v1230_v22 = vmul.f32 -0.5, %v1215_v12  ;;  %v1239_v2 = vmul.f32 -0.5, %v1222_v8 }
 0x121   :  { %1630 = vlog2.f32 %v1236_v16  ;;  %v556_v55 = vmul.f32 %v1480_v20, %v546_v44  ;;  %v557_v25 = vmul.f32 %v2434_v43, %v547_v53  ;;  %v550_v38 = vmul.f32 %v546_v44, %v2420_v7 }
 0x122   :  { %1632 = vrcp.f32 %v1225_v21  ;;  %v551_v52 = vmul.f32 %v547_v53, %v2426_v45  ;;  %v1231_v11 = vadd.f32 1.0, %v1230_v22  ;;  %v1233_v28 = vand.u32 2147483647, %v1215_v12 }
 0x123   :  { %1634 = vrcp.f32 %v1226_v3  ;;  %v2444_v63 = vadd.f32 %v558_v31, %v556_v55  ;;  %v2446_v4 = vadd.f32 %v559_v5, %v557_v25  ;;  %v2448_v14 = vsub.f32 %v550_v38, %v552_v50 }
 0x124   :  { %v2450_v10 = vsub.f32 %v551_v52, %v553_v37  ;;  %v1240_v51 = vadd.f32 1.0, %v1239_v2  ;;  %v1242_v53 = vand.u32 2147483647, %v1222_v8  ;;  %v1232_v5 = vmul.f32 %v1231_v11, %v1215_v12 }
 0x125   :  { %v572_v17 = vmul.f32 %v2444_v63, %v2444_v63  ;;  %v566_v1 = vadd.f32 %v2446_v4, %v2444_v63  ;;  %v570_v44 = vmul.f32 %v2448_v14, %v2448_v14  ;;  %v573_v21 = vmul.f32 %v2446_v4, %v2446_v4 }
 0x126   :  { %v562_v36 = vadd.f32 %v2450_v10, %v2448_v14  ;;  %v571_v16 = vmul.f32 %v2450_v10, %v2450_v10  ;;  %vm1234_vm14 = vcmp.lt.f32.partialorder %v1233_v28, 0.0004427343  ;;  %v1241_v55 = vmul.f32 %v1240_v51, %v1222_v8 }
 0x127   :  { %567 = vadd.xlane.f32.xlu0 %v566_v1  ;;  %v574_v3 = vadd.f32 %v572_v17, %v570_v44  ;;  %vm1243_vm15 = vcmp.lt.f32.partialorder %v1242_v53, 0.0004427343 }
 0x128   :  { %563 = vadd.xlane.f32.xlu1 %v562_v36  ;;  %v575_v22 = vadd.f32 %v573_v21, %v571_v16 }
 0x12a   :  { %v1629_v31 = vpop.eup %1628  ;;  %v576_v52 = vadd.f32 %v575_v22, %v574_v3 }
 0x12b   :  { %v1631_v50 = vpop.eup %1630  ;;  %v1229_v37 = vmul.f32 0.6931472, %v1629_v31 }
 0x12c   :  { %v1238_v2 = vmul.f32 0.6931472, %v1631_v50  ;;  %v1633_v25 = vpop.eup %1632  ;;  %577 = vadd.xlane.f32.xlu0 %v576_v52 }
 0x12d   :  { %v1235_v38 = vsel %vm1234_vm14, %v1232_v5, %v1229_v37  ;;  %v1635_v0 = vpop.eup %1634 }
 0x12e   :  { %v1244_v42 = vsel %vm1243_vm15, %v1241_v55, %v1238_v2  ;;  %v1247_v32 = vmul.f32 %v1633_v25, %v1235_v38 }
 0x12f   :  { %v1248_v61 = vmul.f32 %v1635_v0, %v1244_v42 }
 0x130   :  { %v1249_v1 = vmul.f32 %v1247_v32, %v2404_v46  ;;  %v1251_v17 = vmul.f32 %v1247_v32, %v2400_v27 }
 0x131   :  { %v1250_v36 = vmul.f32 %v1248_v61, %v2406_v15  ;;  %v1252_v12 = vmul.f32 %v1248_v61, %v2402_v35  ;;  %v641_v35 = vadd.f32 %v2362_v9, %v2360_v41 }
 0x132   :  { %v1253_v11 = vmul.f32 %v1249_v1, %v2420_v7  ;;  %v1259_v8 = vmul.f32 %v1480_v20, %v1249_v1  ;;  %v1255_v28 = vmul.f32 %v1480_v20, %v1251_v17  ;;  %v1261_v51 = vmul.f32 %v1251_v17, %v2420_v7 }
 0x133   :  { %v1254_v44 = vmul.f32 %v1250_v36, %v2426_v45  ;;  %v1260_v16 = vmul.f32 %v2434_v43, %v1250_v36  ;;  %v1256_v42 = vmul.f32 %v2434_v43, %v1252_v12  ;;  %v1262_v0 = vmul.f32 %v1252_v12, %v2426_v45 }
 0x134   :  { %v2474_v46 = vsub.f32 %v1253_v11, %v1255_v28  ;;  %v2476_v32 = vadd.f32 %v1261_v51, %v1259_v8  ;;  %v645_v36 = vmul.f32 %v2364_v62, %v2364_v62 }
 0x135   :  { %v2478_v27 = vsub.f32 %v1254_v44, %v1256_v42  ;;  %v2480_v61 = vadd.f32 %v1262_v0, %v1260_v16 }
 0x137   :  { %v1265_v15 = vadd.f32 %v2478_v27, %v2474_v46 }
 0x139   :  { %989 = vperm.xlu1 %1607, %v2222_v57   ;;  %v1269_v57 = vadd.f32 %v2480_v61, %v2476_v32 }
 0x13d   :  { %1114 = vperm.xlu1 %1607, %v2260_v54  }
 0x142   :  { %1024 = vperm.xlu0 %1606, %v2236_v13   ;;  %v2495_v13 = vpop.permute.xlu0 %632 }
 0x146   :  { %1034 = vperm.xlu0 %1606, %v2231_v6   ;;  %v800_v6 = vpop.permute.xlu0 %799 }
 0x147   :  { %v802_v52 = vmul.f32 %v800_v6, %v2033_v49  ;;  %v803_v1 = vmul.f32 %v800_v6, %v2036_v48 }
 0x14a   :  { %1069 = vperm.xlu0 %1606, %v2248_v19   ;;  %v810_v19 = vpop.permute.xlu0 %809 }
 0x14b   :  { %v812_v51 = vmul.f32 %v810_v19, %v2033_v49  ;;  %v813_v44 = vmul.f32 %v810_v19, %v2036_v48  ;;  %v646_v49 = vmul.f32 %v2366_v60, %v2366_v60  ;;  %v647_v48 = vmul.f32 %v2360_v41, %v2360_v41 }
 0x14e   :  { %1079 = vperm.xlu0 %1606, %v2242_v18   ;;  %v845_v54 = vpop.permute.xlu0 %844 }
 0x14f   :  { %v847_v25 = vmul.f32 %v845_v54, %v2041_v23  ;;  %v848_v17 = vmul.f32 %v845_v54, %v2044_v33 }
 0x151   :  { %v849_v16 = vadd.f32 %v847_v25, %v802_v52  ;;  %v649_v52 = vadd.f32 %v647_v48, %v645_v36 }
 0x152   :  { %1124 = vperm.xlu0 %1606, %v2254_v39   ;;  %v855_v18 = vpop.permute.xlu0 %854 }
 0x153   :  { %v857_v12 = vmul.f32 %v855_v18, %v2041_v23  ;;  %v858_v11 = vmul.f32 %v855_v18, %v2044_v33  ;;  %v850_v23 = vadd.f32 %v848_v17, %v803_v1 }
 0x155   :  { %v859_v19 = vadd.f32 %v857_v12, %v812_v51  ;;  %v860_v54 = vadd.f32 %v858_v11, %v813_v44  ;;  %v1273_v11 = vmul.f32 %v2474_v46, %v2474_v46 }
 0x156   :  { %v890_v7 = vpop.permute.xlu0 %889 }
 0x157   :  { %v892_v8 = vmul.f32 %v890_v7, %v2047_v34  ;;  %v893_v42 = vmul.f32 %v890_v7, %v2064_v40 }
 0x159   :  { %v894_v18 = vadd.f32 %v892_v8, %v849_v16 }
 0x15a   :  { %v900_v39 = vpop.permute.xlu0 %899 }
 0x15b   :  { %v902_v0 = vmul.f32 %v900_v39, %v2047_v34 }
 0x15e   :  { %v935_v45 = vpop.permute.xlu0 %934 }
 0x15f   :  { %v938_v33 = vmul.f32 %v935_v45, %v2072_v26 }
 0x161   :  { %642 = vadd.xlane.f32.xlu1 %v641_v35  ;;  %v903_v35 = vmul.f32 %v900_v39, %v2064_v40  ;;  %v895_v40 = vadd.f32 %v893_v42, %v850_v23 }
 0x162   :  { %v945_v20 = vpop.permute.xlu0 %944 }
 0x163   :  { %v947_v34 = vmul.f32 %v945_v20, %v2069_v56  ;;  %v948_v7 = vmul.f32 %v945_v20, %v2072_v26 }
 0x166   :  { %v980_v43 = vpop.permute.xlu0 %979 }
 0x167   :  { %v982_v39 = vmul.f32 %v980_v43, %v2077_v58 }
 0x171   :  { %1266 = vadd.xlane.f32.xlu0 %v1265_v15  ;;  %v937_v15 = vmul.f32 %v935_v45, %v2069_v56  ;;  %v904_v45 = vadd.f32 %v902_v0, %v859_v19 }
 0x175   :  { %1270 = vadd.xlane.f32.xlu0 %v1269_v57 }
 0x17f   :  { %v2497_v53 = vpop.xlane.xlu1 %638 }
 0x1b4   :  { %v568_v31 = vpop.xlane.xlu0 %567 }
 0x1b5   :  { %v564_v21 = vpop.xlane.xlu1 %563  ;;  %v2501_v50 = vmul.f32 0.00390625, %v568_v31  ;;  %v905_v31 = vadd.f32 %v903_v35, %v860_v54  ;;  %v2834_v54 = vld [vmem:[#allocation2_spill] sm:$0xff] }
 0x1b6   :  { %v2499_v3 = vmul.f32 0.00390625, %v564_v21  ;;  %v983_v21 = vmul.f32 %v980_v43, %v2094_v59 }
 0x1b7   :  { %v581_v5 = vmul.f32 %v2501_v50, %v2501_v50  ;;  %v950_v1 = vadd.f32 %v948_v7, %v905_v31  ;;  %v590_v8 = vsub.f32 %v2444_v63, %v2501_v50 }
 0x1b8   :  { %v580_v37 = vmul.f32 %v2499_v3, %v2499_v3 }
 0x1b9   :  { %v578_v2 = vpop.xlane.xlu0 %577  ;;  %v990_v57 = vpop.permute.xlu1 %989 }
 0x1ba   :  { %v582_v22 = vadd.f32 %v581_v5, %v580_v37  ;;  %v579_v55 = vmul.f32 0.00390625, %v578_v2  ;;  %v939_v37 = vadd.f32 %v937_v15, %v894_v18  ;;  %v648_v5 = vmul.f32 %v2362_v9, %v2362_v9 }
 0x1bb   :  { %v992_v2 = vmul.f32 %v990_v57, %v2077_v58  ;;  %v586_v58 = vsub.f32 %v2448_v14, %v2499_v3 }
 0x1bc   :  { %v583_v38 = vsub.f32 %v579_v55, %v582_v22  ;;  %v940_v22 = vadd.f32 %v938_v33, %v895_v40  ;;  %v993_v55 = vmul.f32 %v990_v57, %v2094_v59  ;;  %v650_v43 = vadd.f32 %v648_v5, %v646_v49  ;;  %v2832_v57 = vld [vmem:[#allocation14_spill] sm:$0xff] }
 0x1bd   :  { %v1115_v26 = vpop.permute.xlu1 %1114  ;;  %v984_v17 = vadd.f32 %v982_v39, %v939_v37  ;;  %v587_v59 = vsub.f32 %v2450_v10, %v2499_v3 }
 0x1be   :  { %v584_v28 = vadd.f32 1e-05, %v583_v38  ;;  %v949_v38 = vadd.f32 %v947_v34, %v904_v45  ;;  %v985_v12 = vadd.f32 %v983_v21, %v940_v22  ;;  %v995_v51 = vadd.f32 %v993_v55, %v950_v1  ;;  %v2835_v34 = vld [vmem:[#allocation3_spill] sm:$0xff] }
 0x1bf   :  { %v1117_v44 = vmul.f32 %v1115_v26, %v2124_v24 }
 0x1c0   :  { %1636 = vrsqrt.f32 %v584_v28  ;;  %v591_v28 = vsub.f32 %v2446_v4, %v2501_v50  ;;  %v994_v36 = vadd.f32 %v992_v2, %v949_v38 }
 0x1c1   :  { %v1025_v6 = vpop.permute.xlu0 %1024 }
 0x1c2   :  { %v1027_v56 = vmul.f32 %v1025_v6, %v2104_v29  ;;  %v1028_v20 = vmul.f32 %v1025_v6, %v2107_v30  ;;  %v2833_v6 = vld [vmem:[#allocation15_spill] sm:$0xff] }
 0x1c3   :  { %v1118_v4 = vmul.f32 %v1115_v26, %v2833_v6  ;;  %v1274_v26 = vmul.f32 %v2478_v27, %v2478_v27 }
 0x1c4   :  { %v1029_v16 = vadd.f32 %v1027_v56, %v984_v17  ;;  %v1030_v35 = vadd.f32 %v1028_v20, %v985_v12  ;;  %v1275_v56 = vmul.f32 %v2476_v32, %v2476_v32  ;;  %v1276_v20 = vmul.f32 %v2480_v61, %v2480_v61 }
 0x1c5   :  { %v1035_v25 = vpop.permute.xlu0 %1034 }
 0x1c6   :  { %v1037_v15 = vmul.f32 %v1035_v25, %v2104_v29  ;;  %v1038_v50 = vmul.f32 %v1035_v25, %v2107_v30 }
 0x1c8   :  { %v1039_v31 = vadd.f32 %v1037_v15, %v994_v36  ;;  %v1040_v2 = vadd.f32 %v1038_v50, %v995_v51  ;;  %v651_v51 = vadd.f32 %v650_v43, %v649_v52  ;;  %v2839_v50 = vld [vmem:[#allocation19_spill] sm:$0xff] }
 0x1c9   :  { %v1070_v42 = vpop.permute.xlu0 %1069 }
 0x1ca   :  { %v1637_v0 = vpop.eup %1636  ;;  %v1072_v14 = vmul.f32 %v1070_v42, %v2110_v47  ;;  %v1073_v10 = vmul.f32 %v1070_v42, %v2832_v57  ;;  %v1277_v42 = vadd.f32 %v1275_v56, %v1273_v11  ;;  %v1537_v11 = vld [vmem:[%s2762_s8 + $0x8] sm:$0xff] }
 0x1cb   :  { %v588_v3 = vmul.f32 %v1637_v0, %v586_v58  ;;  %v589_v23 = vmul.f32 %v1637_v0, %v587_v59  ;;  %v592_v63 = vmul.f32 %v1637_v0, %v590_v8  ;;  %v593_v33 = vmul.f32 %v1637_v0, %v591_v28 }
 0x1cc   :  { %v1074_v49 = vadd.f32 %v1072_v14, %v1029_v16  ;;  %v1075_v48 = vadd.f32 %v1073_v10, %v1030_v35  ;;  %v1278_v0 = vadd.f32 %v1276_v20, %v1274_v26 }
 0x1cd   :  { %v1080_v19 = vpop.permute.xlu0 %1079  ;;  %v2554_v18 = vmul.f32 %v2834_v54, %v588_v3  ;;  %v2557_v29 = vmul.f32 %v2834_v54, %v589_v23  ;;  %v2560_v40 = vmul.f32 %v2835_v34, %v592_v63  ;;  %v2563_v7 = vmul.f32 %v2835_v34, %v593_v33 }
 0x1ce   :  { %v2565_v39 = vadd.f32 %v1117_v44, %v1074_v49  ;;  %v2567_v21 = vadd.f32 %v1118_v4, %v1075_v48  ;;  %v1082_v30 = vmul.f32 %v1080_v19, %v2110_v47  ;;  %v1083_v45 = vmul.f32 %v1080_v19, %v2832_v57  ;;  %v2838_v4 = vld [vmem:[#allocation18_spill] sm:$0xff] }
 0x1cf   :  { %v615_v37 = vsub.f32 %v2554_v18, %v2560_v40  ;;  %v616_v5 = vsub.f32 %v2557_v29, %v2563_v7  ;;  %v624_v22 = vmul.f32 %v2834_v54, %v592_v63  ;;  %v625_v47 = vmul.f32 %v2834_v54, %v593_v33  ;;  %v2837_v63 = vld [vmem:[#allocation17_spill] sm:$0xff]  ;;  %v1538_v33 = vld [vmem:[%s2762_s8 + $0x10] sm:$0xff] }
 0x1d0   :  { %v1337_v55 = vadd.f32 %v2567_v21, %v2565_v39  ;;  %v1084_v25 = vadd.f32 %v1082_v30, %v1039_v31  ;;  %v626_v1 = vmul.f32 %v2835_v34, %v588_v3  ;;  %v1085_v17 = vadd.f32 %v1083_v45, %v1040_v2  ;;  %v669_v3 = vld [vmem:[%s2762_s8] sm:$0xff] }
 0x1d1   :  { %v1125_v38 = vpop.permute.xlu0 %1124  ;;  %v627_v59 = vmul.f32 %v2835_v34, %v589_v23  ;;  %v1345_v16 = vmul.f32 %v2565_v39, %v2565_v39  ;;  %v1346_v35 = vmul.f32 %v2567_v21, %v2567_v21  ;;  %v1279_v10 = vadd.f32 %v1278_v0, %v1277_v42  ;;  %v2836_v23 = vld [vmem:[#allocation16_spill] sm:$0xff] }
 0x1d2   :  { %v1127_v12 = vmul.f32 %v1125_v38, %v2124_v24  ;;  %v1128_v58 = vmul.f32 %v1125_v38, %v2833_v6  ;;  %1338 = vadd.xlane.f32.xlu1 %v1337_v55  ;;  %v2589_v8 = vadd.f32 %v626_v1, %v624_v22  ;;  %v1539_v6 = vld [vmem:[%s2762_s8 + $0x18] sm:$0xff]  ;;  %v640_v54 = vmul.f32 0.00390625, %v2497_v53 }
 0x1d3   :  { %v2595_v44 = vadd.f32 %v627_v59, %v625_v47 }
 0x1d4   :  { %v2591_v28 = vadd.f32 %v1127_v12, %v1084_v25  ;;  %v2593_v36 = vadd.f32 %v1128_v58, %v1085_v17  ;;  %v655_v22 = vmul.f32 %v640_v54, %v640_v54 }
 0x1d6   :  { %652 = vadd.xlane.f32.xlu1 %v651_v51  ;;  %v1341_v24 = vadd.f32 %v2593_v36, %v2591_v28  ;;  %v1347_v15 = vmul.f32 %v2591_v28, %v2591_v28  ;;  %v1348_v52 = vmul.f32 %v2593_v36, %v2593_v36 }
 0x1d8   :  { %1342 = vadd.xlane.f32.xlu0 %v1341_v24  ;;  %v1349_v43 = vadd.f32 %v1347_v15, %v1345_v16  ;;  %v1350_v14 = vadd.f32 %v1348_v52, %v1346_v35 }
 0x1da   :  { %v1351_v57 = vadd.f32 %v1350_v14, %v1349_v43 }
 0x1dc   :  { %1352 = vadd.xlane.f32.xlu1 %v1351_v57  ;;  %1280 = vadd.xlane.f32.xlu0 %v1279_v10 }
 0x1ed   :  { %685 = vperm.xlu1 %1607, %v1537_v11  }
 0x1ee   :  { %v643_v48 = vpop.xlane.xlu1 %642 }
 0x1ef   :  { %v644_v19 = vmul.f32 0.00390625, %v643_v48 }
 0x1f1   :  { %1303 = vperm.xlu1 %1607, %v2836_v23   ;;  %v656_v45 = vmul.f32 %v644_v19, %v644_v19  ;;  %v665_v23 = vsub.f32 %v2360_v41, %v644_v19 }
 0x1f2   :  { %678 = vperm.xlu0 %1606, %v669_v3  }
 0x1f3   :  { %v657_v47 = vadd.f32 %v656_v45, %v655_v22 }
 0x1f5   :  { %1375 = vperm.xlu1 %1607, %v669_v3   ;;  %v662_v3 = vsub.f32 %v2366_v60, %v640_v54 }
 0x1f6   :  { %1310 = vperm.xlu0 %1606, %v2837_v63   ;;  %v666_v63 = vsub.f32 %v2362_v9, %v644_v19 }
 0x1f9   :  { %694 = vperm.xlu1 %1607, %v1538_v33  }
 0x1fa   :  { %1382 = vperm.xlu0 %1606, %v1537_v11   ;;  %v661_v11 = vsub.f32 %v2364_v62, %v640_v54 }
 0x1fd   :  { %1319 = vperm.xlu1 %1607, %v2838_v4  }
 0x1fe   :  { %707 = vperm.xlu0 %1606, %v1539_v6   ;;  %v1267_v49 = vpop.xlane.xlu0 %1266 }
 0x1ff   :  { %v2626_v2 = vmul.f32 0.00390625, %v1267_v49 }
 0x201   :  { %1391 = vperm.xlu1 %1607, %v1538_v33   ;;  %v1283_v53 = vmul.f32 %v2626_v2, %v2626_v2  ;;  %v1289_v9 = vsub.f32 %v2474_v46, %v2626_v2  ;;  %v1290_v18 = vsub.f32 %v2478_v27, %v2626_v2 }
 0x202   :  { %1332 = vperm.xlu0 %1606, %v2839_v50   ;;  %v1271_v34 = vpop.xlane.xlu0 %1270 }
 0x203   :  { %v2624_v31 = vmul.f32 0.00390625, %v1271_v34 }
 0x205   :  { %v1284_v38 = vmul.f32 %v2624_v31, %v2624_v31  ;;  %v1293_v40 = vsub.f32 %v2476_v32, %v2624_v31  ;;  %v1294_v29 = vsub.f32 %v2480_v61, %v2624_v31 }
 0x206   :  { %1404 = vperm.xlu0 %1606, %v1539_v6   ;;  %v2840_v6 = vld [vmem:[#allocation4_spill] sm:$0xff] }
 0x207   :  { %v1285_v51 = vadd.f32 %v1284_v38, %v1283_v53  ;;  %v622_v4 = vadd.f32 %v2840_v6, %v615_v37  ;;  %v623_v50 = vadd.f32 %v2840_v6, %v616_v5 }
 0x25f   :  { %v1339_v30 = vpop.xlane.xlu1 %1338 }
 0x260   :  { %v2628_v56 = vmul.f32 0.00390625, %v1339_v30 }
 0x262   :  { %v1355_v17 = vmul.f32 %v2628_v56, %v2628_v56  ;;  %v1361_v46 = vsub.f32 %v2565_v39, %v2628_v56  ;;  %v1362_v27 = vsub.f32 %v2567_v21, %v2628_v56 }
 0x263   :  { %v653_v55 = vpop.xlane.xlu1 %652 }
 0x264   :  { %v654_v25 = vmul.f32 0.00390625, %v653_v55 }
 0x265   :  { %v1343_v26 = vpop.xlane.xlu0 %1342 }
 0x266   :  { %v658_v20 = vsub.f32 %v654_v25, %v657_v47  ;;  %v2632_v1 = vmul.f32 0.00390625, %v1343_v26 }
 0x268   :  { %v659_v12 = vadd.f32 1e-05, %v658_v20  ;;  %v1356_v58 = vmul.f32 %v2632_v1, %v2632_v1  ;;  %v1365_v61 = vsub.f32 %v2591_v28, %v2632_v1  ;;  %v1366_v31 = vsub.f32 %v2593_v36, %v2632_v1 }
 0x269   :  { %v1353_v59 = vpop.xlane.xlu1 %1352  ;;  %v1281_v16 = vpop.xlane.xlu0 %1280 }
 0x26a   :  { %1638 = vrsqrt.f32 %v659_v12  ;;  %v1354_v42 = vmul.f32 0.00390625, %v1353_v59  ;;  %v1357_v0 = vadd.f32 %v1356_v58, %v1355_v17  ;;  %v1282_v24 = vmul.f32 0.00390625, %v1281_v16 }
 0x26c   :  { %v1358_v35 = vsub.f32 %v1354_v42, %v1357_v0  ;;  %v1286_v15 = vsub.f32 %v1282_v24, %v1285_v51 }
 0x26d   :  { %v686_v52 = vpop.permute.xlu1 %685 }
 0x26e   :  { %v1359_v43 = vadd.f32 1e-05, %v1358_v35  ;;  %v1287_v14 = vadd.f32 1e-05, %v1286_v15 }
 0x270   :  { %1640 = vrsqrt.f32 %v1359_v43  ;;  %v636_v43 = vadd.f32 %v2495_v13, %v2595_v44 }
 0x271   :  { %1642 = vrsqrt.f32 %v1287_v14  ;;  %v2640_v57 = vpop.permute.xlu1 %1303  ;;  %v679_v10 = vpop.permute.xlu0 %678 }
 0x274   :  { %v1639_v33 = vpop.eup %1638 }
 0x275   :  { %v2654_v49 = vpop.permute.xlu1 %1375  ;;  %v2656_v62 = vpop.permute.xlu0 %1310  ;;  %v663_v60 = vmul.f32 %v1639_v33, %v661_v11  ;;  %v664_v48 = vmul.f32 %v1639_v33, %v662_v3  ;;  %v667_v41 = vmul.f32 %v1639_v33, %v665_v23  ;;  %v668_v54 = vmul.f32 %v1639_v33, %v666_v63 }
 0x277   :  { %v688_v7 = vmul.f32 %v686_v52, %v667_v41  ;;  %v689_v37 = vmul.f32 %v686_v52, %v668_v54  ;;  %v681_v5 = vmul.f32 %v679_v10, %v663_v60  ;;  %v682_v19 = vmul.f32 %v679_v10, %v664_v48 }
 0x278   :  { %v699_v34 = vmul.f32 %v679_v10, %v667_v41  ;;  %v700_v30 = vmul.f32 %v679_v10, %v668_v54  ;;  %v701_v45 = vmul.f32 %v686_v52, %v663_v60  ;;  %v702_v22 = vmul.f32 %v686_v52, %v664_v48 }
 0x279   :  { %v695_v2 = vpop.permute.xlu1 %694  ;;  %v690_v55 = vsub.f32 %v681_v5, %v688_v7  ;;  %v691_v32 = vsub.f32 %v682_v19, %v689_v37  ;;  %v1383_v47 = vpop.permute.xlu0 %1382  ;;  %v635_v52 = vadd.f32 %v2495_v13, %v2589_v8 }
 0x27a   :  { %v1641_v25 = vpop.eup %1640  ;;  %v703_v38 = vadd.f32 %v701_v45, %v699_v34  ;;  %v704_v26 = vadd.f32 %v702_v22, %v700_v30 }
 0x27b   :  { %v1643_v20 = vpop.eup %1642  ;;  %v697_v53 = vadd.f32 %v695_v2, %v690_v55  ;;  %v698_v17 = vadd.f32 %v695_v2, %v691_v32  ;;  %v1363_v39 = vmul.f32 %v1641_v25, %v1361_v46  ;;  %v1364_v12 = vmul.f32 %v1641_v25, %v1362_v27 }
 0x27c   :  { %v1291_v58 = vmul.f32 %v1643_v20, %v1289_v9  ;;  %v1292_v21 = vmul.f32 %v1643_v20, %v1290_v18  ;;  %v1295_v56 = vmul.f32 %v1643_v20, %v1293_v40  ;;  %v1296_v59 = vmul.f32 %v1643_v20, %v1294_v29 }
 0x27d   :  { %v2674_v51 = vadd.f32 %v697_v53, %v622_v4  ;;  %v2676_v16 = vadd.f32 %v698_v17, %v623_v50  ;;  %v708_v42 = vpop.permute.xlu0 %707  ;;  %v1367_v28 = vmul.f32 %v1641_v25, %v1365_v61  ;;  %v1368_v0 = vmul.f32 %v1641_v25, %v1366_v31  ;;  %v1320_v24 = vpop.permute.xlu1 %1319 }
 0x27e   :  { %v1306_v36 = vmul.f32 %v2640_v57, %v1291_v58  ;;  %v1307_v1 = vmul.f32 %v2640_v57, %v1292_v21  ;;  %v1313_v35 = vmul.f32 %v2656_v62, %v1295_v56  ;;  %v1314_v15 = vmul.f32 %v2656_v62, %v1296_v59 }
 0x27f   :  { %v710_v14 = vadd.f32 %v708_v42, %v703_v38  ;;  %v711_v10 = vadd.f32 %v708_v42, %v704_v26  ;;  %v1378_v3 = vmul.f32 %v2654_v49, %v1363_v39  ;;  %v1379_v23 = vmul.f32 %v2654_v49, %v1364_v12 }
 0x280   :  { %v1315_v11 = vsub.f32 %v1306_v36, %v1313_v35  ;;  %v1385_v6 = vmul.f32 %v1383_v47, %v1367_v28  ;;  %v1386_v4 = vmul.f32 %v1383_v47, %v1368_v0  ;;  %v716_v50 = vmul.f32 %v2674_v51, %v2674_v51 }
 0x281   :  { %v2688_v63 = vadd.f32 %v710_v14, %v635_v52  ;;  %v2690_v33 = vadd.f32 %v711_v10, %v636_v43  ;;  %v717_v8 = vmul.f32 %v2676_v16, %v2676_v16  ;;  %v1316_v13 = vsub.f32 %v1307_v1, %v1314_v15  ;;  %v1333_v54 = vpop.permute.xlu0 %1332  ;;  %v1392_v9 = vpop.permute.xlu1 %1391 }
 0x282   :  { %v1387_v48 = vsub.f32 %v1378_v3, %v1385_v6  ;;  %v1388_v41 = vsub.f32 %v1379_v23, %v1386_v4  ;;  %v1324_v18 = vmul.f32 %v2640_v57, %v1295_v56  ;;  %v1325_v40 = vmul.f32 %v2640_v57, %v1296_v59 }
 0x283   :  { %v718_v44 = vmul.f32 %v2688_v63, %v2688_v63  ;;  %v719_v60 = vmul.f32 %v2690_v33, %v2690_v33  ;;  %v1326_v29 = vmul.f32 %v2656_v62, %v1291_v58  ;;  %v1327_v7 = vmul.f32 %v2656_v62, %v1292_v21 }
 0x284   :  { %v1322_v37 = vadd.f32 %v1320_v24, %v1315_v11  ;;  %v1396_v34 = vmul.f32 %v2654_v49, %v1367_v28  ;;  %v1397_v30 = vmul.f32 %v2654_v49, %v1368_v0  ;;  %v1398_v45 = vmul.f32 %v1383_v47, %v1363_v39 }
 0x285   :  { %v720_v5 = vadd.f32 %v718_v44, %v716_v50  ;;  %v721_v19 = vadd.f32 %v719_v60, %v717_v8  ;;  %v1399_v22 = vmul.f32 %v1383_v47, %v1364_v12  ;;  %v1323_v46 = vadd.f32 %v1320_v24, %v1316_v13  ;;  %v1405_v32 = vpop.permute.xlu0 %1404 }
 0x286   :  { %v1394_v27 = vadd.f32 %v1392_v9, %v1387_v48  ;;  %v1395_v2 = vadd.f32 %v1392_v9, %v1388_v41  ;;  %v1328_v55 = vadd.f32 %v1326_v29, %v1324_v18  ;;  %v1329_v57 = vadd.f32 %v1327_v7, %v1325_v40 }
 0x287   :  { %1644 = vrsqrt.f32 %v720_v5  ;;  %v1400_v25 = vadd.f32 %v1398_v45, %v1396_v34  ;;  %v1401_v61 = vadd.f32 %v1399_v22, %v1397_v30  ;;  %vm724_vm0 = vcmp.eq.f32.partialorder %v720_v5, inf }
 0x288   :  { %1646 = vrsqrt.f32 %v721_v19  ;;  %v2706_v62 = vadd.f32 %v1394_v27, %v1322_v37  ;;  %v2708_v31 = vadd.f32 %v1395_v2, %v1323_v46  ;;  %v1335_v38 = vadd.f32 %v1333_v54, %v1328_v55 }
 0x289   :  { %v1336_v26 = vadd.f32 %v1333_v54, %v1329_v57  ;;  %v1407_v20 = vadd.f32 %v1405_v32, %v1400_v25  ;;  %v1408_v49 = vadd.f32 %v1405_v32, %v1401_v61  ;;  %vm726_vm1 = vcmp.eq.f32.partialorder %v720_v5, 0.0 }
 0x28a   :  { %v1413_v17 = vmul.f32 %v2706_v62, %v2706_v62  ;;  %v1414_v39 = vmul.f32 %v2708_v31, %v2708_v31  ;;  %v727_v0 = vand.u32 2147483648, %v720_v5  ;;  %vm731_vm2 = vcmp.eq.f32.partialorder %v721_v19, inf }
 0x28b   :  { %v2710_v53 = vadd.f32 %v1407_v20, %v1335_v38  ;;  %v2712_v47 = vadd.f32 %v1408_v49, %v1336_v26  ;;  %v734_v1 = vand.u32 2147483648, %v721_v19  ;;  %vm733_vm3 = vcmp.eq.f32.partialorder %v721_v19, 0.0 }
 0x28d   :  { %v1415_v12 = vmul.f32 %v2710_v53, %v2710_v53  ;;  %v1416_v58 = vmul.f32 %v2712_v47, %v2712_v47 }
 0x28f   :  { %v1417_v42 = vadd.f32 %v1415_v12, %v1413_v17  ;;  %v1418_v28 = vadd.f32 %v1416_v58, %v1414_v39 }
 0x291   :  { %v1645_v21 = vpop.eup %1644  ;;  %1648 = vrsqrt.f32 %v1417_v42  ;;  %vm1421_vm6 = vcmp.eq.f32.partialorder %v1417_v42, inf  ;;  %vm1423_vm7 = vcmp.eq.f32.partialorder %v1417_v42, 0.0  ;;  %v1424_v60 = vand.u32 2147483648, %v1417_v42 }
 0x292   :  { %v1647_v56 = vpop.eup %1646  ;;  %v723_v59 = vmul.f32 %v1645_v21, %v720_v5  ;;  %1650 = vrsqrt.f32 %v1418_v28  ;;  %vm1428_vm8 = vcmp.eq.f32.partialorder %v1418_v28, inf  ;;  %v1431_v9 = vand.u32 2147483648, %v1418_v28 }
 0x293   :  { %v730_v24 = vmul.f32 %v1647_v56, %v721_v19  ;;  %vm1430_vm9 = vcmp.eq.f32.partialorder %v1418_v28, 0.0 }
 0x294   :  { %v725_v36 = vsel %vm724_vm0, %v720_v5, %v723_v59 }
 0x295   :  { %v728_v35 = vsel %vm726_vm1, %v727_v0, %v725_v36  ;;  %v732_v15 = vsel %vm731_vm2, %v721_v19, %v730_v24 }
 0x296   :  { %v735_v52 = vsel %vm733_vm3, %v734_v1, %v732_v15  ;;  %vm736_vm4 = vcmp.gt.f32.partialorder %v728_v35, 0.0  ;;  %v740_v43 = vadd.f32 1.0, %v728_v35  ;;  %v743_v3 = vmul.f32 -0.5, %v728_v35 }
 0x297   :  { %vm737_vm5 = vcmp.gt.f32.partialorder %v735_v52, 0.0  ;;  %v749_v14 = vadd.f32 1.0, %v735_v52  ;;  %v738_v10 = vsel %vm736_vm4, %v728_v35, 1.0  ;;  %v752_v23 = vmul.f32 -0.5, %v735_v52 }
 0x298   :  { %1652 = vlog2.f32 %v740_v43  ;;  %v739_v11 = vsel %vm737_vm5, %v735_v52, 1.0  ;;  %v744_v50 = vadd.f32 1.0, %v743_v3  ;;  %v746_v13 = vand.u32 2147483647, %v728_v35 }
 0x299   :  { %1654 = vlog2.f32 %v749_v14  ;;  %v753_v44 = vadd.f32 1.0, %v752_v23  ;;  %v755_v41 = vand.u32 2147483647, %v735_v52 }
 0x29a   :  { %1656 = vrcp.f32 %v738_v10  ;;  %v745_v5 = vmul.f32 %v744_v50, %v728_v35  ;;  %vm747_vm10 = vcmp.lt.f32.partialorder %v746_v13, 0.0004427343 }
 0x29b   :  { %1658 = vrcp.f32 %v739_v11  ;;  %v1649_v6 = vpop.eup %1648  ;;  %v754_v45 = vmul.f32 %v753_v44, %v735_v52  ;;  %vm756_vm12 = vcmp.lt.f32.partialorder %v755_v41, 0.0004427343 }
 0x29c   :  { %v1651_v4 = vpop.eup %1650  ;;  %v1420_v8 = vmul.f32 %v1649_v6, %v1417_v42 }
 0x29d   :  { %v1427_v48 = vmul.f32 %v1651_v4, %v1418_v28 }
 0x29e   :  { %v1422_v54 = vsel %vm1421_vm6, %v1417_v42, %v1420_v8 }
 0x29f   :  { %v1425_v40 = vsel %vm1423_vm7, %v1424_v60, %v1422_v54  ;;  %v1429_v29 = vsel %vm1428_vm8, %v1418_v28, %v1427_v48 }
 0x2a0   :  { %v1432_v19 = vsel %vm1430_vm9, %v1431_v9, %v1429_v29  ;;  %v1437_v34 = vadd.f32 1.0, %v1425_v40  ;;  %vm1433_vm11 = vcmp.gt.f32.partialorder %v1425_v40, 0.0  ;;  %v1440_v61 = vmul.f32 -0.5, %v1425_v40 }
 0x2a1   :  { %vm1434_vm13 = vcmp.gt.f32.partialorder %v1432_v19, 0.0  ;;  %v1446_v57 = vadd.f32 1.0, %v1432_v19  ;;  %v1435_v25 = vsel %vm1433_vm11, %v1425_v40, 1.0  ;;  %v1452_v21 = vand.u32 2147483647, %v1432_v19 }
 0x2a2   :  { %v1653_v18 = vpop.eup %1652  ;;  %1660 = vlog2.f32 %v1437_v34  ;;  %v1436_v20 = vsel %vm1434_vm13, %v1432_v19, 1.0 }
 0x2a3   :  { %v1655_v7 = vpop.eup %1654  ;;  %v742_v37 = vmul.f32 0.6931472, %v1653_v18  ;;  %1662 = vlog2.f32 %v1446_v57  ;;  %vm1453_vm15 = vcmp.lt.f32.partialorder %v1452_v21, 0.0004427343 }
 0x2a4   :  { %v751_v30 = vmul.f32 0.6931472, %v1655_v7  ;;  %v1657_v22 = vpop.eup %1656  ;;  %1664 = vrcp.f32 %v1435_v25 }
 0x2a5   :  { %v748_v46 = vsel %vm747_vm10, %v745_v5, %v742_v37  ;;  %v1659_v27 = vpop.eup %1658  ;;  %1666 = vrcp.f32 %v1436_v20 }
 0x2a6   :  { %v757_v2 = vsel %vm756_vm12, %v754_v45, %v751_v30  ;;  %v760_v55 = vmul.f32 %v1657_v22, %v748_v46 }
 0x2a7   :  { %v761_v32 = vmul.f32 %v1659_v27, %v757_v2 }
 0x2a8   :  { %v762_v38 = vmul.f32 %v760_v55, %v2674_v51  ;;  %v764_v26 = vmul.f32 %v760_v55, %v2688_v63  ;;  %v1449_v51 = vmul.f32 -0.5, %v1432_v19  ;;  %v1443_v63 = vand.u32 2147483647, %v1425_v40 }
 0x2a9   :  { %v763_v49 = vmul.f32 %v761_v32, %v2676_v16  ;;  %v765_v17 = vmul.f32 %v761_v32, %v2690_v33  ;;  %v1441_v16 = vadd.f32 1.0, %v1440_v61 }
 0x2aa   :  { %766 = vst [vmem:[%s2763_s9] sm:$0xff] %v762_v38  ;;  %1540 = vst [vmem:[%s2763_s9 + $0x20] sm:$0xff] %v764_v26  ;;  %v1450_v39 = vadd.f32 1.0, %v1449_v51  ;;  %vm1444_vm14 = vcmp.lt.f32.partialorder %v1443_v63, 0.0004427343 }
 0x2ab   :  { %767 = vst [vmem:[%s2763_s9 + $0x8] sm:$0xff] %v763_v49  ;;  %1541 = vst [vmem:[%s2763_s9 + $0x28] sm:$0xff] %v765_v17  ;;  %v1442_v58 = vmul.f32 %v1441_v16, %v1425_v40 }
 0x2ac   :  { %v1661_v33 = vpop.eup %1660  ;;  %v1451_v28 = vmul.f32 %v1450_v39, %v1432_v19 }
 0x2ad   :  { %v1439_v12 = vmul.f32 0.6931472, %v1661_v33  ;;  %v1663_v56 = vpop.eup %1662 }
 0x2ae   :  { %v1448_v42 = vmul.f32 0.6931472, %v1663_v56  ;;  %v1665_v0 = vpop.eup %1664 }
 0x2af   :  { %v1445_v59 = vsel %vm1444_vm14, %v1442_v58, %v1439_v12  ;;  %v1667_v24 = vpop.eup %1666 }
 0x2b0   :  { %v1454_v36 = vsel %vm1453_vm15, %v1451_v28, %v1448_v42  ;;  %v1457_v1 = vmul.f32 %v1665_v0, %v1445_v59 }
 0x2b1   :  { %v1458_v35 = vmul.f32 %v1667_v24, %v1454_v36 }
 0x2b2   :  { %v1459_v15 = vmul.f32 %v1457_v1, %v2706_v62  ;;  %v1461_v52 = vmul.f32 %v1457_v1, %v2710_v53 }
 0x2b3   :  { %v1460_v43 = vmul.f32 %v1458_v35, %v2708_v31  ;;  %v1462_v14 = vmul.f32 %v1458_v35, %v2712_v47 }
 0x2b4   :  { %1601 = vst [vmem:[%s2763_s9 + $0x10] sm:$0xff] %v1459_v15  ;;  %1603 = vst [vmem:[%s2763_s9 + $0x30] sm:$0xff] %v1461_v52 }
 0x2b5   :  { %1602 = vst [vmem:[%s2763_s9 + $0x18] sm:$0xff] %v1460_v43  ;;  %1604 = vst [vmem:[%s2763_s9 + $0x38] sm:$0xff] %v1462_v14 }

</bundles_post_ra>
